<compile_context>
chip_gen: v5e
topology: v5e:2x2
jax: 0.10.0
libtpu: 0.0.40
codegen_flags: <defaults>
</compile_context>

<pallas_src>
import functools

import jax
import jax.numpy as jnp
from jax import lax
from jax.experimental import pallas as pl
from jax.experimental.pallas import tpu as pltpu

EPS = 1e-5  # nn.GroupNorm default eps


@functools.lru_cache(maxsize=None)
def _vmem_limit_bytes():
    cap = 64 * 1024 * 1024  # conservative fallback (v7x-sized)
    try:
        info = pltpu.get_tpu_info()
        cap = int(getattr(info, "vmem_capacity_bytes", cap))
    except Exception:
        pass
    return int(max(32 << 20, min(cap - (16 << 20), 100 << 20)))


def _grid_params(n_parallel):
    return pltpu.CompilerParams(
        dimension_semantics=("parallel",) * n_parallel,
        vmem_limit_bytes=_vmem_limit_bytes())


def _mish(x):
    # mish(x) = x*tanh(softplus(x)) = x*(u^2+2u)/(u^2+2u+2), u = exp(x).
    # exp is clamped at 20 (ratio is already 1 to f32 precision there) so u^2
    # never overflows; one EUP exp + one EUP approx reciprocal per element.
    u = jnp.exp(jnp.minimum(x, 20.0))
    num = u * (u + 2.0)
    return x * num * pl.reciprocal(num + 2.0, approx=True)


def _mish_jnp(x):
    return x * jnp.tanh(jax.nn.softplus(x))


def _group_norm(x, gamma_ref, beta_ref, gmat_ref, gmat_t_ref, inv_count):
    # Two-pass GroupNorm (mean, then centered sum of squares) using a
    # channel->group one-hot matmul so no lane reshapes are needed.
    s = jnp.sum(x, axis=0, keepdims=True)                               # (1, C)
    mean_c = jnp.dot(
        jnp.dot(s, gmat_ref[...], preferred_element_type=jnp.float32) * inv_count,
        gmat_t_ref[...], preferred_element_type=jnp.float32)            # (1, C)
    d = x - mean_c
    ss = jnp.sum(d * d, axis=0, keepdims=True)
    var_c = jnp.dot(
        jnp.dot(ss, gmat_ref[...], preferred_element_type=jnp.float32) * inv_count,
        gmat_t_ref[...], preferred_element_type=jnp.float32)
    y = d * lax.rsqrt(var_c + EPS)
    return y * gamma_ref[...] + beta_ref[...]


# ----------------------------------------------------------------------------
# Kernel 1/2: fused (optional per-channel bias) -> GroupNorm -> Mish ->
# 3x3 conv (padding=1, done in VMEM scratch) -> (+ optional residual 1x1 conv)
# ----------------------------------------------------------------------------
def _block_kernel(*refs, H, W, inv_count, has_chbias, fuse_res, res_is_conv,
                  pad_off):
    i = 0
    x_ref = refs[i]; i += 1
    chb_ref = None
    if has_chbias:
        chb_ref = refs[i]; i += 1
    gamma_ref, beta_ref, gmat_ref, gmat_t_ref, w_ref, b_ref = refs[i:i + 6]
    i += 6
    xres_ref = wres_ref = None
    if fuse_res:
        xres_ref = refs[i]; i += 1
        if res_is_conv:
            wres_ref = refs[i]; i += 1
    o_ref = refs[i]
    pad_ref = refs[i + 1]  # VMEM scratch: padded normalized activation

    N = H * W
    c_in = x_ref.shape[-1]
    c_out = o_ref.shape[-1]

    # ---- GroupNorm + Mish (f32 math) ----
    x = x_ref[0].astype(jnp.float32)                                     # (N, C_in)
    if has_chbias:
        x = x + chb_ref[0]                                               # (1, C_in)
    y = _mish(_group_norm(x, gamma_ref, beta_ref, gmat_ref, gmat_t_ref,
                          inv_count))

    # ---- pad inside VMEM: zero rows top/bottom + guard tokens, interior at a
    #      sublane-aligned offset so the big store is unmasked ----
    total = pad_ref.shape[0]
    pad_ref[:pad_off, :] = jnp.zeros((pad_off, c_in), pad_ref.dtype)
    pad_ref[pad_off + N:, :] = jnp.zeros((total - pad_off - N, c_in),
                                         pad_ref.dtype)
    pad_ref[pad_off:pad_off + N, :] = y.astype(pad_ref.dtype)

    # ---- 3x3 conv as 9 tap-shifted (N,C_in)@(C_in,C_out) matmuls ----
    # TODO(synk): horizontal (W+2)-stride padding would remove the 6 column
    # masks (VPU work) at the cost of strided interior stores; kept simple.
    col = lax.broadcasted_iota(jnp.int32, (N, 1), 0) % W
    not_first = (col != 0).astype(jnp.bfloat16)      # left taps  (dx == 0)
    not_last = (col != W - 1).astype(jnp.bfloat16)   # right taps (dx == 2)

    acc = jnp.zeros((N, c_out), jnp.float32)
    for t in range(9):
        dy, dx = divmod(t, 3)
        start = pad_off - (W + 1) + dy * W + dx
        win = pad_ref[start:start + N, :]
        if dx == 0:
            win = win * not_first
        elif dx == 2:
            win = win * not_last
        acc = acc + jnp.dot(win, w_ref[t], preferred_element_type=jnp.float32)

    if fuse_res:
        if res_is_conv:
            acc = acc + jnp.dot(xres_ref[0], wres_ref[...],
                                preferred_element_type=jnp.float32)
        else:
            acc = acc + xres_ref[0].astype(jnp.float32)

    o_ref[0] = (acc + b_ref[...]).astype(o_ref.dtype)


def fused_block(x_tok, gamma, beta, groups, conv_w, conv_b, H, W, *,
                chbias=None, res_tok=None, res_w=None, res_b=None,
                out_dtype=jnp.bfloat16):
    B, N, C_in = x_tok.shape
    C_out = conv_w.shape[0]
    G = groups
    cs = C_in // G
    gmat = (jnp.arange(C_in)[:, None] // cs ==
            jnp.arange(G)[None, :]).astype(jnp.float32)                  # (C_in, G)
    gmat_t = gmat.T
    # (Cout, Cin, 3, 3) -> (9, Cin, Cout), tap-major (dy, dx)
    wm = jnp.transpose(conv_w, (2, 3, 1, 0)).reshape(9, C_in, C_out)
    wm = wm.astype(jnp.bfloat16)

    has_chbias = chbias is not None
    fuse_res = res_tok is not None
    res_is_conv = res_w is not None
    bias = conv_b
    if fuse_res and res_b is not None:
        bias = bias + res_b
    bias = bias.reshape(1, C_out).astype(jnp.float32)

    pad_off = ((W + 1 + 7) // 8) * 8       # aligned interior offset (>= W+1)
    pad_rows = pad_off + N + W + 1         # room for the (dy=2,dx=2) window

    kernel = functools.partial(
        _block_kernel, H=H, W=W, inv_count=1.0 / float(N * cs),
        has_chbias=has_chbias, fuse_res=fuse_res, res_is_conv=res_is_conv,
        pad_off=pad_off)

    in_specs = [pl.BlockSpec((1, N, C_in), lambda b: (b, 0, 0))]
    inputs = [x_tok]
    if has_chbias:
        in_specs.append(pl.BlockSpec((1, 1, C_in), lambda b: (b, 0, 0)))
        inputs.append(chbias)
    in_specs += [
        pl.BlockSpec((1, C_in), lambda b: (0, 0)),
        pl.BlockSpec((1, C_in), lambda b: (0, 0)),
        pl.BlockSpec((C_in, G), lambda b: (0, 0)),
        pl.BlockSpec((G, C_in), lambda b: (0, 0)),
        pl.BlockSpec((9, C_in, C_out), lambda b: (0, 0, 0)),
        pl.BlockSpec((1, C_out), lambda b: (0, 0)),
    ]
    inputs += [gamma.reshape(1, C_in).astype(jnp.float32),
               beta.reshape(1, C_in).astype(jnp.float32),
               gmat, gmat_t, wm, bias]

    flops = 2 * B * N * 9 * C_in * C_out
    bytes_accessed = (x_tok.size * x_tok.dtype.itemsize + wm.size * 2
                      + B * N * C_out * jnp.dtype(out_dtype).itemsize)
    if fuse_res:
        C_res = res_tok.shape[-1]
        in_specs.append(pl.BlockSpec((1, N, C_res), lambda b: (b, 0, 0)))
        inputs.append(res_tok)
        bytes_accessed += res_tok.size * res_tok.dtype.itemsize
        if res_is_conv:
            in_specs.append(pl.BlockSpec((C_res, C_out), lambda b: (0, 0)))
            inputs.append(res_w)
            flops += 2 * B * N * C_res * C_out

    return pl.pallas_call(
        kernel,
        out_shape=jax.ShapeDtypeStruct((B, N, C_out), out_dtype),
        grid=(B,),
        in_specs=in_specs,
        out_specs=pl.BlockSpec((1, N, C_out), lambda b: (b, 0, 0)),
        scratch_shapes=[pltpu.VMEM((pad_rows, C_in), jnp.bfloat16)],
        compiler_params=_grid_params(1),
        cost_estimate=pl.CostEstimate(flops=int(flops),
                                      transcendentals=int(2 * B * N * C_in),
                                      bytes_accessed=int(bytes_accessed)),
    )(*inputs)


# ----------------------------------------------------------------------------
# Kernel 3: fused SelfAtt: GN -> qkv 1x1 -> spatial-softmax linear attention
# (block-diagonal head mask on a single wide (C,C) context) -> output 1x1 proj
# ----------------------------------------------------------------------------
def _selfatt_kernel(x_ref, gamma_ref, beta_ref, gmat_ref, gmat_t_ref,
                    wq_ref, wk_ref, wv_ref, hmask_ref, wp_ref, pb_ref, o_ref,
                    *, inv_count):
    x = x_ref[0].astype(jnp.float32)                                     # (N, C)
    z = _group_norm(x, gamma_ref, beta_ref, gmat_ref, gmat_t_ref,
                    inv_count).astype(jnp.bfloat16)

    # full-width qkv projections (lane-dense MXU work, no per-head loop)
    q = jnp.dot(z, wq_ref[...], preferred_element_type=jnp.float32)      # (N, C)
    k = jnp.dot(z, wk_ref[...], preferred_element_type=jnp.float32)
    v = jnp.dot(z, wv_ref[...], preferred_element_type=jnp.float32)

    # softmax over the spatial (token) axis per channel (matches
    # F.softmax(keys, dim=-1) on (h w); queries are NOT 1/sqrt(D)-scaled)
    kmax = jnp.max(k, axis=0, keepdims=True)
    e = jnp.exp(k - kmax)
    inv = pl.reciprocal(jnp.sum(e, axis=0, keepdims=True), approx=True)
    ksm = (e * inv).astype(jnp.bfloat16)

    # ctx[d, e] = sum_n ksm[n, d] * v[n, e]; block-diagonal head mask keeps
    # only intra-head (d, e) pairs -> identical to per-head (D, D) contexts.
    ctx = lax.dot_general(ksm, v.astype(jnp.bfloat16),
                          (((0,), (0,)), ((), ())),
                          preferred_element_type=jnp.float32)            # (C, C)
    ctx = (ctx * hmask_ref[...]).astype(jnp.bfloat16)
    out = jnp.dot(q.astype(jnp.bfloat16), ctx,
                  preferred_element_type=jnp.float32)                    # (N, C)

    o_ref[0] = (jnp.dot(out.astype(jnp.bfloat16), wp_ref[...],
                        preferred_element_type=jnp.float32) + pb_ref[...]
                ).astype(o_ref.dtype)


def self_attention(x_tok, gamma, beta, groups, qkv_w, proj_w, proj_b, heads,
                   out_dtype=jnp.float32):
    B, N, C = x_tok.shape
    D = C // heads
    G = groups
    cs = C // G
    gmat = (jnp.arange(C)[:, None] // cs ==
            jnp.arange(G)[None, :]).astype(jnp.float32)
    gmat_t = gmat.T

    wqkv = qkv_w.reshape(3 * C, C)                     # [out, in] of the 1x1 conv
    wq = wqkv[:C].T.astype(jnp.bfloat16)               # (C_in, C_out)
    wk = wqkv[C:2 * C].T.astype(jnp.bfloat16)
    wv = wqkv[2 * C:].T.astype(jnp.bfloat16)
    hmask = (jnp.arange(C)[:, None] // D ==
             jnp.arange(C)[None, :] // D).astype(jnp.float32)            # (C, C)
    wp = proj_w.reshape(C, C).T.astype(jnp.bfloat16)
    pb = proj_b.reshape(1, C).astype(jnp.float32)

    kernel = functools.partial(_selfatt_kernel, inv_count=1.0 / float(N * cs))

    flops = 2 * B * N * C * C * 6        # 3x qkv + ctx + apply + proj
    bytes_accessed = (x_tok.size * x_tok.dtype.itemsize + 5 * C * C * 2
                      + C * 4 + B * N * C * jnp.dtype(out_dtype).itemsize)

    return pl.pallas_call(
        kernel,
        out_shape=jax.ShapeDtypeStruct((B, N, C), out_dtype),
        grid=(B,),
        in_specs=[
            pl.BlockSpec((1, N, C), lambda b: (b, 0, 0)),
            pl.BlockSpec((1, C), lambda b: (0, 0)),
            pl.BlockSpec((1, C), lambda b: (0, 0)),
            pl.BlockSpec((C, G), lambda b: (0, 0)),
            pl.BlockSpec((G, C), lambda b: (0, 0)),
            pl.BlockSpec((C, C), lambda b: (0, 0)),
            pl.BlockSpec((C, C), lambda b: (0, 0)),
            pl.BlockSpec((C, C), lambda b: (0, 0)),
            pl.BlockSpec((C, C), lambda b: (0, 0)),
            pl.BlockSpec((C, C), lambda b: (0, 0)),
            pl.BlockSpec((1, C), lambda b: (0, 0)),
        ],
        out_specs=pl.BlockSpec((1, N, C), lambda b: (b, 0, 0)),
        compiler_params=_grid_params(1),
        cost_estimate=pl.CostEstimate(flops=int(flops),
                                      transcendentals=int(B * N * C),
                                      bytes_accessed=int(bytes_accessed)),
    )(x_tok, gamma.reshape(1, C).astype(jnp.float32),
      beta.reshape(1, C).astype(jnp.float32),
      gmat, gmat_t, wq, wk, wv, hmask, wp, pb)


# ----------------------------------------------------------------------------
# Forward pass (JAX glue = layout conversion, weight re-packing, tiny time MLP)
# ----------------------------------------------------------------------------
def resblock_forward(x, time_emb, p, *, norm_groups, num_heads):
    B, C_in, H, W = x.shape
    N = H * W
    C_out = p["conv1_w"].shape[0]

    x_tok = jnp.transpose(x, (0, 2, 3, 1)).reshape(B, N, C_in)

    # ---- block1: GN -> Mish -> Conv3x3 (one fused kernel) ----
    y = fused_block(x_tok, p["gn1_g"], p["gn1_b"], norm_groups,
                    p["conv1_w"], p["conv1_b"], H, W, out_dtype=jnp.bfloat16)

    # ---- y += mlp(time_emb): tiny -> plain jnp, fused as pre-GN bias below ----
    temb_bias = _mish_jnp(time_emb) @ p["lin_w"].T + p["lin_b"]          # (B, C_out)

    # ---- block2 (+time bias) + residual 1x1 conv fused into the same kernel ----
    if p.get("res_w") is not None:
        res_w = p["res_w"].reshape(C_out, C_in).T.astype(jnp.bfloat16)   # (C_in, C_out)
        res_b = p["res_b"]
    else:
        res_w, res_b = None, None          # identity residual (dim == dim_out)
    xr = fused_block(y, p["gn2_g"], p["gn2_b"], norm_groups,
                     p["conv2_w"], p["conv2_b"], H, W,
                     chbias=temb_bias.reshape(B, 1, C_out).astype(jnp.float32),
                     res_tok=x_tok.astype(jnp.bfloat16),
                     res_w=res_w, res_b=res_b, out_dtype=jnp.bfloat16)

    # ---- SelfAtt (no skip connection around it, matching the PyTorch source) ----
    out = self_attention(xr, p["gn3_g"], p["gn3_b"], norm_groups,
                         p["qkv_w"], p["proj_w"], p["proj_b"], num_heads)

    return out.reshape(B, H, W, C_out).transpose(0, 3, 1, 2)             # NCHW


# ----------------------------------------------------------------------------
# Deterministic synthetic parameters (shapes from ResBlock.__init__)
# ----------------------------------------------------------------------------
def init_params(key, dim, dim_out, time_emb_dim):
    ks = jax.random.split(key, 16)
    n = lambda k, s, sc=0.1: sc * jax.random.normal(k, s, jnp.float32)
    return {
        "lin_w": n(ks[0], (dim_out, time_emb_dim)),   # nn.Linear weight
        "lin_b": n(ks[1], (dim_out,)),
        "gn1_g": 1.0 + n(ks[2], (dim,)),
        "gn1_b": n(ks[3], (dim,)),
        "conv1_w": n(ks[4], (dim_out, dim, 3, 3)),
        "conv1_b": n(ks[5], (dim_out,)),
        "gn2_g": 1.0 + n(ks[6], (dim_out,)),
        "gn2_b": n(ks[7], (dim_out,)),
        "conv2_w": n(ks[8], (dim_out, dim_out, 3, 3)),
        "conv2_b": n(ks[9], (dim_out,)),
        "res_w": n(ks[10], (dim_out, dim, 1, 1)),     # dim != dim_out -> 1x1 conv
        "res_b": n(ks[11], (dim_out,)),
        "gn3_g": 1.0 + n(ks[12], (dim_out,)),
        "gn3_b": n(ks[13], (dim_out,)),
        "qkv_w": n(ks[14], (3 * dim_out, dim_out, 1, 1)),  # bias=False
        "proj_w": n(ks[15], (dim_out, dim_out, 1, 1)),
        "proj_b": jnp.zeros((dim_out,), jnp.float32),
    }
    # TODO(synk): dropout inside Block is nn.Identity for dropout=0.0 (default),
    # so no dropout op is emitted here.


if __name__ == "__main__":
    B, dim, dim_out = 2, 8, 16
    H = W = 8
    time_emb_dim = 32
    norm_groups = 4
    num_heads = 2

    key = jax.random.PRNGKey(0)
    kx, kt, kp = jax.random.split(key, 3)
    x = jax.random.normal(kx, (B, dim, H, W), jnp.float32)
    time_emb = jax.random.normal(kt, (B, time_emb_dim), jnp.float32)
    params = init_params(kp, dim, dim_out, time_emb_dim)

    fwd = jax.jit(functools.partial(resblock_forward,
                                    norm_groups=norm_groups,
                                    num_heads=num_heads))
    out = jax.block_until_ready(fwd(x, time_emb, params))
    assert out.shape == (B, dim_out, H, W)
    assert bool(jnp.all(jnp.isfinite(out)))
    print("KERNEL_OK")
</pallas_src>

<mosaic_0001>
module attributes {stable_mosaic.version = 11 : i64} {
  func.func @_block_kernel(%arg0: i32, %arg1: memref<1x64x8xf32, #tpu.memory_space<vmem>>, %arg2: memref<1x8xf32, #tpu.memory_space<vmem>>, %arg3: memref<1x8xf32, #tpu.memory_space<vmem>>, %arg4: memref<8x4xf32, #tpu.memory_space<vmem>>, %arg5: memref<4x8xf32, #tpu.memory_space<vmem>>, %arg6: memref<9x8x16xbf16, #tpu.memory_space<vmem>>, %arg7: memref<1x16xf32, #tpu.memory_space<vmem>>, %arg8: memref<1x64x16xbf16, #tpu.memory_space<vmem>>, %arg9: memref<89x8xbf16, #tpu.memory_space<vmem>>) attributes {dimension_semantics = [#tpu.dimension_semantics<parallel>], iteration_bounds = array<i64: 2>, scalar_prefetch = 0 : i64, scratch_operands = 1 : i64, tpu.core_type = #tpu.core_type<tc>, window_params = [{transform_indices = @transform_0, window_bounds = array<i64: 1, 64, 8>}, {pipeline_mode = #tpu.pipeline_mode<synchronous>, transform_indices = @transform_1, window_bounds = array<i64: 1, 8>}, {pipeline_mode = #tpu.pipeline_mode<synchronous>, transform_indices = @transform_2, window_bounds = array<i64: 1, 8>}, {pipeline_mode = #tpu.pipeline_mode<synchronous>, transform_indices = @transform_3, window_bounds = array<i64: 8, 4>}, {pipeline_mode = #tpu.pipeline_mode<synchronous>, transform_indices = @transform_4, window_bounds = array<i64: 4, 8>}, {pipeline_mode = #tpu.pipeline_mode<synchronous>, transform_indices = @transform_5, window_bounds = array<i64: 9, 8, 16>}, {pipeline_mode = #tpu.pipeline_mode<synchronous>, transform_indices = @transform_6, window_bounds = array<i64: 1, 16>}, {transform_indices = @transform_7, window_bounds = array<i64: 1, 64, 16>}]} {
    %c0 = arith.constant 0 : index
    %c0_0 = arith.constant 0 : index
    %c0_1 = arith.constant 0 : index
    %0 = vector.load %arg1[%c0, %c0_0, %c0_1] : memref<1x64x8xf32, #tpu.memory_space<vmem>>, vector<1x64x8xf32>
    %1 = vector.shape_cast %0 : vector<1x64x8xf32> to vector<64x8xf32>
    %cst = arith.constant dense<0.000000e+00> : vector<8xf32>
    %2 = vector.multi_reduction <add>, %1, %cst [0] : vector<64x8xf32> to vector<8xf32>
    %3 = vector.shape_cast %2 : vector<8xf32> to vector<1x8xf32>
    %c0_2 = arith.constant 0 : index
    %c0_3 = arith.constant 0 : index
    %4 = vector.load %arg4[%c0_2, %c0_3] : memref<8x4xf32, #tpu.memory_space<vmem>>, vector<8x4xf32>
    %cst_4 = arith.constant dense<0.000000e+00> : vector<1x4xf32>
    %5 = tpu.matmul %3, %4, %cst_4 {dimension_numbers = #tpu.dot_dimension_numbers<[1], [0], [0], [1], [0, 0, 1, 1], [], []>} : vector<1x8xf32>, vector<8x4xf32>, vector<1x4xf32> -> vector<1x4xf32>
    %cst_5 = arith.constant 7.812500e-03 : f32
    %6 = vector.broadcast %cst_5 : f32 to vector<1x4xf32>
    %7 = arith.mulf %5, %6 : vector<1x4xf32>
    %c0_6 = arith.constant 0 : index
    %c0_7 = arith.constant 0 : index
    %8 = vector.load %arg5[%c0_6, %c0_7] : memref<4x8xf32, #tpu.memory_space<vmem>>, vector<4x8xf32>
    %cst_8 = arith.constant dense<0.000000e+00> : vector<1x8xf32>
    %9 = tpu.matmul %7, %8, %cst_8 {dimension_numbers = #tpu.dot_dimension_numbers<[1], [0], [0], [1], [0, 0, 1, 1], [], []>} : vector<1x4xf32>, vector<4x8xf32>, vector<1x8xf32> -> vector<1x8xf32>
    %10 = vector.broadcast %9 : vector<1x8xf32> to vector<64x8xf32>
    %11 = arith.subf %1, %10 : vector<64x8xf32>
    %12 = arith.mulf %11, %11 : vector<64x8xf32>
    %cst_9 = arith.constant dense<0.000000e+00> : vector<8xf32>
    %13 = vector.multi_reduction <add>, %12, %cst_9 [0] : vector<64x8xf32> to vector<8xf32>
    %14 = vector.shape_cast %13 : vector<8xf32> to vector<1x8xf32>
    %c0_10 = arith.constant 0 : index
    %c0_11 = arith.constant 0 : index
    %15 = vector.load %arg4[%c0_10, %c0_11] : memref<8x4xf32, #tpu.memory_space<vmem>>, vector<8x4xf32>
    %cst_12 = arith.constant dense<0.000000e+00> : vector<1x4xf32>
    %16 = tpu.matmul %14, %15, %cst_12 {dimension_numbers = #tpu.dot_dimension_numbers<[1], [0], [0], [1], [0, 0, 1, 1], [], []>} : vector<1x8xf32>, vector<8x4xf32>, vector<1x4xf32> -> vector<1x4xf32>
    %cst_13 = arith.constant 7.812500e-03 : f32
    %17 = vector.broadcast %cst_13 : f32 to vector<1x4xf32>
    %18 = arith.mulf %16, %17 : vector<1x4xf32>
    %c0_14 = arith.constant 0 : index
    %c0_15 = arith.constant 0 : index
    %19 = vector.load %arg5[%c0_14, %c0_15] : memref<4x8xf32, #tpu.memory_space<vmem>>, vector<4x8xf32>
    %cst_16 = arith.constant dense<0.000000e+00> : vector<1x8xf32>
    %20 = tpu.matmul %18, %19, %cst_16 {dimension_numbers = #tpu.dot_dimension_numbers<[1], [0], [0], [1], [0, 0, 1, 1], [], []>} : vector<1x4xf32>, vector<4x8xf32>, vector<1x8xf32> -> vector<1x8xf32>
    %cst_17 = arith.constant 9.99999974E-6 : f32
    %21 = vector.broadcast %cst_17 : f32 to vector<1x8xf32>
    %22 = arith.addf %20, %21 : vector<1x8xf32>
    %23 = math.rsqrt %22 : vector<1x8xf32>
    %24 = vector.broadcast %23 : vector<1x8xf32> to vector<64x8xf32>
    %25 = arith.mulf %11, %24 : vector<64x8xf32>
    %c0_18 = arith.constant 0 : index
    %c0_19 = arith.constant 0 : index
    %26 = vector.load %arg2[%c0_18, %c0_19] : memref<1x8xf32, #tpu.memory_space<vmem>>, vector<1x8xf32>
    %27 = vector.broadcast %26 : vector<1x8xf32> to vector<64x8xf32>
    %28 = arith.mulf %25, %27 : vector<64x8xf32>
    %c0_20 = arith.constant 0 : index
    %c0_21 = arith.constant 0 : index
    %29 = vector.load %arg3[%c0_20, %c0_21] : memref<1x8xf32, #tpu.memory_space<vmem>>, vector<1x8xf32>
    %30 = vector.broadcast %29 : vector<1x8xf32> to vector<64x8xf32>
    %31 = arith.addf %28, %30 : vector<64x8xf32>
    %cst_22 = arith.constant 2.000000e+01 : f32
    %32 = vector.broadcast %cst_22 : f32 to vector<64x8xf32>
    %33 = arith.minimumf %31, %32 : vector<64x8xf32>
    %34 = math.exp %33 : vector<64x8xf32>
    %cst_23 = arith.constant 2.000000e+00 : f32
    %35 = vector.broadcast %cst_23 : f32 to vector<64x8xf32>
    %36 = arith.addf %34, %35 : vector<64x8xf32>
    %37 = arith.mulf %34, %36 : vector<64x8xf32>
    %38 = arith.mulf %31, %37 : vector<64x8xf32>
    %cst_24 = arith.constant 2.000000e+00 : f32
    %39 = vector.broadcast %cst_24 : f32 to vector<64x8xf32>
    %40 = arith.addf %37, %39 : vector<64x8xf32>
    %41 = tpu.reciprocal %40 {approx = true} : vector<64x8xf32> -> vector<64x8xf32>
    %42 = arith.mulf %38, %41 : vector<64x8xf32>
    %cst_25 = arith.constant 0.000000e+00 : bf16
    %43 = vector.broadcast %cst_25 : bf16 to vector<16x8xbf16>
    %c0_26 = arith.constant 0 : index
    %c0_27 = arith.constant 0 : index
    %44 = vector.load %arg9[%c0_26, %c0_27] : memref<89x8xbf16, #tpu.memory_space<vmem>>, vector<16x8xbf16>
    tpu.vector_store %arg9[%c0_26, %c0_27], %43 {strides = array<i32>} : memref<89x8xbf16, #tpu.memory_space<vmem>>, vector<16x8xbf16>,
    %cst_28 = arith.constant 0.000000e+00 : bf16
    %45 = vector.broadcast %cst_28 : bf16 to vector<9x8xbf16>
    %c80 = arith.constant 80 : index
    %c0_29 = arith.constant 0 : index
    %46 = vector.load %arg9[%c80, %c0_29] : memref<89x8xbf16, #tpu.memory_space<vmem>>, vector<9x8xbf16>
    tpu.vector_store %arg9[%c80, %c0_29], %45 {strides = array<i32>} : memref<89x8xbf16, #tpu.memory_space<vmem>>, vector<9x8xbf16>,
    %47 = arith.truncf %42 : vector<64x8xf32> to vector<64x8xbf16>
    %c16 = arith.constant 16 : index
    %c0_30 = arith.constant 0 : index
    %48 = vector.load %arg9[%c16, %c0_30] : memref<89x8xbf16, #tpu.memory_space<vmem>>, vector<64x8xbf16>
    tpu.vector_store %arg9[%c16, %c0_30], %47 {strides = array<i32>} : memref<89x8xbf16, #tpu.memory_space<vmem>>, vector<64x8xbf16>,
    %49 = tpu.iota {dimensions = array<i32: 0>} : vector<64x1xi32>
    %c8_i32 = arith.constant 8 : i32
    %c0_i32 = arith.constant 0 : i32
    %50 = arith.cmpi eq, %c8_i32, %c0_i32 : i32
    %c1_i32 = arith.constant 1 : i32
    %51 = arith.select %50, %c1_i32, %c8_i32 : i32
    %52 = vector.broadcast %51 : i32 to vector<64x1xi32>
    %53 = arith.remsi %49, %52 : vector<64x1xi32>
    %c0_i32_31 = arith.constant 0 : i32
    %54 = vector.broadcast %c0_i32_31 : i32 to vector<64x1xi32>
    %55 = arith.cmpi ne, %53, %54 : vector<64x1xi32>
    %c0_i32_32 = arith.constant 0 : i32
    %56 = vector.broadcast %c0_i32_32 : i32 to vector<64x1xi32>
    %57 = arith.cmpi slt, %53, %56 : vector<64x1xi32>
    %c0_i32_33 = arith.constant 0 : i32
    %58 = arith.cmpi slt, %51, %c0_i32_33 : i32
    %59 = vector.broadcast %58 : i1 to vector<64x1xi1>
    %60 = vector.broadcast %59 : vector<64x1xi1> to vector<64x1xi1>
    %61 = arith.xori %57, %60 : vector<64x1xi1>
    %62 = arith.andi %61, %55 : vector<64x1xi1>
    %63 = vector.broadcast %51 : i32 to vector<64x1xi32>
    %64 = arith.addi %53, %63 : vector<64x1xi32>
    %65 = arith.select %62, %64, %53 : vector<64x1xi1>, vector<64x1xi32>
    %c0_i32_34 = arith.constant 0 : i32
    %66 = vector.broadcast %c0_i32_34 : i32 to vector<64x1xi32>
    %67 = arith.cmpi ne, %65, %66 : vector<64x1xi32>
    %68 = arith.extui %67 : vector<64x1xi1> to vector<64x1xi32>
    %69 = arith.sitofp %68 : vector<64x1xi32> to vector<64x1xf32>
    %70 = arith.truncf %69 : vector<64x1xf32> to vector<64x1xbf16>
    %c7_i32 = arith.constant 7 : i32
    %71 = vector.broadcast %c7_i32 : i32 to vector<64x1xi32>
    %72 = arith.cmpi ne, %65, %71 : vector<64x1xi32>
    %73 = arith.extui %72 : vector<64x1xi1> to vector<64x1xi32>
    %74 = arith.sitofp %73 : vector<64x1xi32> to vector<64x1xf32>
    %75 = arith.truncf %74 : vector<64x1xf32> to vector<64x1xbf16>
    %cst_35 = arith.constant 0.000000e+00 : f32
    %76 = vector.broadcast %cst_35 : f32 to vector<64x16xf32>
    %c7 = arith.constant 7 : index
    %c0_36 = arith.constant 0 : index
    %77 = vector.load %arg9[%c7, %c0_36] : memref<89x8xbf16, #tpu.memory_space<vmem>>, vector<64x8xbf16>
    %78 = vector.broadcast %70 : vector<64x1xbf16> to vector<64x8xbf16>
    %79 = arith.mulf %77, %78 : vector<64x8xbf16>
    %c0_37 = arith.constant 0 : index
    %c0_38 = arith.constant 0 : index
    %c0_39 = arith.constant 0 : index
    %80 = vector.load %arg6[%c0_37, %c0_38, %c0_39] : memref<9x8x16xbf16, #tpu.memory_space<vmem>>, vector<1x8x16xbf16>
    %81 = vector.shape_cast %80 : vector<1x8x16xbf16> to vector<8x16xbf16>
    %cst_40 = arith.constant dense<0.000000e+00> : vector<64x16xf32>
    %82 = tpu.matmul %79, %81, %cst_40 {dimension_numbers = #tpu.dot_dimension_numbers<[1], [0], [0], [1], [0, 0, 1, 1], [], []>} : vector<64x8xbf16>, vector<8x16xbf16>, vector<64x16xf32> -> vector<64x16xf32>
    %83 = arith.addf %76, %82 : vector<64x16xf32>
    %c8 = arith.constant 8 : index
    %c0_41 = arith.constant 0 : index
    %84 = vector.load %arg9[%c8, %c0_41] : memref<89x8xbf16, #tpu.memory_space<vmem>>, vector<64x8xbf16>
    %c1 = arith.constant 1 : index
    %c0_42 = arith.constant 0 : index
    %c0_43 = arith.constant 0 : index
    %85 = vector.load %arg6[%c1, %c0_42, %c0_43] : memref<9x8x16xbf16, #tpu.memory_space<vmem>>, vector<1x8x16xbf16>
    %86 = vector.shape_cast %85 : vector<1x8x16xbf16> to vector<8x16xbf16>
    %cst_44 = arith.constant dense<0.000000e+00> : vector<64x16xf32>
    %87 = tpu.matmul %84, %86, %cst_44 {dimension_numbers = #tpu.dot_dimension_numbers<[1], [0], [0], [1], [0, 0, 1, 1], [], []>} : vector<64x8xbf16>, vector<8x16xbf16>, vector<64x16xf32> -> vector<64x16xf32>
    %88 = arith.addf %83, %87 : vector<64x16xf32>
    %c9 = arith.constant 9 : index
    %c0_45 = arith.constant 0 : index
    %89 = vector.load %arg9[%c9, %c0_45] : memref<89x8xbf16, #tpu.memory_space<vmem>>, vector<64x8xbf16>
    %90 = vector.broadcast %75 : vector<64x1xbf16> to vector<64x8xbf16>
    %91 = arith.mulf %89, %90 : vector<64x8xbf16>
    %c2 = arith.constant 2 : index
    %c0_46 = arith.constant 0 : index
    %c0_47 = arith.constant 0 : index
    %92 = vector.load %arg6[%c2, %c0_46, %c0_47] : memref<9x8x16xbf16, #tpu.memory_space<vmem>>, vector<1x8x16xbf16>
    %93 = vector.shape_cast %92 : vector<1x8x16xbf16> to vector<8x16xbf16>
    %cst_48 = arith.constant dense<0.000000e+00> : vector<64x16xf32>
    %94 = tpu.matmul %91, %93, %cst_48 {dimension_numbers = #tpu.dot_dimension_numbers<[1], [0], [0], [1], [0, 0, 1, 1], [], []>} : vector<64x8xbf16>, vector<8x16xbf16>, vector<64x16xf32> -> vector<64x16xf32>
    %95 = arith.addf %88, %94 : vector<64x16xf32>
    %c15 = arith.constant 15 : index
    %c0_49 = arith.constant 0 : index
    %96 = vector.load %arg9[%c15, %c0_49] : memref<89x8xbf16, #tpu.memory_space<vmem>>, vector<64x8xbf16>
    %97 = vector.broadcast %70 : vector<64x1xbf16> to vector<64x8xbf16>
    %98 = arith.mulf %96, %97 : vector<64x8xbf16>
    %c3 = arith.constant 3 : index
    %c0_50 = arith.constant 0 : index
    %c0_51 = arith.constant 0 : index
    %99 = vector.load %arg6[%c3, %c0_50, %c0_51] : memref<9x8x16xbf16, #tpu.memory_space<vmem>>, vector<1x8x16xbf16>
    %100 = vector.shape_cast %99 : vector<1x8x16xbf16> to vector<8x16xbf16>
    %cst_52 = arith.constant dense<0.000000e+00> : vector<64x16xf32>
    %101 = tpu.matmul %98, %100, %cst_52 {dimension_numbers = #tpu.dot_dimension_numbers<[1], [0], [0], [1], [0, 0, 1, 1], [], []>} : vector<64x8xbf16>, vector<8x16xbf16>, vector<64x16xf32> -> vector<64x16xf32>
    %102 = arith.addf %95, %101 : vector<64x16xf32>
    %c16_53 = arith.constant 16 : index
    %c0_54 = arith.constant 0 : index
    %103 = vector.load %arg9[%c16_53, %c0_54] : memref<89x8xbf16, #tpu.memory_space<vmem>>, vector<64x8xbf16>
    %c4 = arith.constant 4 : index
    %c0_55 = arith.constant 0 : index
    %c0_56 = arith.constant 0 : index
    %104 = vector.load %arg6[%c4, %c0_55, %c0_56] : memref<9x8x16xbf16, #tpu.memory_space<vmem>>, vector<1x8x16xbf16>
    %105 = vector.shape_cast %104 : vector<1x8x16xbf16> to vector<8x16xbf16>
    %cst_57 = arith.constant dense<0.000000e+00> : vector<64x16xf32>
    %106 = tpu.matmul %103, %105, %cst_57 {dimension_numbers = #tpu.dot_dimension_numbers<[1], [0], [0], [1], [0, 0, 1, 1], [], []>} : vector<64x8xbf16>, vector<8x16xbf16>, vector<64x16xf32> -> vector<64x16xf32>
    %107 = arith.addf %102, %106 : vector<64x16xf32>
    %c17 = arith.constant 17 : index
    %c0_58 = arith.constant 0 : index
    %108 = vector.load %arg9[%c17, %c0_58] : memref<89x8xbf16, #tpu.memory_space<vmem>>, vector<64x8xbf16>
    %109 = vector.broadcast %75 : vector<64x1xbf16> to vector<64x8xbf16>
    %110 = arith.mulf %108, %109 : vector<64x8xbf16>
    %c5 = arith.constant 5 : index
    %c0_59 = arith.constant 0 : index
    %c0_60 = arith.constant 0 : index
    %111 = vector.load %arg6[%c5, %c0_59, %c0_60] : memref<9x8x16xbf16, #tpu.memory_space<vmem>>, vector<1x8x16xbf16>
    %112 = vector.shape_cast %111 : vector<1x8x16xbf16> to vector<8x16xbf16>
    %cst_61 = arith.constant dense<0.000000e+00> : vector<64x16xf32>
    %113 = tpu.matmul %110, %112, %cst_61 {dimension_numbers = #tpu.dot_dimension_numbers<[1], [0], [0], [1], [0, 0, 1, 1], [], []>} : vector<64x8xbf16>, vector<8x16xbf16>, vector<64x16xf32> -> vector<64x16xf32>
    %114 = arith.addf %107, %113 : vector<64x16xf32>
    %c23 = arith.constant 23 : index
    %c0_62 = arith.constant 0 : index
    %115 = vector.load %arg9[%c23, %c0_62] : memref<89x8xbf16, #tpu.memory_space<vmem>>, vector<64x8xbf16>
    %116 = vector.broadcast %70 : vector<64x1xbf16> to vector<64x8xbf16>
    %117 = arith.mulf %115, %116 : vector<64x8xbf16>
    %c6 = arith.constant 6 : index
    %c0_63 = arith.constant 0 : index
    %c0_64 = arith.constant 0 : index
    %118 = vector.load %arg6[%c6, %c0_63, %c0_64] : memref<9x8x16xbf16, #tpu.memory_space<vmem>>, vector<1x8x16xbf16>
    %119 = vector.shape_cast %118 : vector<1x8x16xbf16> to vector<8x16xbf16>
    %cst_65 = arith.constant dense<0.000000e+00> : vector<64x16xf32>
    %120 = tpu.matmul %117, %119, %cst_65 {dimension_numbers = #tpu.dot_dimension_numbers<[1], [0], [0], [1], [0, 0, 1, 1], [], []>} : vector<64x8xbf16>, vector<8x16xbf16>, vector<64x16xf32> -> vector<64x16xf32>
    %121 = arith.addf %114, %120 : vector<64x16xf32>
    %c24 = arith.constant 24 : index
    %c0_66 = arith.constant 0 : index
    %122 = vector.load %arg9[%c24, %c0_66] : memref<89x8xbf16, #tpu.memory_space<vmem>>, vector<64x8xbf16>
    %c7_67 = arith.constant 7 : index
    %c0_68 = arith.constant 0 : index
    %c0_69 = arith.constant 0 : index
    %123 = vector.load %arg6[%c7_67, %c0_68, %c0_69] : memref<9x8x16xbf16, #tpu.memory_space<vmem>>, vector<1x8x16xbf16>
    %124 = vector.shape_cast %123 : vector<1x8x16xbf16> to vector<8x16xbf16>
    %cst_70 = arith.constant dense<0.000000e+00> : vector<64x16xf32>
    %125 = tpu.matmul %122, %124, %cst_70 {dimension_numbers = #tpu.dot_dimension_numbers<[1], [0], [0], [1], [0, 0, 1, 1], [], []>} : vector<64x8xbf16>, vector<8x16xbf16>, vector<64x16xf32> -> vector<64x16xf32>
    %126 = arith.addf %121, %125 : vector<64x16xf32>
    %c25 = arith.constant 25 : index
    %c0_71 = arith.constant 0 : index
    %127 = vector.load %arg9[%c25, %c0_71] : memref<89x8xbf16, #tpu.memory_space<vmem>>, vector<64x8xbf16>
    %128 = vector.broadcast %75 : vector<64x1xbf16> to vector<64x8xbf16>
    %129 = arith.mulf %127, %128 : vector<64x8xbf16>
    %c8_72 = arith.constant 8 : index
    %c0_73 = arith.constant 0 : index
    %c0_74 = arith.constant 0 : index
    %130 = vector.load %arg6[%c8_72, %c0_73, %c0_74] : memref<9x8x16xbf16, #tpu.memory_space<vmem>>, vector<1x8x16xbf16>
    %131 = vector.shape_cast %130 : vector<1x8x16xbf16> to vector<8x16xbf16>
    %cst_75 = arith.constant dense<0.000000e+00> : vector<64x16xf32>
    %132 = tpu.matmul %129, %131, %cst_75 {dimension_numbers = #tpu.dot_dimension_numbers<[1], [0], [0], [1], [0, 0, 1, 1], [], []>} : vector<64x8xbf16>, vector<8x16xbf16>, vector<64x16xf32> -> vector<64x16xf32>
    %133 = arith.addf %126, %132 : vector<64x16xf32>
    %c0_76 = arith.constant 0 : index
    %c0_77 = arith.constant 0 : index
    %134 = vector.load %arg7[%c0_76, %c0_77] : memref<1x16xf32, #tpu.memory_space<vmem>>, vector<1x16xf32>
    %135 = vector.broadcast %134 : vector<1x16xf32> to vector<64x16xf32>
    %136 = arith.addf %133, %135 : vector<64x16xf32>
    %137 = arith.truncf %136 : vector<64x16xf32> to vector<64x16xbf16>
    %c0_78 = arith.constant 0 : index
    %c0_79 = arith.constant 0 : index
    %c0_80 = arith.constant 0 : index
    %138 = vector.load %arg8[%c0_78, %c0_79, %c0_80] : memref<1x64x16xbf16, #tpu.memory_space<vmem>>, vector<1x64x16xbf16>
    %139 = vector.shape_cast %138 : vector<1x64x16xbf16> to vector<64x16xbf16>
    %140 = vector.shape_cast %137 : vector<64x16xbf16> to vector<1x64x16xbf16>
    tpu.vector_store %arg8[%c0_78, %c0_79, %c0_80], %140 {strides = array<i32>} : memref<1x64x16xbf16, #tpu.memory_space<vmem>>, vector<1x64x16xbf16>,
    return
  }
  func.func @transform_0(%arg0: i32) -> (i32, i32, i32) {
    %c0_i32 = arith.constant 0 : i32
    %c0_i32_0 = arith.constant 0 : i32
    %c0_i32_1 = arith.constant 0 : i32
    return %arg0, %c0_i32, %c0_i32_0 : i32, i32, i32
  }
  func.func @transform_1(%arg0: i32) -> (i32, i32) {
    %c0_i32 = arith.constant 0 : i32
    %c0_i32_0 = arith.constant 0 : i32
    %c0_i32_1 = arith.constant 0 : i32
    return %c0_i32, %c0_i32_0 : i32, i32
  }
  func.func @transform_2(%arg0: i32) -> (i32, i32) {
    %c0_i32 = arith.constant 0 : i32
    %c0_i32_0 = arith.constant 0 : i32
    %c0_i32_1 = arith.constant 0 : i32
    return %c0_i32, %c0_i32_0 : i32, i32
  }
  func.func @transform_3(%arg0: i32) -> (i32, i32) {
    %c0_i32 = arith.constant 0 : i32
    %c0_i32_0 = arith.constant 0 : i32
    %c0_i32_1 = arith.constant 0 : i32
    return %c0_i32, %c0_i32_0 : i32, i32
  }
  func.func @transform_4(%arg0: i32) -> (i32, i32) {
    %c0_i32 = arith.constant 0 : i32
    %c0_i32_0 = arith.constant 0 : i32
    %c0_i32_1 = arith.constant 0 : i32
    return %c0_i32, %c0_i32_0 : i32, i32
  }
  func.func @transform_5(%arg0: i32) -> (i32, i32, i32) {
    %c0_i32 = arith.constant 0 : i32
    %c0_i32_0 = arith.constant 0 : i32
    %c0_i32_1 = arith.constant 0 : i32
    %c0_i32_2 = arith.constant 0 : i32
    return %c0_i32, %c0_i32_0, %c0_i32_1 : i32, i32, i32
  }
  func.func @transform_6(%arg0: i32) -> (i32, i32) {
    %c0_i32 = arith.constant 0 : i32
    %c0_i32_0 = arith.constant 0 : i32
    %c0_i32_1 = arith.constant 0 : i32
    return %c0_i32, %c0_i32_0 : i32, i32
  }
  func.func @transform_7(%arg0: i32) -> (i32, i32, i32) {
    %c0_i32 = arith.constant 0 : i32
    %c0_i32_0 = arith.constant 0 : i32
    %c0_i32_1 = arith.constant 0 : i32
    return %arg0, %c0_i32, %c0_i32_0 : i32, i32, i32
  }
}

module attributes {stable_mosaic.version = 11 : i64} {
  func.func @_selfatt_kernel(%arg0: i32, %arg1: memref<1x64x16xbf16, #tpu.memory_space<vmem>>, %arg2: memref<1x16xf32, #tpu.memory_space<vmem>>, %arg3: memref<1x16xf32, #tpu.memory_space<vmem>>, %arg4: memref<16x4xf32, #tpu.memory_space<vmem>>, %arg5: memref<4x16xf32, #tpu.memory_space<vmem>>, %arg6: memref<16x16xbf16, #tpu.memory_space<vmem>>, %arg7: memref<16x16xbf16, #tpu.memory_space<vmem>>, %arg8: memref<16x16xbf16, #tpu.memory_space<vmem>>, %arg9: memref<16x16xf32, #tpu.memory_space<vmem>>, %arg10: memref<16x16xbf16, #tpu.memory_space<vmem>>, %arg11: memref<1x16xf32, #tpu.memory_space<vmem>>, %arg12: memref<1x64x16xf32, #tpu.memory_space<vmem>>) attributes {dimension_semantics = [#tpu.dimension_semantics<parallel>], iteration_bounds = array<i64: 2>, scalar_prefetch = 0 : i64, scratch_operands = 0 : i64, tpu.core_type = #tpu.core_type<tc>, window_params = [{transform_indices = @transform_0, window_bounds = array<i64: 1, 64, 16>}, {pipeline_mode = #tpu.pipeline_mode<synchronous>, transform_indices = @transform_1, window_bounds = array<i64: 1, 16>}, {pipeline_mode = #tpu.pipeline_mode<synchronous>, transform_indices = @transform_2, window_bounds = array<i64: 1, 16>}, {pipeline_mode = #tpu.pipeline_mode<synchronous>, transform_indices = @transform_3, window_bounds = array<i64: 16, 4>}, {pipeline_mode = #tpu.pipeline_mode<synchronous>, transform_indices = @transform_4, window_bounds = array<i64: 4, 16>}, {pipeline_mode = #tpu.pipeline_mode<synchronous>, transform_indices = @transform_5, window_bounds = array<i64: 16, 16>}, {pipeline_mode = #tpu.pipeline_mode<synchronous>, transform_indices = @transform_6, window_bounds = array<i64: 16, 16>}, {pipeline_mode = #tpu.pipeline_mode<synchronous>, transform_indices = @transform_7, window_bounds = array<i64: 16, 16>}, {pipeline_mode = #tpu.pipeline_mode<synchronous>, transform_indices = @transform_8, window_bounds = array<i64: 16, 16>}, {pipeline_mode = #tpu.pipeline_mode<synchronous>, transform_indices = @transform_9, window_bounds = array<i64: 16, 16>}, {pipeline_mode = #tpu.pipeline_mode<synchronous>, transform_indices = @transform_10, window_bounds = array<i64: 1, 16>}, {transform_indices = @transform_11, window_bounds = array<i64: 1, 64, 16>}]} {
    %c0 = arith.constant 0 : index
    %c0_0 = arith.constant 0 : index
    %c0_1 = arith.constant 0 : index
    %0 = vector.load %arg1[%c0, %c0_0, %c0_1] : memref<1x64x16xbf16, #tpu.memory_space<vmem>>, vector<1x64x16xbf16>
    %1 = vector.shape_cast %0 : vector<1x64x16xbf16> to vector<64x16xbf16>
    %2 = arith.extf %1 : vector<64x16xbf16> to vector<64x16xf32>
    %cst = arith.constant dense<0.000000e+00> : vector<16xf32>
    %3 = vector.multi_reduction <add>, %2, %cst [0] : vector<64x16xf32> to vector<16xf32>
    %4 = vector.shape_cast %3 : vector<16xf32> to vector<1x16xf32>
    %c0_2 = arith.constant 0 : index
    %c0_3 = arith.constant 0 : index
    %5 = vector.load %arg4[%c0_2, %c0_3] : memref<16x4xf32, #tpu.memory_space<vmem>>, vector<16x4xf32>
    %cst_4 = arith.constant dense<0.000000e+00> : vector<1x4xf32>
    %6 = tpu.matmul %4, %5, %cst_4 {dimension_numbers = #tpu.dot_dimension_numbers<[1], [0], [0], [1], [0, 0, 1, 1], [], []>} : vector<1x16xf32>, vector<16x4xf32>, vector<1x4xf32> -> vector<1x4xf32>
    %cst_5 = arith.constant 3.906250e-03 : f32
    %7 = vector.broadcast %cst_5 : f32 to vector<1x4xf32>
    %8 = arith.mulf %6, %7 : vector<1x4xf32>
    %c0_6 = arith.constant 0 : index
    %c0_7 = arith.constant 0 : index
    %9 = vector.load %arg5[%c0_6, %c0_7] : memref<4x16xf32, #tpu.memory_space<vmem>>, vector<4x16xf32>
    %cst_8 = arith.constant dense<0.000000e+00> : vector<1x16xf32>
    %10 = tpu.matmul %8, %9, %cst_8 {dimension_numbers = #tpu.dot_dimension_numbers<[1], [0], [0], [1], [0, 0, 1, 1], [], []>} : vector<1x4xf32>, vector<4x16xf32>, vector<1x16xf32> -> vector<1x16xf32>
    %11 = vector.broadcast %10 : vector<1x16xf32> to vector<64x16xf32>
    %12 = arith.subf %2, %11 : vector<64x16xf32>
    %13 = arith.mulf %12, %12 : vector<64x16xf32>
    %cst_9 = arith.constant dense<0.000000e+00> : vector<16xf32>
    %14 = vector.multi_reduction <add>, %13, %cst_9 [0] : vector<64x16xf32> to vector<16xf32>
    %15 = vector.shape_cast %14 : vector<16xf32> to vector<1x16xf32>
    %c0_10 = arith.constant 0 : index
    %c0_11 = arith.constant 0 : index
    %16 = vector.load %arg4[%c0_10, %c0_11] : memref<16x4xf32, #tpu.memory_space<vmem>>, vector<16x4xf32>
    %cst_12 = arith.constant dense<0.000000e+00> : vector<1x4xf32>
    %17 = tpu.matmul %15, %16, %cst_12 {dimension_numbers = #tpu.dot_dimension_numbers<[1], [0], [0], [1], [0, 0, 1, 1], [], []>} : vector<1x16xf32>, vector<16x4xf32>, vector<1x4xf32> -> vector<1x4xf32>
    %cst_13 = arith.constant 3.906250e-03 : f32
    %18 = vector.broadcast %cst_13 : f32 to vector<1x4xf32>
    %19 = arith.mulf %17, %18 : vector<1x4xf32>
    %c0_14 = arith.constant 0 : index
    %c0_15 = arith.constant 0 : index
    %20 = vector.load %arg5[%c0_14, %c0_15] : memref<4x16xf32, #tpu.memory_space<vmem>>, vector<4x16xf32>
    %cst_16 = arith.constant dense<0.000000e+00> : vector<1x16xf32>
    %21 = tpu.matmul %19, %20, %cst_16 {dimension_numbers = #tpu.dot_dimension_numbers<[1], [0], [0], [1], [0, 0, 1, 1], [], []>} : vector<1x4xf32>, vector<4x16xf32>, vector<1x16xf32> -> vector<1x16xf32>
    %cst_17 = arith.constant 9.99999974E-6 : f32
    %22 = vector.broadcast %cst_17 : f32 to vector<1x16xf32>
    %23 = arith.addf %21, %22 : vector<1x16xf32>
    %24 = math.rsqrt %23 : vector<1x16xf32>
    %25 = vector.broadcast %24 : vector<1x16xf32> to vector<64x16xf32>
    %26 = arith.mulf %12, %25 : vector<64x16xf32>
    %c0_18 = arith.constant 0 : index
    %c0_19 = arith.constant 0 : index
    %27 = vector.load %arg2[%c0_18, %c0_19] : memref<1x16xf32, #tpu.memory_space<vmem>>, vector<1x16xf32>
    %28 = vector.broadcast %27 : vector<1x16xf32> to vector<64x16xf32>
    %29 = arith.mulf %26, %28 : vector<64x16xf32>
    %c0_20 = arith.constant 0 : index
    %c0_21 = arith.constant 0 : index
    %30 = vector.load %arg3[%c0_20, %c0_21] : memref<1x16xf32, #tpu.memory_space<vmem>>, vector<1x16xf32>
    %31 = vector.broadcast %30 : vector<1x16xf32> to vector<64x16xf32>
    %32 = arith.addf %29, %31 : vector<64x16xf32>
    %33 = arith.truncf %32 : vector<64x16xf32> to vector<64x16xbf16>
    %c0_22 = arith.constant 0 : index
    %c0_23 = arith.constant 0 : index
    %34 = vector.load %arg6[%c0_22, %c0_23] : memref<16x16xbf16, #tpu.memory_space<vmem>>, vector<16x16xbf16>
    %cst_24 = arith.constant dense<0.000000e+00> : vector<64x16xf32>
    %35 = tpu.matmul %33, %34, %cst_24 {dimension_numbers = #tpu.dot_dimension_numbers<[1], [0], [0], [1], [0, 0, 1, 1], [], []>} : vector<64x16xbf16>, vector<16x16xbf16>, vector<64x16xf32> -> vector<64x16xf32>
    %c0_25 = arith.constant 0 : index
    %c0_26 = arith.constant 0 : index
    %36 = vector.load %arg7[%c0_25, %c0_26] : memref<16x16xbf16, #tpu.memory_space<vmem>>, vector<16x16xbf16>
    %cst_27 = arith.constant dense<0.000000e+00> : vector<64x16xf32>
    %37 = tpu.matmul %33, %36, %cst_27 {dimension_numbers = #tpu.dot_dimension_numbers<[1], [0], [0], [1], [0, 0, 1, 1], [], []>} : vector<64x16xbf16>, vector<16x16xbf16>, vector<64x16xf32> -> vector<64x16xf32>
    %c0_28 = arith.constant 0 : index
    %c0_29 = arith.constant 0 : index
    %38 = vector.load %arg8[%c0_28, %c0_29] : memref<16x16xbf16, #tpu.memory_space<vmem>>, vector<16x16xbf16>
    %cst_30 = arith.constant dense<0.000000e+00> : vector<64x16xf32>
    %39 = tpu.matmul %33, %38, %cst_30 {dimension_numbers = #tpu.dot_dimension_numbers<[1], [0], [0], [1], [0, 0, 1, 1], [], []>} : vector<64x16xbf16>, vector<16x16xbf16>, vector<64x16xf32> -> vector<64x16xf32>
    %cst_31 = arith.constant dense<0xFF800000> : vector<16xf32>
    %40 = vector.multi_reduction <maximumf>, %37, %cst_31 [0] : vector<64x16xf32> to vector<16xf32>
    %41 = vector.shape_cast %40 : vector<16xf32> to vector<1x16xf32>
    %42 = vector.broadcast %41 : vector<1x16xf32> to vector<64x16xf32>
    %43 = arith.subf %37, %42 : vector<64x16xf32>
    %44 = math.exp %43 : vector<64x16xf32>
    %cst_32 = arith.constant dense<0.000000e+00> : vector<16xf32>
    %45 = vector.multi_reduction <add>, %44, %cst_32 [0] : vector<64x16xf32> to vector<16xf32>
    %46 = vector.shape_cast %45 : vector<16xf32> to vector<1x16xf32>
    %47 = tpu.reciprocal %46 {approx = true} : vector<1x16xf32> -> vector<1x16xf32>
    %48 = vector.broadcast %47 : vector<1x16xf32> to vector<64x16xf32>
    %49 = arith.mulf %44, %48 : vector<64x16xf32>
    %50 = arith.truncf %49 : vector<64x16xf32> to vector<64x16xbf16>
    %51 = arith.truncf %39 : vector<64x16xf32> to vector<64x16xbf16>
    %cst_33 = arith.constant dense<0.000000e+00> : vector<16x16xf32>
    %52 = tpu.matmul %50, %51, %cst_33 {dimension_numbers = #tpu.dot_dimension_numbers<[0], [0], [1], [1], [0, 1, 1, 1], [], []>} : vector<64x16xbf16>, vector<64x16xbf16>, vector<16x16xf32> -> vector<16x16xf32>
    %c0_34 = arith.constant 0 : index
    %c0_35 = arith.constant 0 : index
    %53 = vector.load %arg9[%c0_34, %c0_35] : memref<16x16xf32, #tpu.memory_space<vmem>>, vector<16x16xf32>
    %54 = arith.mulf %52, %53 : vector<16x16xf32>
    %55 = arith.truncf %54 : vector<16x16xf32> to vector<16x16xbf16>
    %56 = arith.truncf %35 : vector<64x16xf32> to vector<64x16xbf16>
    %cst_36 = arith.constant dense<0.000000e+00> : vector<64x16xf32>
    %57 = tpu.matmul %56, %55, %cst_36 {dimension_numbers = #tpu.dot_dimension_numbers<[1], [0], [0], [1], [0, 0, 1, 1], [], []>} : vector<64x16xbf16>, vector<16x16xbf16>, vector<64x16xf32> -> vector<64x16xf32>
    %58 = arith.truncf %57 : vector<64x16xf32> to vector<64x16xbf16>
    %c0_37 = arith.constant 0 : index
    %c0_38 = arith.constant 0 : index
    %59 = vector.load %arg10[%c0_37, %c0_38] : memref<16x16xbf16, #tpu.memory_space<vmem>>, vector<16x16xbf16>
    %cst_39 = arith.constant dense<0.000000e+00> : vector<64x16xf32>
    %60 = tpu.matmul %58, %59, %cst_39 {dimension_numbers = #tpu.dot_dimension_numbers<[1], [0], [0], [1], [0, 0, 1, 1], [], []>} : vector<64x16xbf16>, vector<16x16xbf16>, vector<64x16xf32> -> vector<64x16xf32>
    %c0_40 = arith.constant 0 : index
    %c0_41 = arith.constant 0 : index
    %61 = vector.load %arg11[%c0_40, %c0_41] : memref<1x16xf32, #tpu.memory_space<vmem>>, vector<1x16xf32>
    %62 = vector.broadcast %61 : vector<1x16xf32> to vector<64x16xf32>
    %63 = arith.addf %60, %62 : vector<64x16xf32>
    %c0_42 = arith.constant 0 : index
    %c0_43 = arith.constant 0 : index
    %c0_44 = arith.constant 0 : index
    %64 = vector.load %arg12[%c0_42, %c0_43, %c0_44] : memref<1x64x16xf32, #tpu.memory_space<vmem>>, vector<1x64x16xf32>
    %65 = vector.shape_cast %64 : vector<1x64x16xf32> to vector<64x16xf32>
    %66 = vector.shape_cast %63 : vector<64x16xf32> to vector<1x64x16xf32>
    tpu.vector_store %arg12[%c0_42, %c0_43, %c0_44], %66 {strides = array<i32>} : memref<1x64x16xf32, #tpu.memory_space<vmem>>, vector<1x64x16xf32>,
    return
  }
  func.func @transform_0(%arg0: i32) -> (i32, i32, i32) {
    %c0_i32 = arith.constant 0 : i32
    %c0_i32_0 = arith.constant 0 : i32
    %c0_i32_1 = arith.constant 0 : i32
    return %arg0, %c0_i32, %c0_i32_0 : i32, i32, i32
  }
  func.func @transform_1(%arg0: i32) -> (i32, i32) {
    %c0_i32 = arith.constant 0 : i32
    %c0_i32_0 = arith.constant 0 : i32
    %c0_i32_1 = arith.constant 0 : i32
    return %c0_i32, %c0_i32_0 : i32, i32
  }
  func.func @transform_2(%arg0: i32) -> (i32, i32) {
    %c0_i32 = arith.constant 0 : i32
    %c0_i32_0 = arith.constant 0 : i32
    %c0_i32_1 = arith.constant 0 : i32
    return %c0_i32, %c0_i32_0 : i32, i32
  }
  func.func @transform_3(%arg0: i32) -> (i32, i32) {
    %c0_i32 = arith.constant 0 : i32
    %c0_i32_0 = arith.constant 0 : i32
    %c0_i32_1 = arith.constant 0 : i32
    return %c0_i32, %c0_i32_0 : i32, i32
  }
  func.func @transform_4(%arg0: i32) -> (i32, i32) {
    %c0_i32 = arith.constant 0 : i32
    %c0_i32_0 = arith.constant 0 : i32
    %c0_i32_1 = arith.constant 0 : i32
    return %c0_i32, %c0_i32_0 : i32, i32
  }
  func.func @transform_5(%arg0: i32) -> (i32, i32) {
    %c0_i32 = arith.constant 0 : i32
    %c0_i32_0 = arith.constant 0 : i32
    %c0_i32_1 = arith.constant 0 : i32
    return %c0_i32, %c0_i32_0 : i32, i32
  }
  func.func @transform_6(%arg0: i32) -> (i32, i32) {
    %c0_i32 = arith.constant 0 : i32
    %c0_i32_0 = arith.constant 0 : i32
    %c0_i32_1 = arith.constant 0 : i32
    return %c0_i32, %c0_i32_0 : i32, i32
  }
  func.func @transform_7(%arg0: i32) -> (i32, i32) {
    %c0_i32 = arith.constant 0 : i32
    %c0_i32_0 = arith.constant 0 : i32
    %c0_i32_1 = arith.constant 0 : i32
    return %c0_i32, %c0_i32_0 : i32, i32
  }
  func.func @transform_8(%arg0: i32) -> (i32, i32) {
    %c0_i32 = arith.constant 0 : i32
    %c0_i32_0 = arith.constant 0 : i32
    %c0_i32_1 = arith.constant 0 : i32
    return %c0_i32, %c0_i32_0 : i32, i32
  }
  func.func @transform_9(%arg0: i32) -> (i32, i32) {
    %c0_i32 = arith.constant 0 : i32
    %c0_i32_0 = arith.constant 0 : i32
    %c0_i32_1 = arith.constant 0 : i32
    return %c0_i32, %c0_i32_0 : i32, i32
  }
  func.func @transform_10(%arg0: i32) -> (i32, i32) {
    %c0_i32 = arith.constant 0 : i32
    %c0_i32_0 = arith.constant 0 : i32
    %c0_i32_1 = arith.constant 0 : i32
    return %c0_i32, %c0_i32_0 : i32, i32
  }
  func.func @transform_11(%arg0: i32) -> (i32, i32, i32) {
    %c0_i32 = arith.constant 0 : i32
    %c0_i32_0 = arith.constant 0 : i32
    %c0_i32_1 = arith.constant 0 : i32
    return %arg0, %c0_i32, %c0_i32_0 : i32, i32, i32
  }
}

module attributes {stable_mosaic.version = 11 : i64} {
  func.func @_block_kernel(%arg0: i32, %arg1: memref<1x64x16xbf16, #tpu.memory_space<vmem>>, %arg2: memref<1x1x16xf32, #tpu.memory_space<vmem>>, %arg3: memref<1x16xf32, #tpu.memory_space<vmem>>, %arg4: memref<1x16xf32, #tpu.memory_space<vmem>>, %arg5: memref<16x4xf32, #tpu.memory_space<vmem>>, %arg6: memref<4x16xf32, #tpu.memory_space<vmem>>, %arg7: memref<9x16x16xbf16, #tpu.memory_space<vmem>>, %arg8: memref<1x16xf32, #tpu.memory_space<vmem>>, %arg9: memref<1x64x8xbf16, #tpu.memory_space<vmem>>, %arg10: memref<8x16xbf16, #tpu.memory_space<vmem>>, %arg11: memref<1x64x16xbf16, #tpu.memory_space<vmem>>, %arg12: memref<89x16xbf16, #tpu.memory_space<vmem>>) attributes {dimension_semantics = [#tpu.dimension_semantics<parallel>], iteration_bounds = array<i64: 2>, scalar_prefetch = 0 : i64, scratch_operands = 1 : i64, tpu.core_type = #tpu.core_type<tc>, window_params = [{transform_indices = @transform_0, window_bounds = array<i64: 1, 64, 16>}, {transform_indices = @transform_1, window_bounds = array<i64: 1, 1, 16>}, {pipeline_mode = #tpu.pipeline_mode<synchronous>, transform_indices = @transform_2, window_bounds = array<i64: 1, 16>}, {pipeline_mode = #tpu.pipeline_mode<synchronous>, transform_indices = @transform_3, window_bounds = array<i64: 1, 16>}, {pipeline_mode = #tpu.pipeline_mode<synchronous>, transform_indices = @transform_4, window_bounds = array<i64: 16, 4>}, {pipeline_mode = #tpu.pipeline_mode<synchronous>, transform_indices = @transform_5, window_bounds = array<i64: 4, 16>}, {pipeline_mode = #tpu.pipeline_mode<synchronous>, transform_indices = @transform_6, window_bounds = array<i64: 9, 16, 16>}, {pipeline_mode = #tpu.pipeline_mode<synchronous>, transform_indices = @transform_7, window_bounds = array<i64: 1, 16>}, {transform_indices = @transform_8, window_bounds = array<i64: 1, 64, 8>}, {pipeline_mode = #tpu.pipeline_mode<synchronous>, transform_indices = @transform_9, window_bounds = array<i64: 8, 16>}, {transform_indices = @transform_10, window_bounds = array<i64: 1, 64, 16>}]} {
    %c0 = arith.constant 0 : index
    %c0_0 = arith.constant 0 : index
    %c0_1 = arith.constant 0 : index
    %0 = vector.load %arg1[%c0, %c0_0, %c0_1] : memref<1x64x16xbf16, #tpu.memory_space<vmem>>, vector<1x64x16xbf16>
    %1 = vector.shape_cast %0 : vector<1x64x16xbf16> to vector<64x16xbf16>
    %2 = arith.extf %1 : vector<64x16xbf16> to vector<64x16xf32>
    %c0_2 = arith.constant 0 : index
    %c0_3 = arith.constant 0 : index
    %c0_4 = arith.constant 0 : index
    %3 = vector.load %arg2[%c0_2, %c0_3, %c0_4] : memref<1x1x16xf32, #tpu.memory_space<vmem>>, vector<1x1x16xf32>
    %4 = vector.shape_cast %3 : vector<1x1x16xf32> to vector<1x16xf32>
    %5 = vector.broadcast %4 : vector<1x16xf32> to vector<64x16xf32>
    %6 = arith.addf %2, %5 : vector<64x16xf32>
    %cst = arith.constant dense<0.000000e+00> : vector<16xf32>
    %7 = vector.multi_reduction <add>, %6, %cst [0] : vector<64x16xf32> to vector<16xf32>
    %8 = vector.shape_cast %7 : vector<16xf32> to vector<1x16xf32>
    %c0_5 = arith.constant 0 : index
    %c0_6 = arith.constant 0 : index
    %9 = vector.load %arg5[%c0_5, %c0_6] : memref<16x4xf32, #tpu.memory_space<vmem>>, vector<16x4xf32>
    %cst_7 = arith.constant dense<0.000000e+00> : vector<1x4xf32>
    %10 = tpu.matmul %8, %9, %cst_7 {dimension_numbers = #tpu.dot_dimension_numbers<[1], [0], [0], [1], [0, 0, 1, 1], [], []>} : vector<1x16xf32>, vector<16x4xf32>, vector<1x4xf32> -> vector<1x4xf32>
    %cst_8 = arith.constant 3.906250e-03 : f32
    %11 = vector.broadcast %cst_8 : f32 to vector<1x4xf32>
    %12 = arith.mulf %10, %11 : vector<1x4xf32>
    %c0_9 = arith.constant 0 : index
    %c0_10 = arith.constant 0 : index
    %13 = vector.load %arg6[%c0_9, %c0_10] : memref<4x16xf32, #tpu.memory_space<vmem>>, vector<4x16xf32>
    %cst_11 = arith.constant dense<0.000000e+00> : vector<1x16xf32>
    %14 = tpu.matmul %12, %13, %cst_11 {dimension_numbers = #tpu.dot_dimension_numbers<[1], [0], [0], [1], [0, 0, 1, 1], [], []>} : vector<1x4xf32>, vector<4x16xf32>, vector<1x16xf32> -> vector<1x16xf32>
    %15 = vector.broadcast %14 : vector<1x16xf32> to vector<64x16xf32>
    %16 = arith.subf %6, %15 : vector<64x16xf32>
    %17 = arith.mulf %16, %16 : vector<64x16xf32>
    %cst_12 = arith.constant dense<0.000000e+00> : vector<16xf32>
    %18 = vector.multi_reduction <add>, %17, %cst_12 [0] : vector<64x16xf32> to vector<16xf32>
    %19 = vector.shape_cast %18 : vector<16xf32> to vector<1x16xf32>
    %c0_13 = arith.constant 0 : index
    %c0_14 = arith.constant 0 : index
    %20 = vector.load %arg5[%c0_13, %c0_14] : memref<16x4xf32, #tpu.memory_space<vmem>>, vector<16x4xf32>
    %cst_15 = arith.constant dense<0.000000e+00> : vector<1x4xf32>
    %21 = tpu.matmul %19, %20, %cst_15 {dimension_numbers = #tpu.dot_dimension_numbers<[1], [0], [0], [1], [0, 0, 1, 1], [], []>} : vector<1x16xf32>, vector<16x4xf32>, vector<1x4xf32> -> vector<1x4xf32>
    %cst_16 = arith.constant 3.906250e-03 : f32
    %22 = vector.broadcast %cst_16 : f32 to vector<1x4xf32>
    %23 = arith.mulf %21, %22 : vector<1x4xf32>
    %c0_17 = arith.constant 0 : index
    %c0_18 = arith.constant 0 : index
    %24 = vector.load %arg6[%c0_17, %c0_18] : memref<4x16xf32, #tpu.memory_space<vmem>>, vector<4x16xf32>
    %cst_19 = arith.constant dense<0.000000e+00> : vector<1x16xf32>
    %25 = tpu.matmul %23, %24, %cst_19 {dimension_numbers = #tpu.dot_dimension_numbers<[1], [0], [0], [1], [0, 0, 1, 1], [], []>} : vector<1x4xf32>, vector<4x16xf32>, vector<1x16xf32> -> vector<1x16xf32>
    %cst_20 = arith.constant 9.99999974E-6 : f32
    %26 = vector.broadcast %cst_20 : f32 to vector<1x16xf32>
    %27 = arith.addf %25, %26 : vector<1x16xf32>
    %28 = math.rsqrt %27 : vector<1x16xf32>
    %29 = vector.broadcast %28 : vector<1x16xf32> to vector<64x16xf32>
    %30 = arith.mulf %16, %29 : vector<64x16xf32>
    %c0_21 = arith.constant 0 : index
    %c0_22 = arith.constant 0 : index
    %31 = vector.load %arg3[%c0_21, %c0_22] : memref<1x16xf32, #tpu.memory_space<vmem>>, vector<1x16xf32>
    %32 = vector.broadcast %31 : vector<1x16xf32> to vector<64x16xf32>
    %33 = arith.mulf %30, %32 : vector<64x16xf32>
    %c0_23 = arith.constant 0 : index
    %c0_24 = arith.constant 0 : index
    %34 = vector.load %arg4[%c0_23, %c0_24] : memref<1x16xf32, #tpu.memory_space<vmem>>, vector<1x16xf32>
    %35 = vector.broadcast %34 : vector<1x16xf32> to vector<64x16xf32>
    %36 = arith.addf %33, %35 : vector<64x16xf32>
    %cst_25 = arith.constant 2.000000e+01 : f32
    %37 = vector.broadcast %cst_25 : f32 to vector<64x16xf32>
    %38 = arith.minimumf %36, %37 : vector<64x16xf32>
    %39 = math.exp %38 : vector<64x16xf32>
    %cst_26 = arith.constant 2.000000e+00 : f32
    %40 = vector.broadcast %cst_26 : f32 to vector<64x16xf32>
    %41 = arith.addf %39, %40 : vector<64x16xf32>
    %42 = arith.mulf %39, %41 : vector<64x16xf32>
    %43 = arith.mulf %36, %42 : vector<64x16xf32>
    %cst_27 = arith.constant 2.000000e+00 : f32
    %44 = vector.broadcast %cst_27 : f32 to vector<64x16xf32>
    %45 = arith.addf %42, %44 : vector<64x16xf32>
    %46 = tpu.reciprocal %45 {approx = true} : vector<64x16xf32> -> vector<64x16xf32>
    %47 = arith.mulf %43, %46 : vector<64x16xf32>
    %cst_28 = arith.constant 0.000000e+00 : bf16
    %48 = vector.broadcast %cst_28 : bf16 to vector<16x16xbf16>
    %c0_29 = arith.constant 0 : index
    %c0_30 = arith.constant 0 : index
    %49 = vector.load %arg12[%c0_29, %c0_30] : memref<89x16xbf16, #tpu.memory_space<vmem>>, vector<16x16xbf16>
    tpu.vector_store %arg12[%c0_29, %c0_30], %48 {strides = array<i32>} : memref<89x16xbf16, #tpu.memory_space<vmem>>, vector<16x16xbf16>,
    %cst_31 = arith.constant 0.000000e+00 : bf16
    %50 = vector.broadcast %cst_31 : bf16 to vector<9x16xbf16>
    %c80 = arith.constant 80 : index
    %c0_32 = arith.constant 0 : index
    %51 = vector.load %arg12[%c80, %c0_32] : memref<89x16xbf16, #tpu.memory_space<vmem>>, vector<9x16xbf16>
    tpu.vector_store %arg12[%c80, %c0_32], %50 {strides = array<i32>} : memref<89x16xbf16, #tpu.memory_space<vmem>>, vector<9x16xbf16>,
    %52 = arith.truncf %47 : vector<64x16xf32> to vector<64x16xbf16>
    %c16 = arith.constant 16 : index
    %c0_33 = arith.constant 0 : index
    %53 = vector.load %arg12[%c16, %c0_33] : memref<89x16xbf16, #tpu.memory_space<vmem>>, vector<64x16xbf16>
    tpu.vector_store %arg12[%c16, %c0_33], %52 {strides = array<i32>} : memref<89x16xbf16, #tpu.memory_space<vmem>>, vector<64x16xbf16>,
    %54 = tpu.iota {dimensions = array<i32: 0>} : vector<64x1xi32>
    %c8_i32 = arith.constant 8 : i32
    %c0_i32 = arith.constant 0 : i32
    %55 = arith.cmpi eq, %c8_i32, %c0_i32 : i32
    %c1_i32 = arith.constant 1 : i32
    %56 = arith.select %55, %c1_i32, %c8_i32 : i32
    %57 = vector.broadcast %56 : i32 to vector<64x1xi32>
    %58 = arith.remsi %54, %57 : vector<64x1xi32>
    %c0_i32_34 = arith.constant 0 : i32
    %59 = vector.broadcast %c0_i32_34 : i32 to vector<64x1xi32>
    %60 = arith.cmpi ne, %58, %59 : vector<64x1xi32>
    %c0_i32_35 = arith.constant 0 : i32
    %61 = vector.broadcast %c0_i32_35 : i32 to vector<64x1xi32>
    %62 = arith.cmpi slt, %58, %61 : vector<64x1xi32>
    %c0_i32_36 = arith.constant 0 : i32
    %63 = arith.cmpi slt, %56, %c0_i32_36 : i32
    %64 = vector.broadcast %63 : i1 to vector<64x1xi1>
    %65 = vector.broadcast %64 : vector<64x1xi1> to vector<64x1xi1>
    %66 = arith.xori %62, %65 : vector<64x1xi1>
    %67 = arith.andi %66, %60 : vector<64x1xi1>
    %68 = vector.broadcast %56 : i32 to vector<64x1xi32>
    %69 = arith.addi %58, %68 : vector<64x1xi32>
    %70 = arith.select %67, %69, %58 : vector<64x1xi1>, vector<64x1xi32>
    %c0_i32_37 = arith.constant 0 : i32
    %71 = vector.broadcast %c0_i32_37 : i32 to vector<64x1xi32>
    %72 = arith.cmpi ne, %70, %71 : vector<64x1xi32>
    %73 = arith.extui %72 : vector<64x1xi1> to vector<64x1xi32>
    %74 = arith.sitofp %73 : vector<64x1xi32> to vector<64x1xf32>
    %75 = arith.truncf %74 : vector<64x1xf32> to vector<64x1xbf16>
    %c7_i32 = arith.constant 7 : i32
    %76 = vector.broadcast %c7_i32 : i32 to vector<64x1xi32>
    %77 = arith.cmpi ne, %70, %76 : vector<64x1xi32>
    %78 = arith.extui %77 : vector<64x1xi1> to vector<64x1xi32>
    %79 = arith.sitofp %78 : vector<64x1xi32> to vector<64x1xf32>
    %80 = arith.truncf %79 : vector<64x1xf32> to vector<64x1xbf16>
    %cst_38 = arith.constant 0.000000e+00 : f32
    %81 = vector.broadcast %cst_38 : f32 to vector<64x16xf32>
    %c7 = arith.constant 7 : index
    %c0_39 = arith.constant 0 : index
    %82 = vector.load %arg12[%c7, %c0_39] : memref<89x16xbf16, #tpu.memory_space<vmem>>, vector<64x16xbf16>
    %83 = vector.broadcast %75 : vector<64x1xbf16> to vector<64x16xbf16>
    %84 = arith.mulf %82, %83 : vector<64x16xbf16>
    %c0_40 = arith.constant 0 : index
    %c0_41 = arith.constant 0 : index
    %c0_42 = arith.constant 0 : index
    %85 = vector.load %arg7[%c0_40, %c0_41, %c0_42] : memref<9x16x16xbf16, #tpu.memory_space<vmem>>, vector<1x16x16xbf16>
    %86 = vector.shape_cast %85 : vector<1x16x16xbf16> to vector<16x16xbf16>
    %cst_43 = arith.constant dense<0.000000e+00> : vector<64x16xf32>
    %87 = tpu.matmul %84, %86, %cst_43 {dimension_numbers = #tpu.dot_dimension_numbers<[1], [0], [0], [1], [0, 0, 1, 1], [], []>} : vector<64x16xbf16>, vector<16x16xbf16>, vector<64x16xf32> -> vector<64x16xf32>
    %88 = arith.addf %81, %87 : vector<64x16xf32>
    %c8 = arith.constant 8 : index
    %c0_44 = arith.constant 0 : index
    %89 = vector.load %arg12[%c8, %c0_44] : memref<89x16xbf16, #tpu.memory_space<vmem>>, vector<64x16xbf16>
    %c1 = arith.constant 1 : index
    %c0_45 = arith.constant 0 : index
    %c0_46 = arith.constant 0 : index
    %90 = vector.load %arg7[%c1, %c0_45, %c0_46] : memref<9x16x16xbf16, #tpu.memory_space<vmem>>, vector<1x16x16xbf16>
    %91 = vector.shape_cast %90 : vector<1x16x16xbf16> to vector<16x16xbf16>
    %cst_47 = arith.constant dense<0.000000e+00> : vector<64x16xf32>
    %92 = tpu.matmul %89, %91, %cst_47 {dimension_numbers = #tpu.dot_dimension_numbers<[1], [0], [0], [1], [0, 0, 1, 1], [], []>} : vector<64x16xbf16>, vector<16x16xbf16>, vector<64x16xf32> -> vector<64x16xf32>
    %93 = arith.addf %88, %92 : vector<64x16xf32>
    %c9 = arith.constant 9 : index
    %c0_48 = arith.constant 0 : index
    %94 = vector.load %arg12[%c9, %c0_48] : memref<89x16xbf16, #tpu.memory_space<vmem>>, vector<64x16xbf16>
    %95 = vector.broadcast %80 : vector<64x1xbf16> to vector<64x16xbf16>
    %96 = arith.mulf %94, %95 : vector<64x16xbf16>
    %c2 = arith.constant 2 : index
    %c0_49 = arith.constant 0 : index
    %c0_50 = arith.constant 0 : index
    %97 = vector.load %arg7[%c2, %c0_49, %c0_50] : memref<9x16x16xbf16, #tpu.memory_space<vmem>>, vector<1x16x16xbf16>
    %98 = vector.shape_cast %97 : vector<1x16x16xbf16> to vector<16x16xbf16>
    %cst_51 = arith.constant dense<0.000000e+00> : vector<64x16xf32>
    %99 = tpu.matmul %96, %98, %cst_51 {dimension_numbers = #tpu.dot_dimension_numbers<[1], [0], [0], [1], [0, 0, 1, 1], [], []>} : vector<64x16xbf16>, vector<16x16xbf16>, vector<64x16xf32> -> vector<64x16xf32>
    %100 = arith.addf %93, %99 : vector<64x16xf32>
    %c15 = arith.constant 15 : index
    %c0_52 = arith.constant 0 : index
    %101 = vector.load %arg12[%c15, %c0_52] : memref<89x16xbf16, #tpu.memory_space<vmem>>, vector<64x16xbf16>
    %102 = vector.broadcast %75 : vector<64x1xbf16> to vector<64x16xbf16>
    %103 = arith.mulf %101, %102 : vector<64x16xbf16>
    %c3 = arith.constant 3 : index
    %c0_53 = arith.constant 0 : index
    %c0_54 = arith.constant 0 : index
    %104 = vector.load %arg7[%c3, %c0_53, %c0_54] : memref<9x16x16xbf16, #tpu.memory_space<vmem>>, vector<1x16x16xbf16>
    %105 = vector.shape_cast %104 : vector<1x16x16xbf16> to vector<16x16xbf16>
    %cst_55 = arith.constant dense<0.000000e+00> : vector<64x16xf32>
    %106 = tpu.matmul %103, %105, %cst_55 {dimension_numbers = #tpu.dot_dimension_numbers<[1], [0], [0], [1], [0, 0, 1, 1], [], []>} : vector<64x16xbf16>, vector<16x16xbf16>, vector<64x16xf32> -> vector<64x16xf32>
    %107 = arith.addf %100, %106 : vector<64x16xf32>
    %c16_56 = arith.constant 16 : index
    %c0_57 = arith.constant 0 : index
    %108 = vector.load %arg12[%c16_56, %c0_57] : memref<89x16xbf16, #tpu.memory_space<vmem>>, vector<64x16xbf16>
    %c4 = arith.constant 4 : index
    %c0_58 = arith.constant 0 : index
    %c0_59 = arith.constant 0 : index
    %109 = vector.load %arg7[%c4, %c0_58, %c0_59] : memref<9x16x16xbf16, #tpu.memory_space<vmem>>, vector<1x16x16xbf16>
    %110 = vector.shape_cast %109 : vector<1x16x16xbf16> to vector<16x16xbf16>
    %cst_60 = arith.constant dense<0.000000e+00> : vector<64x16xf32>
    %111 = tpu.matmul %108, %110, %cst_60 {dimension_numbers = #tpu.dot_dimension_numbers<[1], [0], [0], [1], [0, 0, 1, 1], [], []>} : vector<64x16xbf16>, vector<16x16xbf16>, vector<64x16xf32> -> vector<64x16xf32>
    %112 = arith.addf %107, %111 : vector<64x16xf32>
    %c17 = arith.constant 17 : index
    %c0_61 = arith.constant 0 : index
    %113 = vector.load %arg12[%c17, %c0_61] : memref<89x16xbf16, #tpu.memory_space<vmem>>, vector<64x16xbf16>
    %114 = vector.broadcast %80 : vector<64x1xbf16> to vector<64x16xbf16>
    %115 = arith.mulf %113, %114 : vector<64x16xbf16>
    %c5 = arith.constant 5 : index
    %c0_62 = arith.constant 0 : index
    %c0_63 = arith.constant 0 : index
    %116 = vector.load %arg7[%c5, %c0_62, %c0_63] : memref<9x16x16xbf16, #tpu.memory_space<vmem>>, vector<1x16x16xbf16>
    %117 = vector.shape_cast %116 : vector<1x16x16xbf16> to vector<16x16xbf16>
    %cst_64 = arith.constant dense<0.000000e+00> : vector<64x16xf32>
    %118 = tpu.matmul %115, %117, %cst_64 {dimension_numbers = #tpu.dot_dimension_numbers<[1], [0], [0], [1], [0, 0, 1, 1], [], []>} : vector<64x16xbf16>, vector<16x16xbf16>, vector<64x16xf32> -> vector<64x16xf32>
    %119 = arith.addf %112, %118 : vector<64x16xf32>
    %c23 = arith.constant 23 : index
    %c0_65 = arith.constant 0 : index
    %120 = vector.load %arg12[%c23, %c0_65] : memref<89x16xbf16, #tpu.memory_space<vmem>>, vector<64x16xbf16>
    %121 = vector.broadcast %75 : vector<64x1xbf16> to vector<64x16xbf16>
    %122 = arith.mulf %120, %121 : vector<64x16xbf16>
    %c6 = arith.constant 6 : index
    %c0_66 = arith.constant 0 : index
    %c0_67 = arith.constant 0 : index
    %123 = vector.load %arg7[%c6, %c0_66, %c0_67] : memref<9x16x16xbf16, #tpu.memory_space<vmem>>, vector<1x16x16xbf16>
    %124 = vector.shape_cast %123 : vector<1x16x16xbf16> to vector<16x16xbf16>
    %cst_68 = arith.constant dense<0.000000e+00> : vector<64x16xf32>
    %125 = tpu.matmul %122, %124, %cst_68 {dimension_numbers = #tpu.dot_dimension_numbers<[1], [0], [0], [1], [0, 0, 1, 1], [], []>} : vector<64x16xbf16>, vector<16x16xbf16>, vector<64x16xf32> -> vector<64x16xf32>
    %126 = arith.addf %119, %125 : vector<64x16xf32>
    %c24 = arith.constant 24 : index
    %c0_69 = arith.constant 0 : index
    %127 = vector.load %arg12[%c24, %c0_69] : memref<89x16xbf16, #tpu.memory_space<vmem>>, vector<64x16xbf16>
    %c7_70 = arith.constant 7 : index
    %c0_71 = arith.constant 0 : index
    %c0_72 = arith.constant 0 : index
    %128 = vector.load %arg7[%c7_70, %c0_71, %c0_72] : memref<9x16x16xbf16, #tpu.memory_space<vmem>>, vector<1x16x16xbf16>
    %129 = vector.shape_cast %128 : vector<1x16x16xbf16> to vector<16x16xbf16>
    %cst_73 = arith.constant dense<0.000000e+00> : vector<64x16xf32>
    %130 = tpu.matmul %127, %129, %cst_73 {dimension_numbers = #tpu.dot_dimension_numbers<[1], [0], [0], [1], [0, 0, 1, 1], [], []>} : vector<64x16xbf16>, vector<16x16xbf16>, vector<64x16xf32> -> vector<64x16xf32>
    %131 = arith.addf %126, %130 : vector<64x16xf32>
    %c25 = arith.constant 25 : index
    %c0_74 = arith.constant 0 : index
    %132 = vector.load %arg12[%c25, %c0_74] : memref<89x16xbf16, #tpu.memory_space<vmem>>, vector<64x16xbf16>
    %133 = vector.broadcast %80 : vector<64x1xbf16> to vector<64x16xbf16>
    %134 = arith.mulf %132, %133 : vector<64x16xbf16>
    %c8_75 = arith.constant 8 : index
    %c0_76 = arith.constant 0 : index
    %c0_77 = arith.constant 0 : index
    %135 = vector.load %arg7[%c8_75, %c0_76, %c0_77] : memref<9x16x16xbf16, #tpu.memory_space<vmem>>, vector<1x16x16xbf16>
    %136 = vector.shape_cast %135 : vector<1x16x16xbf16> to vector<16x16xbf16>
    %cst_78 = arith.constant dense<0.000000e+00> : vector<64x16xf32>
    %137 = tpu.matmul %134, %136, %cst_78 {dimension_numbers = #tpu.dot_dimension_numbers<[1], [0], [0], [1], [0, 0, 1, 1], [], []>} : vector<64x16xbf16>, vector<16x16xbf16>, vector<64x16xf32> -> vector<64x16xf32>
    %138 = arith.addf %131, %137 : vector<64x16xf32>
    %c0_79 = arith.constant 0 : index
    %c0_80 = arith.constant 0 : index
    %c0_81 = arith.constant 0 : index
    %139 = vector.load %arg9[%c0_79, %c0_80, %c0_81] : memref<1x64x8xbf16, #tpu.memory_space<vmem>>, vector<1x64x8xbf16>
    %140 = vector.shape_cast %139 : vector<1x64x8xbf16> to vector<64x8xbf16>
    %c0_82 = arith.constant 0 : index
    %c0_83 = arith.constant 0 : index
    %141 = vector.load %arg10[%c0_82, %c0_83] : memref<8x16xbf16, #tpu.memory_space<vmem>>, vector<8x16xbf16>
    %cst_84 = arith.constant dense<0.000000e+00> : vector<64x16xf32>
    %142 = tpu.matmul %140, %141, %cst_84 {dimension_numbers = #tpu.dot_dimension_numbers<[1], [0], [0], [1], [0, 0, 1, 1], [], []>} : vector<64x8xbf16>, vector<8x16xbf16>, vector<64x16xf32> -> vector<64x16xf32>
    %143 = arith.addf %138, %142 : vector<64x16xf32>
    %c0_85 = arith.constant 0 : index
    %c0_86 = arith.constant 0 : index
    %144 = vector.load %arg8[%c0_85, %c0_86] : memref<1x16xf32, #tpu.memory_space<vmem>>, vector<1x16xf32>
    %145 = vector.broadcast %144 : vector<1x16xf32> to vector<64x16xf32>
    %146 = arith.addf %143, %145 : vector<64x16xf32>
    %147 = arith.truncf %146 : vector<64x16xf32> to vector<64x16xbf16>
    %c0_87 = arith.constant 0 : index
    %c0_88 = arith.constant 0 : index
    %c0_89 = arith.constant 0 : index
    %148 = vector.load %arg11[%c0_87, %c0_88, %c0_89] : memref<1x64x16xbf16, #tpu.memory_space<vmem>>, vector<1x64x16xbf16>
    %149 = vector.shape_cast %148 : vector<1x64x16xbf16> to vector<64x16xbf16>
    %150 = vector.shape_cast %147 : vector<64x16xbf16> to vector<1x64x16xbf16>
    tpu.vector_store %arg11[%c0_87, %c0_88, %c0_89], %150 {strides = array<i32>} : memref<1x64x16xbf16, #tpu.memory_space<vmem>>, vector<1x64x16xbf16>,
    return
  }
  func.func @transform_0(%arg0: i32) -> (i32, i32, i32) {
    %c0_i32 = arith.constant 0 : i32
    %c0_i32_0 = arith.constant 0 : i32
    %c0_i32_1 = arith.constant 0 : i32
    return %arg0, %c0_i32, %c0_i32_0 : i32, i32, i32
  }
  func.func @transform_1(%arg0: i32) -> (i32, i32, i32) {
    %c0_i32 = arith.constant 0 : i32
    %c0_i32_0 = arith.constant 0 : i32
    %c0_i32_1 = arith.constant 0 : i32
    return %arg0, %c0_i32, %c0_i32_0 : i32, i32, i32
  }
  func.func @transform_2(%arg0: i32) -> (i32, i32) {
    %c0_i32 = arith.constant 0 : i32
    %c0_i32_0 = arith.constant 0 : i32
    %c0_i32_1 = arith.constant 0 : i32
    return %c0_i32, %c0_i32_0 : i32, i32
  }
  func.func @transform_3(%arg0: i32) -> (i32, i32) {
    %c0_i32 = arith.constant 0 : i32
    %c0_i32_0 = arith.constant 0 : i32
    %c0_i32_1 = arith.constant 0 : i32
    return %c0_i32, %c0_i32_0 : i32, i32
  }
  func.func @transform_4(%arg0: i32) -> (i32, i32) {
    %c0_i32 = arith.constant 0 : i32
    %c0_i32_0 = arith.constant 0 : i32
    %c0_i32_1 = arith.constant 0 : i32
    return %c0_i32, %c0_i32_0 : i32, i32
  }
  func.func @transform_5(%arg0: i32) -> (i32, i32) {
    %c0_i32 = arith.constant 0 : i32
    %c0_i32_0 = arith.constant 0 : i32
    %c0_i32_1 = arith.constant 0 : i32
    return %c0_i32, %c0_i32_0 : i32, i32
  }
  func.func @transform_6(%arg0: i32) -> (i32, i32, i32) {
    %c0_i32 = arith.constant 0 : i32
    %c0_i32_0 = arith.constant 0 : i32
    %c0_i32_1 = arith.constant 0 : i32
    %c0_i32_2 = arith.constant 0 : i32
    return %c0_i32, %c0_i32_0, %c0_i32_1 : i32, i32, i32
  }
  func.func @transform_7(%arg0: i32) -> (i32, i32) {
    %c0_i32 = arith.constant 0 : i32
    %c0_i32_0 = arith.constant 0 : i32
    %c0_i32_1 = arith.constant 0 : i32
    return %c0_i32, %c0_i32_0 : i32, i32
  }
  func.func @transform_8(%arg0: i32) -> (i32, i32, i32) {
    %c0_i32 = arith.constant 0 : i32
    %c0_i32_0 = arith.constant 0 : i32
    %c0_i32_1 = arith.constant 0 : i32
    return %arg0, %c0_i32, %c0_i32_0 : i32, i32, i32
  }
  func.func @transform_9(%arg0: i32) -> (i32, i32) {
    %c0_i32 = arith.constant 0 : i32
    %c0_i32_0 = arith.constant 0 : i32
    %c0_i32_1 = arith.constant 0 : i32
    return %c0_i32, %c0_i32_0 : i32, i32
  }
  func.func @transform_10(%arg0: i32) -> (i32, i32, i32) {
    %c0_i32 = arith.constant 0 : i32
    %c0_i32_0 = arith.constant 0 : i32
    %c0_i32_1 = arith.constant 0 : i32
    return %arg0, %c0_i32, %c0_i32_0 : i32, i32, i32
  }
}

</mosaic_0001>

<bundles_post_ra>
// kernel: resblock_forward.5
= control target key start
LH: loop header
LB: loop body
LE: loop exit
PB: predicated region body
PF: predicated region fallthrough
CT: control target
= control target key end

     0   :  { %s1568_s0 = inlined_call_operand.vmem [shape: bf16[2,64,16], index: 0, kind: input, shape index: {}]   ;;  %s1569_s1 = inlined_call_operand.vmem [shape: f32[1,16], index: 1, kind: input, shape index: {}]   ;;  %s1570_s2 = inlined_call_operand.vmem [shape: f32[1,16], index: 2, kind: input, shape index: {}]   ;;  %s1571_s3 = inlined_call_operand.vmem [shape: f32[16,4], index: 3, kind: input, shape index: {}]   ;;  %s1572_s4 = inlined_call_operand.vmem [shape: f32[4,16], index: 4, kind: input, shape index: {}]   ;;  %s1573_s5 = inlined_call_operand.vmem [shape: bf16[16,16], index: 5, kind: input, shape index: {}]   ;;  %s1574_s6 = inlined_call_operand.vmem [shape: bf16[16,16], index: 6, kind: input, shape index: {}]   ;;  %s1575_s7 = inlined_call_operand.vmem [shape: bf16[16,16], index: 7, kind: input, shape index: {}]   ;;  %s1576_s8 = inlined_call_operand.vmem [shape: f32[16,16], index: 8, kind: input, shape index: {}]   ;;  %s1577_s9 = inlined_call_operand.vmem [shape: bf16[16,16], index: 9, kind: input, shape index: {}]   ;;  %s1578_s10 = inlined_call_operand.vmem [shape: f32[1,16], index: 10, kind: input, shape index: {}]   ;;  %s1579_s11 = inlined_call_operand.hbm [shape: f32[2,64,16], index: 11, kind: output, shape index: {}]  }
   0x1   :  { %1580 = sst [smem:[#allocation5_spill]] %s1568_s0 }
   0x2   :  { %16 = vsyncpa [#allocation3], 0 }
   0x3   :  { %18 = vsyncpa [#allocation3 + $0x1], 0  ;;  %s1317_s17 = smov 0   ;;  %s1319_s18 = smov 0  }
   0x4   :  { %s1321_s19 = smov 0   ;;  %s1323_s20 = smov 0  }
   0x5 LB: > { %s1338_s21 = sadd.s32 4294967295, %s1253_s20   ;;  %s1044_s22 = sadd.s32 4294967294, %s1253_s20   ;;  %s1253_s20 = sphi %s1323_s20, %s1587_s20   ;;  %s1249_s19 = sphi %s1321_s19, %s1586_s19   ;;  %s1245_s18 = sphi %s1319_s18, %s1585_s18   ;;  %s1241_s17 = sphi %s1317_s17, %s1584_s17  }
   0x6   : > { %s1342_s23 = sadd.s32 1, %s1253_s20   ;;  %s267_s24 = sadd.s32 1, %s1249_s19 }
   0x7   : > { %s264_s25 = ssub.s32 %s1253_s20, %s1342_s23  ;;  %p277_p0 = scmp.ne.s32.totalorder %s1249_s19, %s1245_s18 }
   0x8   : > { %p265_p1 = scmp.eq.s32.totalorder %s264_s25, 0  ;;  %p278_p2 = scmp.eq.s32.totalorder %s1338_s21, 1 }
   0x9   : > { %p283_p3 = scmp.ne.s32.totalorder %s1245_s18, %s1241_s17  ;;  %p284_p4 = scmp.eq.s32.totalorder %s1044_s22, 1 }
   0xa   : > { %s1353_s26 = scalar_select %p265_p1, %s1249_s19, %s267_s24  }
   0xb   : > { %p1355_p5 = por %p278_p2, %p277_p0  ;;  %p1359_p6 = por %p284_p4, %p283_p3 }
   0xc   : > { %p1047_p7 = scmp.ge.s32.totalorder %s1253_s20, 1  ;;  %p340_p8 = scmp.lt.s32.totalorder %s1253_s20, 3 }
   0xe   : > { %p341_p9 = pnand %p1047_p7, %p340_p8 }
   0xf   : > { %p380_p10 = scmp.lt.s32.totalorder (!%p341_p9), %s1338_s21, 1  ;;  %s1583_s0 = sld [smem:[#allocation5_spill]] (!%p341_p9) }
  0x10   : > { %344 = sbr.rel (%p341_p9) target bundleno = 1572 (0x624), region = 64  ;;  %s377_s22 = sand.u32 (!%p341_p9), 1, %s1245_s18  }
  0x11   : > { %s1104_s12 = sshll.u32 (!%p341_p9), %s1338_s21, 6  ;;  %s967_s25 = scalar_lea.sflag (!%p341_p9), [#allocation3], %s377_s22 }
  0x15   : > { %v425_v0 = vld [vmem:[%s1571_s3 + $0x8] sm:$0xff]  ;;  %v424_v1 = vld [vmem:[%s1571_s3] sm:$0xff]  ;;  %s381_s14 = scalar_select %p380_p10, %s1338_s21, 1  ;;  %vm402_vm0 = vcmask 130048   ;;  %vm455_vm1 = vcmask 1043456   ;;  %vm451_vm2 = vcmask 31744  }
  0x16   : > { %443 = vmatpush.msra.mxu0 %v425_v0  ;;  %534 = vmatpush.msra.mxu2 %v425_v0  ;;  %v450_v35 = vld [vmem:[%s1572_s4] sm:$0xf]  ;;  %vm833_vm6 = vcmask 523264  }
  0x17   : > { %s1099_s15 = sshll.u32 %s381_s14, 5  ;;  %1052 = vmatpush.msk.msra.mxu1 %vm455_vm1, %v450_v35 }
  0x18   : > { %444 = vmatpush.msra.mxu0 %v424_v1  ;;  %535 = vmatpush.msra.mxu2 %v424_v1  ;;  %s384_s24 = scalar_lea.vmem %s1583_s0, %s1099_s15  ;;  %s978_s15 = scalar_lea.hbm %s1579_s11, %s1104_s12 }
  0x19   : > { %v1106_v2 = vld [vmem:[%s384_s24] sm:$0xff]   ;;  %v1121_v3 = vld [vmem:[%s384_s24 + $0x8] sm:$0xff]   ;;  %v1122_v4 = vld [vmem:[%s384_s24 + $0x10] sm:$0xff]   ;;  %1055 = vmatpush.msk.msrb.mxu1 %vm455_vm1, %v450_v35  ;;  %s1211_s12 = scalar_lea.hbm %s1579_s11, 128 }
  0x1a   : > { %v1107_v5 = vunpack.c.l.bf16 %v1106_v2  ;;  %v1108_v6 = vunpack.c.h.bf16 %v1106_v2  ;;  %v1111_v7 = vunpack.c.l.bf16 %v1121_v3  ;;  %v1112_v8 = vunpack.c.h.bf16 %v1121_v3  ;;  %v1123_v13 = vld [vmem:[%s384_s24 + $0x18] sm:$0xff]   ;;  %s1048_s24 = sshll.u32 %s377_s22, 6 }
  0x1b   : > { %v1115_v9 = vunpack.c.l.bf16 %v1122_v4  ;;  %v1116_v15 = vunpack.c.h.bf16 %v1122_v4  ;;  %v1119_v18 = vunpack.c.l.bf16 %v1123_v13  ;;  %v1120_v21 = vunpack.c.h.bf16 %v1123_v13  ;;  %s379_s30 = scalar_lea.vmem [#allocation2], %s1048_s24  ;;  %s981_s24 = sshll.u32 %s978_s15, 4  ;;  %s982_s24 = int_to_ptr.hbm [resolvable:$true] %s981_s24 }
  0x1c   : > { %v403_v10 = vsel %vm402_vm0, %v1107_v5, 0.0  ;;  %v404_v11 = vsel %vm402_vm0, %v1108_v6, 0.0  ;;  %v406_v12 = vsel %vm402_vm0, %v1111_v7, 0.0  ;;  %v408_v16 = vsel %vm402_vm0, %v1112_v8, 0.0  ;;  %s979_s16 = sshll.u32 %s379_s30, 4  ;;  %s1205_s29 = sshra.s32 %s982_s24, 4  ;;  %s980_s16 = int_to_ptr.vmem [resolvable:$true] %s979_s16  ;;  %s1206_s29 = int_to_ptr.hbm [resolvable:$true] %s1205_s29 }
  0x1d   : > { %v405_v14 = vadd.f32 %v404_v11, %v403_v10  ;;  %v410_v19 = vsel %vm402_vm0, %v1115_v9, 0.0  ;;  %v412_v22 = vsel %vm402_vm0, %v1116_v15, 0.0  ;;  %v414_v24 = vsel %vm402_vm0, %v1119_v18, 0.0  ;;  %s1207_s21 = scalar_lea.hbm %s1206_s29, 64  ;;  %p1212_p0 = scmp.lt.s32.totalorder %s1206_s29, %s1579_s11 }
  0x1e   : > { %v416_v26 = vsel %vm402_vm0, %v1120_v21, 0.0  ;;  %p1208_p11 = scmp.ne.s32.totalorder %s1206_s29, %s1207_s21  ;;  %p1213_p1 = scmp.lt.s32.totalorder %s1211_s12, %s1207_s21 }
  0x1f   : > { %v407_v17 = vadd.f32 %v406_v12, %v405_v14 }
  0x20   : > { %p1209_p12 = pnand %p1208_p11, %p1355_p5  ;;  %p1214_p2 = por %p1213_p1, %p1212_p0 }
  0x21   : > { %v409_v20 = vadd.f32 %v408_v16, %v407_v17  ;;  %v1101_v17 = vld [vmem:[%s1574_s6] sm:$0xff] }
  0x22   : > { %p1210_p13 = pneg %p1209_p12 }
  0x23   : > { %v411_v23 = vadd.f32 %v410_v19, %v409_v20 }
  0x24   : > { %p1215_p3 = pnand %p1214_p2, %p1210_p13 }
  0x25   : > { %v413_v25 = vadd.f32 %v412_v22, %v411_v23 }
  0x27   : > { %v415_v27 = vadd.f32 %v414_v24, %v413_v25 }
  0x29   : > { %v417_v28 = vadd.f32 %v416_v26, %v415_v27 }
  0x2b   : > { %v418_v29 = vrot.slane %v417_v28, 4 }
  0x2d   : > { %v419_v30 = vadd.f32 %v418_v29, %v417_v28  ;;  %v1168_v28 = vld [vmem:[%s1569_s1] ss:$0 sm:$0xff] }
  0x2f   : > { %v420_v31 = vrot.slane %v419_v30, 2 }
  0x31   : > { %v421_v32 = vadd.f32 %v420_v31, %v419_v30  ;;  %v1169_v31 = vld [vmem:[%s1570_s2] ss:$0 sm:$0xff] }
  0x33   : > { %v422_v33 = vrot.slane %v421_v32, 1 }
  0x35   : > { %v423_v34 = vadd.f32 %v422_v33, %v421_v32 }
  0x37   : > { %1051 = vmatmul.msk.f32.vlgmr.msra.gmra.mxu0 %vm402_vm0, %v423_v34 }
  0xb4   : > { %v446_v36 = vpop.f32.mrf.mxu0 }
  0xb5   : > { %v449_v37 = vmul.f32 0.00390625, %v446_v36 }
  0xb7   : > { %1053 = vmatmul.msk.f32.vlgmr.msra.gmra.mxu1 %vm451_vm2, %v449_v37 }
 0x134   : > { %v476_v38 = vpop.f32.mrf.mxu1 }
 0x135   : > { %v479_v39 = vperm.slane %v476_v38, 0 }
 0x137   : > { %v1389_v40 = vsub.f32 %v1107_v5, %v479_v39  ;;  %v1391_v41 = vsub.f32 %v1108_v6, %v479_v39  ;;  %v1393_v42 = vsub.f32 %v1111_v7, %v479_v39  ;;  %v1395_v43 = vsub.f32 %v1112_v8, %v479_v39 }
 0x138   : > { %v1397_v44 = vsub.f32 %v1115_v9, %v479_v39  ;;  %v485_v48 = vsub.f32 %v1116_v15, %v479_v39  ;;  %v1409_v53 = vsub.f32 %v1119_v18, %v479_v39  ;;  %v1414_v57 = vsub.f32 %v1120_v21, %v479_v39  ;;  %v1100_v15 = vld [vmem:[%s1573_s5] sm:$0xff] }
 0x139   : > { %v488_v45 = vmul.f32 %v1389_v40, %v1389_v40  ;;  %v489_v46 = vmul.f32 %v1391_v41, %v1391_v41  ;;  %v490_v47 = vmul.f32 %v1393_v42, %v1393_v42  ;;  %v491_v49 = vmul.f32 %v1395_v43, %v1395_v43  ;;  %638 = vmatpush.bf16.msrb.mxu0 %v1100_v15  ;;  %v1102_v18 = vld [vmem:[%s1575_s7] sm:$0xff] }
 0x13a   : > { %v492_v54 = vmul.f32 %v1397_v44, %v1397_v44  ;;  %v493_v58 = vmul.f32 %v485_v48, %v485_v48  ;;  %v494_v61 = vmul.f32 %v1409_v53, %v1409_v53  ;;  %v495_v0 = vmul.f32 %v1414_v57, %v1414_v57  ;;  %1124 = vmatpush.bf16.msra.mxu1 %v1100_v15 }
 0x13b   : > { %v496_v50 = vsel %vm402_vm0, %v488_v45, 0.0  ;;  %v497_v51 = vsel %vm402_vm0, %v489_v46, 0.0  ;;  %v499_v55 = vsel %vm402_vm0, %v490_v47, 0.0  ;;  %v501_v59 = vsel %vm402_vm0, %v491_v49, 0.0  ;;  %1125 = vmatpush.bf16.msra.mxu3 %v1100_v15 }
 0x13c   : > { %v498_v52 = vadd.f32 %v497_v51, %v496_v50  ;;  %v503_v62 = vsel %vm402_vm0, %v492_v54, 0.0  ;;  %v505_v1 = vsel %vm402_vm0, %v493_v58, 0.0  ;;  %v507_v3 = vsel %vm402_vm0, %v494_v61, 0.0 }
 0x13d   : > { %v509_v5 = vsel %vm402_vm0, %v495_v0, 0.0  ;;  %712 = vmatpush.bf16.msra.mxu0 %v1102_v18 }
 0x13e   : > { %v500_v56 = vadd.f32 %v499_v55, %v498_v52 }
 0x13f   : > { %675 = vmatpush.bf16.msrb.mxu3 %v1101_v17 }
 0x140   : > { %v502_v60 = vadd.f32 %v501_v59, %v500_v56 }
 0x142   : > { %v504_v63 = vadd.f32 %v503_v62, %v502_v60 }
 0x144   : > { %v506_v2 = vadd.f32 %v505_v1, %v504_v63 }
 0x146   : > { %v508_v4 = vadd.f32 %v507_v3, %v506_v2 }
 0x148   : > { %v510_v6 = vadd.f32 %v509_v5, %v508_v4 }
 0x14a   : > { %v511_v7 = vrot.slane %v510_v6, 4 }
 0x14c   : > { %v512_v8 = vadd.f32 %v511_v7, %v510_v6 }
 0x14e   : > { %v513_v9 = vrot.slane %v512_v8, 2 }
 0x150   : > { %v514_v10 = vadd.f32 %v513_v9, %v512_v8 }
 0x152   : > { %v515_v11 = vrot.slane %v514_v10, 1 }
 0x154   : > { %v516_v12 = vadd.f32 %v515_v11, %v514_v10 }
 0x156   : > { %1054 = vmatmul.msk.f32.vlgmr.msra.gmra.mxu2 %vm402_vm0, %v516_v12 }
 0x1d9   : > { %v537_v13 = vpop.f32.mrf.mxu2 }
 0x1da   : > { %v540_v14 = vmul.f32 0.00390625, %v537_v13 }
 0x1dc   : > { %1056 = vmatmul.msk.f32.vlgmr.msrb.gmra.mxu1 %vm451_vm2, %v540_v14 }
 0x259   : > { %v561_v16 = vpop.f32.mrf.mxu1 }
 0x25a   : > { %v562_v19 = vadd.f32 1e-05, %v561_v16 }
 0x25c   : > { %1171 = vrsqrt.f32 %v562_v19  ;;  %vm570_vm4 = vweird.f32 %v562_v19 }
 0x262   : > { %v1172_v20 = vpop.eup %1171 }
 0x263   : > { %v565_v21 = vmul.f32 %v1172_v20, %v562_v19  ;;  %vm571_vm3 = vweird.f32 %v1172_v20 }
 0x264   : > { %vm572_vm5 = vmor %vm570_vm4, %vm571_vm3 }
 0x265   : > { %v566_v22 = vmul.f32 %v1172_v20, %v565_v21 }
 0x267   : > { %v567_v23 = vmul.f32 0.5, %v566_v22 }
 0x269   : > { %v568_v24 = vsub.f32 1.5, %v567_v23 }
 0x26b   : > { %v569_v25 = vmul.f32 %v1172_v20, %v568_v24 }
 0x26d   : > { %v573_v26 = vsel %vm572_vm5, %v1172_v20, %v569_v25 }
 0x26e   : > { %v574_v27 = vperm.slane %v573_v26, 0 }
 0x270   : > { %v575_v29 = vmul.f32 %v574_v27, %v1389_v40  ;;  %v576_v30 = vmul.f32 %v574_v27, %v1391_v41  ;;  %v577_v32 = vmul.f32 %v574_v27, %v1393_v42  ;;  %v578_v33 = vmul.f32 %v574_v27, %v1395_v43 }
 0x271   : > { %v579_v34 = vmul.f32 %v574_v27, %v1397_v44  ;;  %v580_v35 = vmul.f32 %v574_v27, %v485_v48  ;;  %v581_v43 = vmul.f32 %v574_v27, %v1409_v53  ;;  %v582_v44 = vmul.f32 %v574_v27, %v1414_v57 }
 0x272   : > { %v587_v36 = vmul.f32 %v1168_v28, %v575_v29  ;;  %v588_v37 = vmul.f32 %v1168_v28, %v576_v30  ;;  %v589_v38 = vmul.f32 %v1168_v28, %v577_v32  ;;  %v590_v39 = vmul.f32 %v1168_v28, %v578_v33 }
 0x273   : > { %v591_v45 = vmul.f32 %v1168_v28, %v579_v34  ;;  %v592_v46 = vmul.f32 %v1168_v28, %v580_v35  ;;  %v593_v48 = vmul.f32 %v1168_v28, %v581_v43  ;;  %v594_v55 = vmul.f32 %v1168_v28, %v582_v44 }
 0x274   : > { %v599_v40 = vadd.f32 %v1169_v31, %v587_v36  ;;  %v600_v47 = vadd.f32 %v1169_v31, %v588_v37  ;;  %v601_v41 = vadd.f32 %v1169_v31, %v589_v38  ;;  %v602_v49 = vadd.f32 %v1169_v31, %v590_v39 }
 0x275   : > { %v603_v50 = vadd.f32 %v1169_v31, %v591_v45  ;;  %v604_v51 = vadd.f32 %v1169_v31, %v592_v46  ;;  %v605_v56 = vadd.f32 %v1169_v31, %v593_v48  ;;  %v606_v58 = vadd.f32 %v1169_v31, %v594_v55 }
 0x276   : > { %v607_v52 = vpack.c.bf16 %v600_v47, %v599_v40  ;;  %v608_v54 = vpack.c.bf16 %v602_v49, %v601_v41 }
 0x277   : > { %v609_v42 = vpack.c.bf16 %v604_v51, %v603_v50  ;;  %v610_v59 = vpack.c.bf16 %v606_v58, %v605_v56 }
 0x278   : > { %1061 = vmatmul.msk.bf16.vlgmr.msrb.gmra.mxu0 %vm402_vm0, %v607_v52  ;;  %1062 = vmatmul.msk.bf16.vlgmr.msra.gmra.mxu1 %vm402_vm0, %v608_v54 }
 0x279   : > { %1063 = vmatmul.msk.bf16.vlgmr.msra.gmra.mxu3 %vm402_vm0, %v609_v42 }
 0x288   : > { %1077 = vmatmul.msk.bf16.vlgmr.msra.gmra.mxu0 %vm402_vm0, %v607_v52 }
 0x289   : > { %1064 = vmatmul.msk.bf16.gmra.mxu3 %vm402_vm0, %v610_v59 }
 0x298   : > { %1078 = vmatmul.msk.bf16.gmra.mxu0 %vm402_vm0, %v608_v54 }
 0x299   : > { %1069 = vmatmul.msk.bf16.vlgmr.msrb.gmra.mxu3 %vm402_vm0, %v607_v52 }
 0x2a8   : > { %1079 = vmatmul.msk.bf16.gmra.mxu0 %vm402_vm0, %v609_v42 }
 0x2a9   : > { %1070 = vmatmul.msk.bf16.gmra.mxu3 %vm402_vm0, %v608_v54 }
 0x2b8   : > { %1080 = vmatmul.msk.bf16.gmra.mxu0 %vm402_vm0, %v610_v59 }
 0x2b9   : > { %1071 = vmatmul.msk.bf16.gmra.mxu3 %vm402_vm0, %v609_v42 }
 0x2c9   : > { %1072 = vmatmul.msk.bf16.gmra.mxu3 %vm402_vm0, %v610_v59 }
 0x2f5   : > { %v1461_v53 = vpop.f32.mrf.mxu0 }
 0x2fc   : > { %v1463_v57 = vpop.f32.mrf.mxu3 }
 0x2fd   : > { %v1465_v60 = vpop.f32.mrf.mxu0 }
 0x2fe   : > { %v856_v61 = vpack.c.bf16 %v1465_v60, %v1461_v53  ;;  %v1103_v53 = vld [vmem:[%s1577_s9] sm:$0xff] }
 0x2ff   : > { %936 = vmatpush.bf16.msrb.mxu1 %v1103_v53 }
 0x304   : > { %v1469_v62 = vpop.f32.mrf.mxu3 }
 0x305   : > { %v858_v63 = vpack.c.bf16 %v1469_v62, %v1463_v57  ;;  %v714_v0 = vpop.f32.mrf.mxu0 }
 0x30c   : > { %v1473_v1 = vpop.f32.mrf.mxu3 }
 0x30d   : > { %v716_v2 = vpop.f32.mrf.mxu0 }
 0x30e   : > { %v813_v20 = vpack.c.bf16 %v716_v2, %v714_v0 }
 0x314   : > { %v1475_v3 = vpop.f32.mrf.mxu3 }
 0x315   : > { %v859_v4 = vpack.c.bf16 %v1475_v3, %v1473_v1  ;;  %v719_v5 = vpop.f32.mrf.mxu0 }
 0x31c   : > { %v677_v6 = vpop.f32.mrf.mxu3 }
 0x31d   : > { %v721_v7 = vpop.f32.mrf.mxu0  ;;  %v734_v28 = vsel %vm402_vm0, %v677_v6, -inf }
 0x31e   : > { %v814_v19 = vpack.c.bf16 %v721_v7, %v719_v5 }
 0x324   : > { %v679_v8 = vpop.f32.mrf.mxu3 }
 0x325   : > { %v724_v9 = vpop.f32.mrf.mxu0  ;;  %v735_v23 = vsel %vm402_vm0, %v679_v8, -inf }
 0x32c   : > { %v682_v10 = vpop.f32.mrf.mxu3 }
 0x32d   : > { %v726_v11 = vpop.f32.mrf.mxu0  ;;  %v736_v29 = vsel %vm402_vm0, %v682_v10, -inf }
 0x32e   : > { %v815_v17 = vpack.c.bf16 %v726_v11, %v724_v9 }
 0x334   : > { %v684_v12 = vpop.f32.mrf.mxu3 }
 0x335   : > { %v729_v13 = vpop.f32.mrf.mxu0  ;;  %v737_v30 = vsel %vm402_vm0, %v684_v12, -inf }
 0x33c   : > { %v687_v14 = vpop.f32.mrf.mxu3 }
 0x33d   : > { %v731_v15 = vpop.f32.mrf.mxu0  ;;  %v738_v24 = vsel %vm402_vm0, %v687_v14, -inf }
 0x33e   : > { %v816_v16 = vpack.c.bf16 %v731_v15, %v729_v13  ;;  %v739_v32 = vmax.f32 %v734_v28, %v738_v24 }
 0x340   : > { %841 = vmatpush.bf16.msrb.mxu2 %v816_v16 }
 0x344   : > { %v689_v18 = vpop.f32.mrf.mxu3  ;;  %842 = vmatpush.bf16.msrb.mxu2 %v815_v17 }
 0x345   : > { %v740_v22 = vsel %vm402_vm0, %v689_v18, -inf }
 0x346   : > { %v741_v26 = vmax.f32 %v735_v23, %v740_v22 }
 0x348   : > { %843 = vmatpush.bf16.msrb.mxu2 %v814_v19  ;;  %v746_v35 = vmax.f32 %v739_v32, %v741_v26 }
 0x34c   : > { %v692_v21 = vpop.f32.mrf.mxu3  ;;  %844 = vmatpush.bf16.msrb.mxu2 %v813_v20 }
 0x34d   : > { %v742_v25 = vsel %vm402_vm0, %v692_v21, -inf }
 0x34e   : > { %v743_v33 = vmax.f32 %v736_v29, %v742_v25 }
 0x354   : > { %v694_v27 = vpop.f32.mrf.mxu3 }
 0x355   : > { %v744_v31 = vsel %vm402_vm0, %v694_v27, -inf }
 0x356   : > { %v745_v34 = vmax.f32 %v737_v30, %v744_v31 }
 0x358   : > { %v747_v36 = vmax.f32 %v743_v33, %v745_v34 }
 0x35a   : > { %v748_v37 = vmax.f32 %v746_v35, %v747_v36 }
 0x35c   : > { %v749_v38 = vrot.slane %v748_v37, 4 }
 0x35e   : > { %v750_v39 = vmax.f32 %v748_v37, %v749_v38 }
 0x360   : > { %v751_v45 = vrot.slane %v750_v39, 2 }
 0x362   : > { %v752_v46 = vmax.f32 %v750_v39, %v751_v45 }
 0x364   : > { %v753_v40 = vrot.slane %v752_v46, 1 }
 0x366   : > { %v754_v47 = vmax.f32 %v752_v46, %v753_v40 }
 0x368   : > { %v755_v41 = vsub.f32 %v677_v6, %v754_v47  ;;  %v756_v49 = vsub.f32 %v679_v8, %v754_v47  ;;  %v757_v50 = vsub.f32 %v682_v10, %v754_v47  ;;  %v758_v51 = vsub.f32 %v684_v12, %v754_v47 }
 0x369   : > { %v759_v52 = vsub.f32 %v687_v14, %v754_v47  ;;  %v760_v44 = vsub.f32 %v689_v18, %v754_v47  ;;  %v761_v55 = vsub.f32 %v692_v21, %v754_v47  ;;  %v762_v58 = vsub.f32 %v694_v27, %v754_v47 }
 0x36a   : > { %v763_v54 = vmul.f32 1.442695, %v755_v41  ;;  %v765_v42 = vmul.f32 1.442695, %v756_v49  ;;  %v767_v43 = vmul.f32 1.442695, %v757_v50 }
 0x36b   : > { %v769_v48 = vmul.f32 1.442695, %v758_v51  ;;  %v771_v56 = vmul.f32 1.442695, %v759_v52  ;;  %v773_v59 = vmul.f32 1.442695, %v760_v44 }
 0x36c   : > { %1173 = vpow2.f32 %v763_v54  ;;  %v775_v0 = vmul.f32 1.442695, %v761_v55  ;;  %v777_v6 = vmul.f32 1.442695, %v762_v58  ;;  %v851_v54 = vld [vmem:[%s1576_s8] sm:$0xff] }
 0x36d   : > { %1175 = vpow2.f32 %v765_v42  ;;  %v852_v42 = vld [vmem:[%s1576_s8 + $0x8] sm:$0xff] }
 0x36e   : > { %1177 = vpow2.f32 %v767_v43 }
 0x36f   : > { %1179 = vpow2.f32 %v769_v48 }
 0x370   : > { %1181 = vpow2.f32 %v771_v56  ;;  %v645_v56 = vpop.f32.mrf.mxu1 }
 0x371   : > { %1183 = vpow2.f32 %v773_v59 }
 0x372   : > { %v1174_v2 = vpop.eup %1173  ;;  %1185 = vpow2.f32 %v775_v0 }
 0x373   : > { %v1176_v5 = vpop.eup %1175  ;;  %v779_v7 = vsel %vm402_vm0, %v1174_v2, 0.0  ;;  %1187 = vpow2.f32 %v777_v6 }
 0x374   : > { %v1178_v8 = vpop.eup %1177  ;;  %v780_v9 = vsel %vm402_vm0, %v1176_v5, 0.0 }
 0x375   : > { %v1180_v10 = vpop.eup %1179  ;;  %v781_v11 = vadd.f32 %v780_v9, %v779_v7  ;;  %v782_v12 = vsel %vm402_vm0, %v1178_v8, 0.0  ;;  %v1170_v7 = vld [vmem:[%s1578_s10] ss:$0 sm:$0xff] }
 0x376   : > { %v1182_v13 = vpop.eup %1181  ;;  %v784_v15 = vsel %vm402_vm0, %v1180_v10, 0.0 }
 0x377   : > { %v783_v14 = vadd.f32 %v782_v12, %v781_v11  ;;  %v1184_v16 = vpop.eup %1183  ;;  %v786_v18 = vsel %vm402_vm0, %v1182_v13, 0.0 }
 0x378   : > { %v1186_v19 = vpop.eup %1185  ;;  %v788_v21 = vsel %vm402_vm0, %v1184_v16, 0.0  ;;  %v647_v58 = vpop.f32.mrf.mxu1 }
 0x379   : > { %v785_v17 = vadd.f32 %v784_v15, %v783_v14  ;;  %v1188_v22 = vpop.eup %1187  ;;  %v790_v24 = vsel %vm402_vm0, %v1186_v19, 0.0  ;;  %v857_v59 = vpack.c.bf16 %v647_v58, %v645_v56 }
 0x37a   : > { %v792_v26 = vsel %vm402_vm0, %v1188_v22, 0.0 }
 0x37b   : > { %v787_v20 = vadd.f32 %v786_v18, %v785_v17 }
 0x37d   : > { %v789_v23 = vadd.f32 %v788_v21, %v787_v20 }
 0x37f   : > { %v791_v25 = vadd.f32 %v790_v24, %v789_v23 }
 0x381   : > { %v793_v27 = vadd.f32 %v792_v26, %v791_v25 }
 0x383   : > { %v794_v28 = vrot.slane %v793_v27, 4 }
 0x385   : > { %v795_v29 = vadd.f32 %v794_v28, %v793_v27 }
 0x387   : > { %v796_v30 = vrot.slane %v795_v29, 2 }
 0x389   : > { %v797_v31 = vadd.f32 %v796_v30, %v795_v29 }
 0x38b   : > { %v798_v32 = vrot.slane %v797_v31, 1 }
 0x38d   : > { %v799_v33 = vadd.f32 %v798_v32, %v797_v31 }
 0x38f   : > { %1189 = vrcp.f32 %v799_v33 }
 0x395   : > { %v1190_v34 = vpop.eup %1189 }
 0x396   : > { %v801_v35 = vmul.f32 %v1190_v34, %v1174_v2  ;;  %v802_v36 = vmul.f32 %v1190_v34, %v1176_v5  ;;  %v805_v37 = vmul.f32 %v1190_v34, %v1182_v13  ;;  %v806_v38 = vmul.f32 %v1190_v34, %v1184_v16 }
 0x397   : > { %v807_v39 = vmul.f32 %v1190_v34, %v1186_v19  ;;  %v808_v45 = vmul.f32 %v1190_v34, %v1188_v22  ;;  %v803_v41 = vmul.f32 %v1190_v34, %v1178_v8  ;;  %v804_v49 = vmul.f32 %v1190_v34, %v1180_v10 }
 0x398   : > { %v809_v46 = vpack.c.bf16 %v802_v36, %v801_v35  ;;  %v811_v40 = vpack.c.bf16 %v806_v38, %v805_v37 }
 0x399   : > { %v812_v47 = vpack.c.bf16 %v808_v45, %v807_v39  ;;  %v810_v50 = vpack.c.bf16 %v804_v49, %v803_v41 }
 0x39a   : > { %817 = vxpose.xlu0.c.b16.start [1/4] (short) (narrow) %v809_v46, 16 }
 0x3aa   : > { %818 = vxpose.xlu0.c.b16.cont [2/4] (short) (narrow) %v810_v50, 16 }
 0x3ba   : > { %819 = vxpose.xlu0.c.b16.cont [3/4] (short) (narrow) %v811_v40, 16 }
 0x3ca   : > { %820 = vxpose.xlu0.c.b16.end [4/4] (short) (narrow) %v812_v47, 16 }
 0x446   : > { %v825_v51 = vpop.trf.xlu0 }
 0x447   : > { %1081 = vmatmul.msk.bf16.vlgmr.msrb.gmra.mxu2 %vm833_vm6, %v825_v51 }
 0x4ca   : > { %v846_v52 = vpop.f32.mrf.mxu2 }
 0x4cb   : > { %v853_v44 = vmul.f32 %v851_v54, %v846_v52 }
 0x4d2   : > { %v848_v43 = vpop.f32.mrf.mxu2 }
 0x4d3   : > { %v854_v48 = vmul.f32 %v852_v42, %v848_v43 }
 0x4d5   : > { %v855_v55 = vpack.c.bf16 %v854_v48, %v853_v44 }
 0x4d7   : > { %879 = vmatpush.bf16.msra.mxu2 %v855_v55 }
 0x4da   : > { %1082 = vmatmul.msk.bf16.vlgmr.msra.gmra.mxu2 %vm402_vm0, %v856_v61 }
 0x4ea   : > { %1083 = vmatmul.msk.bf16.gmra.mxu2 %vm402_vm0, %v857_v59 }
 0x4fa   : > { %1084 = vmatmul.msk.bf16.gmra.mxu2 %vm402_vm0, %v858_v63 }
 0x50a   : > { %1085 = vmatmul.msk.bf16.gmra.mxu2 %vm402_vm0, %v859_v4 }
 0x55d   : > { %v881_v60 = vpop.f32.mrf.mxu2 }
 0x565   : > { %v883_v61 = vpop.f32.mrf.mxu2 }
 0x566   : > { %v901_v0 = vpack.c.bf16 %v883_v61, %v881_v60 }
 0x568   : > { %1090 = vmatmul.msk.bf16.vlgmr.msrb.gmra.mxu1 %vm402_vm0, %v901_v0 }
 0x56d   : > { %v886_v57 = vpop.f32.mrf.mxu2 }
 0x575   : > { %v888_v62 = vpop.f32.mrf.mxu2 }
 0x576   : > { %v902_v63 = vpack.c.bf16 %v888_v62, %v886_v57 }
 0x578   : > { %1091 = vmatmul.msk.bf16.gmra.mxu1 %vm402_vm0, %v902_v63 }
 0x57d   : > { %v891_v1 = vpop.f32.mrf.mxu2 }
 0x585   : > { %v893_v3 = vpop.f32.mrf.mxu2 }
 0x586   : > { %v903_v4 = vpack.c.bf16 %v893_v3, %v891_v1 }
 0x588   : > { %1092 = vmatmul.msk.bf16.gmra.mxu1 %vm402_vm0, %v903_v4 }
 0x58d   : > { %v896_v2 = vpop.f32.mrf.mxu2 }
 0x595   : > { %v898_v5 = vpop.f32.mrf.mxu2 }
 0x596   : > { %v904_v6 = vpack.c.bf16 %v898_v5, %v896_v2 }
 0x598   : > { %1093 = vmatmul.msk.bf16.gmra.mxu1 %vm402_vm0, %v904_v6 }
 0x5e5   : > { %v938_v8 = vpop.f32.mrf.mxu1 }
 0x5e6   : > { %v939_v9 = vadd.f32 %v1170_v7, %v938_v8 }
 0x5e8   : > { %958 = vst.msk [vmem:[%s379_s30] sm:$0xff] %vm402_vm0, %v939_v9 }
 0x5ed   : > { %v940_v10 = vpop.f32.mrf.mxu1 }
 0x5ee   : > { %v941_v11 = vadd.f32 %v1170_v7, %v940_v10 }
 0x5f0   : > { %959 = vst.msk [vmem:[%s379_s30 + $0x8] sm:$0xff] %vm402_vm0, %v941_v11 }
 0x5f5   : > { %v943_v12 = vpop.f32.mrf.mxu1 }
 0x5f6   : > { %v944_v13 = vadd.f32 %v1170_v7, %v943_v12 }
 0x5f8   : > { %960 = vst.msk [vmem:[%s379_s30 + $0x10] sm:$0xff] %vm402_vm0, %v944_v13 }
 0x5fd   : > { %v945_v14 = vpop.f32.mrf.mxu1 }
 0x5fe   : > { %v946_v15 = vadd.f32 %v1170_v7, %v945_v14 }
 0x600   : > { %961 = vst.msk [vmem:[%s379_s30 + $0x18] sm:$0xff] %vm402_vm0, %v946_v15 }
 0x605   : > { %v948_v16 = vpop.f32.mrf.mxu1 }
 0x606   : > { %v949_v17 = vadd.f32 %v1170_v7, %v948_v16 }
 0x608   : > { %962 = vst.msk [vmem:[%s379_s30 + $0x20] sm:$0xff] %vm402_vm0, %v949_v17 }
 0x60d   : > { %v950_v18 = vpop.f32.mrf.mxu1 }
 0x60e   : > { %v951_v19 = vadd.f32 %v1170_v7, %v950_v18 }
 0x610   : > { %963 = vst.msk [vmem:[%s379_s30 + $0x28] sm:$0xff] %vm402_vm0, %v951_v19 }
 0x615   : > { %v953_v20 = vpop.f32.mrf.mxu1 }
 0x616   : > { %v954_v21 = vadd.f32 %v1170_v7, %v953_v20 }
 0x618   : > { %964 = vst.msk [vmem:[%s379_s30 + $0x30] sm:$0xff] %vm402_vm0, %v954_v21 }
 0x61d   : > { %v955_v22 = vpop.f32.mrf.mxu1 }
 0x61e   : > { %v956_v23 = vadd.f32 %v1170_v7, %v955_v22 }
 0x620   : > { %965 = vst.msk [vmem:[%s379_s30 + $0x38] sm:$0xff] %vm402_vm0, %v956_v23 }
 0x621   : > { %1218 = shalt.err (!%p1215_p3)
}
 0x622   : > { %s1255_s22 = smov 128   ;;  %s1256_s30 = smov 8  }
 0x623   : > { %1126 = dma.vmem_to_hbm [thread:$0]  (%p1355_p5), %s980_s16, 1024, %s982_s24, %s967_s25, %s1255_s22, %s1255_s22, %s1256_s30  }
 0x624 PF: > { %p1132_p4 = scmp.ge.s32.totalorder %s1253_s20, 2  ;;  %s996_s0 = sand.u32 1, %s1241_s17  }
 0x625   : > { %s997_s13 = scalar_lea.sflag [#allocation3], %s996_s0 }
 0x626   : > { %p1129_p7 = pnand %p1132_p4, %p1359_p6 }
 0x628   : > { %p1130_p8 = pneg %p1129_p7 }
 0x62a   : > { %1236 = dma.done.wait (%p1130_p8), %s997_s13, 1024  }
 0x62b   : > { %1238 = vsyncadd (%p1130_p8), %s997_s13, 4294966272  ;;  %p21_p9 = scmp.ge.s32.totalorder %s1342_s23, 4   ;;  %s1584_s17 = smov %s1245_s18 }
 0x62c   : > { %s1585_s18 = smov %s1249_s19  ;;  %s1586_s19 = smov %s1353_s26 }
 0x62d   : > { %s1587_s20 = smov %s1342_s23  ;;  %23 = sbr.rel (!%p21_p9) target bundleno = 5 (0x5), region = 99 }
 0x632   :  { %1003 = vsyncpa [#allocation3], 1 }
 0x633   :  { %1005 = vsyncpa [#allocation3 + $0x1], 1 }

// kernel: resblock_forward.3
= control target key start
LH: loop header
LB: loop body
LE: loop exit
PB: predicated region body
PF: predicated region fallthrough
CT: control target
= control target key end

     0   :  { %s2149_s24 = smov 0   ;;  %s2830_s0 = inlined_call_operand.vmem [shape: f32[2,64,8], index: 0, kind: input, shape index: {}]   ;;  %s2831_s1 = inlined_call_operand.vmem [shape: f32[1,8], index: 1, kind: input, shape index: {}]   ;;  %s2832_s2 = inlined_call_operand.vmem [shape: f32[1,8], index: 2, kind: input, shape index: {}]   ;;  %s2833_s3 = inlined_call_operand.vmem [shape: f32[8,4], index: 3, kind: input, shape index: {}]   ;;  %s2834_s4 = inlined_call_operand.vmem [shape: f32[4,8], index: 4, kind: input, shape index: {}]   ;;  %s2835_s5 = inlined_call_operand.vmem [shape: bf16[9,8,16], index: 5, kind: input, shape index: {}]   ;;  %s2836_s6 = inlined_call_operand.vmem [shape: f32[1,16], index: 6, kind: input, shape index: {}]   ;;  %s2837_s7 = inlined_call_operand.vmem [shape: bf16[2,64,16], index: 7, kind: output, shape index: {}]  }
   0x1 LB: > { %s1860_s25 = sadd.s32 4294967295, %s2105_s24   ;;  %p1864_p0 = scmp.ge.s32.totalorder %s2105_s24, 1  ;;  %s2105_s24 = sphi %s2149_s24, %s17_s24  }
   0x2   : > { %p237_p1 = scmp.lt.s32.totalorder %s2105_s24, 3 }
   0x4   : > { %p238_p2 = pnand %p1864_p0, %p237_p1 }
   0x5   : > { %p269_p3 = scmp.lt.s32.totalorder (!%p238_p2), %s1860_s25, 1 }
   0x6   : > { %241 = sbr.rel (%p238_p2) target bundleno = 943 (0x3af), region = 48 }
   0xb   : > { %v310_v0 = vld [vmem:[%s2833_s3] sm:$0xff]  ;;  %s2853_s25 = smov (!%p269_p3, %s1860_s25), 1  ;;  %vm288_vm0 = vcmask 64512   ;;  %vm340_vm1 = vcmask 1043456   ;;  %vm336_vm2 = vcmask 31744   ;;  %vm564_vm6 = vcmask 60416  }
   0xc   : > { %329 = vmatpush.msra.mxu0 %v310_v0  ;;  %420 = vmatpush.msra.mxu2 %v310_v0  ;;  %s1985_s28 = sshll.u32 %s2853_s25, 6  ;;  %v335_v30 = vld [vmem:[%s2834_s4] sm:$0xf]  ;;  %vm793_vm12 = vcmask 1046528   ;;  %s1986_s14 = sshll.u32 %s2853_s25, 5 }
   0xd   : > { %s273_s8 = scalar_lea.vmem %s2830_s0, %s1985_s28  ;;  %1870 = vmatpush.msk.msra.mxu1 %vm340_vm1, %v335_v30  ;;  %1873 = vmatpush.msk.msra.mxu3 %vm340_vm1, %v335_v30  ;;  %s2780_s17 = scalar_lea.vmem %s2837_s7, %s1986_s14 }
   0xe   : > { %v280_v1 = vld [vmem:[%s273_s8] sm:$0xff]  ;;  %v281_v2 = vld [vmem:[%s273_s8 + $0x8] sm:$0xff]  ;;  %v282_v3 = vld [vmem:[%s273_s8 + $0x10] sm:$0xff] }
   0xf   : > { %v283_v4 = vld [vmem:[%s273_s8 + $0x18] sm:$0xff]  ;;  %v289_v5 = vsel %vm288_vm0, %v280_v1, 0.0  ;;  %v290_v6 = vsel %vm288_vm0, %v281_v2, 0.0  ;;  %v292_v7 = vsel %vm288_vm0, %v282_v3, 0.0  ;;  %v284_v8 = vld [vmem:[%s273_s8 + $0x20] sm:$0xff]  ;;  %v285_v11 = vld [vmem:[%s273_s8 + $0x28] sm:$0xff] }
  0x10   : > { %v291_v9 = vadd.f32 %v290_v6, %v289_v5  ;;  %v294_v10 = vsel %vm288_vm0, %v283_v4, 0.0  ;;  %v296_v13 = vsel %vm288_vm0, %v284_v8, 0.0  ;;  %v286_v14 = vld [vmem:[%s273_s8 + $0x30] sm:$0xff]  ;;  %v298_v16 = vsel %vm288_vm0, %v285_v11, 0.0  ;;  %v287_v17 = vld [vmem:[%s273_s8 + $0x38] sm:$0xff] }
  0x11   : > { %v300_v19 = vsel %vm288_vm0, %v286_v14, 0.0  ;;  %v302_v21 = vsel %vm288_vm0, %v287_v17, 0.0 }
  0x12   : > { %v293_v12 = vadd.f32 %v292_v7, %v291_v9 }
  0x14   : > { %v295_v15 = vadd.f32 %v294_v10, %v293_v12  ;;  %v1891_v12 = vld [vmem:[%s2835_s5 + $0x4] sm:$0xf] }
  0x16   : > { %v297_v18 = vadd.f32 %v296_v13, %v295_v15 }
  0x18   : > { %v299_v20 = vadd.f32 %v298_v16, %v297_v18 }
  0x1a   : > { %v301_v22 = vadd.f32 %v300_v19, %v299_v20 }
  0x1c   : > { %v303_v23 = vadd.f32 %v302_v21, %v301_v22  ;;  %v2062_v22 = vld [vmem:[%s2831_s1] ss:$0 sm:$0xff] }
  0x1e   : > { %v304_v24 = vrot.slane %v303_v23, 4 }
  0x20   : > { %v305_v25 = vadd.f32 %v304_v24, %v303_v23  ;;  %v2107_v23 = vmov 0  }
  0x21   : > { %565 = vst.msk [vmem:[#allocation2] sm:$0xf] %vm564_vm6, %v2107_v23 }
  0x22   : > { %v306_v26 = vrot.slane %v305_v25, 2  ;;  %566 = vst.msk [vmem:[#allocation2 + $0x4] sm:$0xf] %vm564_vm6, %v2107_v23 }
  0x23   : > { %567 = vst.msk [vmem:[#allocation2 + $0x28] sm:$0xf] %vm564_vm6, %v2107_v23 }
  0x24   : > { %v307_v27 = vadd.f32 %v306_v26, %v305_v25 }
  0x26   : > { %v308_v28 = vrot.slane %v307_v27, 1 }
  0x28   : > { %v309_v29 = vadd.f32 %v308_v28, %v307_v27  ;;  %v2063_v28 = vld [vmem:[%s2832_s2] ss:$0 sm:$0xff] }
  0x2a   : > { %1869 = vmatmul.msk.f32.vlgmr.msra.gmra.mxu0 %vm288_vm0, %v309_v29 }
  0xa7   : > { %v331_v31 = vpop.f32.mrf.mxu0 }
  0xa8   : > { %v334_v32 = vmul.f32 0.0078125, %v331_v31 }
  0xaa   : > { %1871 = vmatmul.msk.f32.vlgmr.msra.gmra.mxu1 %vm336_vm2, %v334_v32 }
 0x127   : > { %v361_v33 = vpop.f32.mrf.mxu1 }
 0x128   : > { %v364_v34 = vperm.slane %v361_v33, 0 }
 0x12a   : > { %v2181_v35 = vsub.f32 %v280_v1, %v364_v34  ;;  %v2183_v36 = vsub.f32 %v281_v2, %v364_v34  ;;  %v2185_v37 = vsub.f32 %v282_v3, %v364_v34  ;;  %v2187_v38 = vsub.f32 %v283_v4, %v364_v34 }
 0x12b   : > { %v2189_v39 = vsub.f32 %v284_v8, %v364_v34  ;;  %v2197_v43 = vsub.f32 %v285_v11, %v364_v34  ;;  %v371_v48 = vsub.f32 %v286_v14, %v364_v34  ;;  %v372_v52 = vsub.f32 %v287_v17, %v364_v34 }
 0x12c   : > { %v373_v40 = vmul.f32 %v2181_v35, %v2181_v35  ;;  %v374_v41 = vmul.f32 %v2183_v36, %v2183_v36  ;;  %v375_v42 = vmul.f32 %v2185_v37, %v2185_v37  ;;  %v376_v44 = vmul.f32 %v2187_v38, %v2187_v38 }
 0x12d   : > { %v377_v49 = vmul.f32 %v2189_v39, %v2189_v39  ;;  %v378_v53 = vmul.f32 %v2197_v43, %v2197_v43  ;;  %v379_v56 = vmul.f32 %v371_v48, %v371_v48  ;;  %v380_v59 = vmul.f32 %v372_v52, %v372_v52 }
 0x12e   : > { %v381_v45 = vsel %vm288_vm0, %v373_v40, 0.0  ;;  %v382_v46 = vsel %vm288_vm0, %v374_v41, 0.0  ;;  %v384_v50 = vsel %vm288_vm0, %v375_v42, 0.0  ;;  %v386_v54 = vsel %vm288_vm0, %v376_v44, 0.0 }
 0x12f   : > { %v383_v47 = vadd.f32 %v382_v46, %v381_v45  ;;  %v388_v57 = vsel %vm288_vm0, %v377_v49, 0.0  ;;  %v390_v60 = vsel %vm288_vm0, %v378_v53, 0.0  ;;  %v392_v62 = vsel %vm288_vm0, %v379_v56, 0.0 }
 0x130   : > { %v394_v0 = vsel %vm288_vm0, %v380_v59, 0.0  ;;  %v868_v14 = vsel %vm340_vm1, %v1891_v12, 0  ;;  %v590_v59 = vlaneseq }
 0x131   : > { %v385_v51 = vadd.f32 %v384_v50, %v383_v47  ;;  %2050 = vmatpush.bf16.msrb.mxu2 %v868_v14  ;;  %2051 = vmatpush.bf16.msrb.mxu3 %v868_v14 }
 0x132   : > { %2049 = vmatpush.bf16.msrb.mxu1 %v868_v14  ;;  %877 = vmatpush.bf16.msrb.mxu0 %v868_v14 }
 0x133   : > { %v387_v55 = vadd.f32 %v386_v54, %v385_v51 }
 0x135   : > { %v389_v58 = vadd.f32 %v388_v57, %v387_v55 }
 0x137   : > { %v391_v61 = vadd.f32 %v390_v60, %v389_v58 }
 0x139   : > { %v393_v63 = vadd.f32 %v392_v62, %v391_v61  ;;  %v2257_v62 = vshrl.u32 %v590_v59, 7 }
 0x13b   : > { %v395_v1 = vadd.f32 %v394_v0, %v393_v63 }
 0x13d   : > { %v396_v2 = vrot.slane %v395_v1, 4 }
 0x13f   : > { %v397_v3 = vadd.f32 %v396_v2, %v395_v1  ;;  %v2261_v2 = vadd.s32 8, %v2257_v62 }
 0x141   : > { %v398_v4 = vrot.slane %v397_v3, 2  ;;  %v610_v12 = vand.u32 7, %v2261_v2 }
 0x143   : > { %v399_v5 = vadd.f32 %v398_v4, %v397_v3  ;;  %v2264_v3 = vadd.s32 16, %v2257_v62  ;;  %v2267_v4 = vadd.s32 24, %v2257_v62  ;;  %vm2299_vm8 = vcmp.ne.s32.totalorder %v610_v12, 0 }
 0x144   : > { %vm728_vm13 = vcmp.ne.s32.totalorder %v610_v12, 7 }
 0x145   : > { %v400_v6 = vrot.slane %v399_v5, 1  ;;  %v624_v14 = vand.u32 7, %v2267_v4 }
 0x147   : > { %v401_v7 = vadd.f32 %v400_v6, %v399_v5  ;;  %v603_v5 = vand.u32 7, %v2257_v62  ;;  %vm2318_vm11 = vcmp.ne.s32.totalorder %v624_v14, 0  ;;  %vm730_vm15 = vcmp.ne.s32.totalorder %v624_v14, 7  ;;  %v988_v14 = vld [vmem:[#allocation2 + $0x4] sm:$0xf] }
 0x149   : > { %1872 = vmatmul.msk.f32.vlgmr.msra.gmra.mxu2 %vm288_vm0, %v401_v7  ;;  %vm2287_vm7 = vcmp.ne.s32.totalorder %v603_v5, 0  ;;  %vm2303_vm9 = vcmp.ne.s32.totalorder %v603_v5, 7 }
 0x1cc   : > { %v422_v8 = vpop.f32.mrf.mxu2 }
 0x1cd   : > { %v425_v9 = vmul.f32 0.0078125, %v422_v8  ;;  %v2273_v8 = vadd.s32 32, %v2257_v62 }
 0x1cf   : > { %1874 = vmatmul.msk.f32.vlgmr.msra.gmra.mxu3 %vm336_vm2, %v425_v9  ;;  %v2276_v9 = vadd.s32 40, %v2257_v62  ;;  %vm1022_vm2 = vcmask 1040384  }
 0x252   : > { %v446_v10 = vpop.f32.mrf.mxu3 }
 0x253   : > { %v447_v11 = vadd.f32 1e-05, %v446_v10 }
 0x255   : > { %2065 = vrsqrt.f32 %v447_v11  ;;  %vm455_vm4 = vweird.f32 %v447_v11 }
 0x25b   : > { %v2066_v13 = vpop.eup %2065 }
 0x25c   : > { %v450_v15 = vmul.f32 %v2066_v13, %v447_v11  ;;  %vm456_vm3 = vweird.f32 %v2066_v13 }
 0x25d   : > { %vm457_vm5 = vmor %vm455_vm4, %vm456_vm3  ;;  %vm899_vm4 = vsmask.f32 4352 }
 0x25e   : > { %v451_v16 = vmul.f32 %v2066_v13, %v450_v15 }
 0x260   : > { %v452_v17 = vmul.f32 0.5, %v451_v16 }
 0x262   : > { %v453_v18 = vsub.f32 1.5, %v452_v17  ;;  %v1916_v17 = vld [vmem:[%s2835_s5 + $0x8] sm:$0xf] }
 0x263   : > { %v1113_v23 = vsel %vm340_vm1, %v1916_v17, 0 }
 0x264   : > { %v454_v19 = vmul.f32 %v2066_v13, %v453_v18  ;;  %v1921_v18 = vld [vmem:[%s2835_s5 + $0xc] sm:$0xf]  ;;  %1122 = vmatpush.bf16.msra.mxu2 %v1113_v23 }
 0x266   : > { %v458_v20 = vsel %vm457_vm5, %v2066_v13, %v454_v19  ;;  %v617_v13 = vand.u32 7, %v2264_v3 }
 0x267   : > { %v459_v21 = vperm.slane %v458_v20, 0 }
 0x268   : > { %vm2309_vm10 = vcmp.ne.s32.totalorder %v617_v13, 0  ;;  %vm729_vm14 = vcmp.ne.s32.totalorder %v617_v13, 7 }
 0x269   : > { %v460_v24 = vmul.f32 %v459_v21, %v2181_v35  ;;  %v461_v25 = vmul.f32 %v459_v21, %v2183_v36  ;;  %v462_v26 = vmul.f32 %v459_v21, %v2185_v37  ;;  %v463_v27 = vmul.f32 %v459_v21, %v2187_v38 }
 0x26a   : > { %v464_v29 = vmul.f32 %v459_v21, %v2189_v39  ;;  %v465_v30 = vmul.f32 %v459_v21, %v2197_v43  ;;  %v466_v31 = vmul.f32 %v459_v21, %v371_v48  ;;  %v467_v32 = vmul.f32 %v459_v21, %v372_v52 }
 0x26b   : > { %v472_v33 = vmul.f32 %v2062_v22, %v460_v24  ;;  %v473_v34 = vmul.f32 %v2062_v22, %v461_v25  ;;  %v474_v35 = vmul.f32 %v2062_v22, %v462_v26  ;;  %v475_v36 = vmul.f32 %v2062_v22, %v463_v27  ;;  %v832_v25 = vld [vmem:[%s2835_s5] sm:$0xf] }
 0x26c   : > { %v476_v37 = vmul.f32 %v2062_v22, %v464_v29  ;;  %v477_v38 = vmul.f32 %v2062_v22, %v465_v30  ;;  %v478_v40 = vmul.f32 %v2062_v22, %v466_v31  ;;  %v479_v41 = vmul.f32 %v2062_v22, %v467_v32 }
 0x26d   : > { %v2234_v42 = vadd.f32 %v2063_v28, %v472_v33  ;;  %v2236_v44 = vadd.f32 %v2063_v28, %v473_v34  ;;  %v2238_v45 = vadd.f32 %v2063_v28, %v474_v35  ;;  %v2240_v39 = vadd.f32 %v2063_v28, %v475_v36 }
 0x26e   : > { %v2242_v43 = vadd.f32 %v2063_v28, %v476_v37  ;;  %v2244_v46 = vadd.f32 %v2063_v28, %v477_v38  ;;  %v2246_v47 = vadd.f32 %v2063_v28, %v478_v40  ;;  %v2252_v52 = vadd.f32 %v2063_v28, %v479_v41 }
 0x26f   : > { %v492_v48 = vmin.f32 %v2234_v42, 20.0  ;;  %v493_v49 = vmin.f32 %v2236_v44, 20.0  ;;  %v494_v50 = vmin.f32 %v2238_v45, 20.0  ;;  %v495_v51 = vmin.f32 %v2240_v39, 20.0 }
 0x270   : > { %v496_v53 = vmin.f32 %v2242_v43, 20.0  ;;  %v497_v54 = vmin.f32 %v2244_v46, 20.0  ;;  %v498_v55 = vmin.f32 %v2246_v47, 20.0  ;;  %v499_v0 = vmin.f32 %v2252_v52, 20.0 }
 0x271   : > { %v500_v56 = vmul.f32 1.442695, %v492_v48  ;;  %v502_v57 = vmul.f32 1.442695, %v493_v49  ;;  %v504_v58 = vmul.f32 1.442695, %v494_v50  ;;  %v997_v41 = vunpack.c.l.bf16 %v988_v14 }
 0x272   : > { %v506_v60 = vmul.f32 1.442695, %v495_v51  ;;  %v508_v61 = vmul.f32 1.442695, %v496_v53  ;;  %v510_v63 = vmul.f32 1.442695, %v497_v54 }
 0x273   : > { %2067 = vpow2.f32 %v500_v56  ;;  %v512_v1 = vmul.f32 1.442695, %v498_v55  ;;  %v2270_v7 = vmul.f32 1.442695, %v499_v0  ;;  %v1229_v24 = vsel %vm340_vm1, %v1921_v18, 0 }
 0x274   : > { %2069 = vpow2.f32 %v502_v57  ;;  %1238 = vmatpush.bf16.msra.mxu3 %v1229_v24  ;;  %v957_v29 = vsel %vm340_vm1, %v832_v25, 0  ;;  %v1926_v50 = vld [vmem:[%s2835_s5 + $0x10] sm:$0xf]  ;;  %v2108_v55 = vmov 0.0   ;;  %v2325_v57 = vld [vmem:[#allocation2] sm:$0x8] }
 0x275   : > { %2071 = vpow2.f32 %v504_v58  ;;  %966 = vmatpush.bf16.msra.mxu1 %v957_v29  ;;  %v1875_v56 = vsel %vm2287_vm7, 1.0, %v2108_v55  ;;  %v2336_v0 = vsel %vm2309_vm10, 1.0, %v2108_v55  ;;  %v2341_v5 = vsel %vm2318_vm11, 1.0, %v2108_v55 }
 0x276   : > { %2073 = vpow2.f32 %v506_v60  ;;  %v2330_v60 = vsel %vm2299_vm8, 1.0, %v2108_v55  ;;  %v2350_v24 = vrot.slane %v1875_v56, 1  ;;  %v1885_v2 = vsel %vm729_vm14, 1.0, %v2108_v55 }
 0x277   : > { %2075 = vpow2.f32 %v508_v61  ;;  %v795_v13 = vrot.slane %v2330_v60, 1  ;;  %v2367_v4 = vsel %vm730_vm15, 1.0, %v2108_v55  ;;  %v1947_v60 = vld [vmem:[%s2835_s5 + $0x14] sm:$0xf]  ;;  %vm1063_vm8 = vsmask.f32 7424 }
 0x278   : > { %2077 = vpow2.f32 %v510_v63  ;;  %v1303_v63 = vsel %vm340_vm1, %v1926_v50, 0 }
 0x279   : > { %v2068_v6 = vpop.eup %2067  ;;  %2079 = vpow2.f32 %v512_v1  ;;  %1312 = vmatpush.bf16.msra.mxu0 %v1303_v63  ;;  %v2384_v51 = vsel %vm793_vm12, %v2350_v24, %v795_v13 }
 0x27a   : > { %v2070_v10 = vpop.eup %2069  ;;  %v516_v11 = vadd.f32 2.0, %v2068_v6 }
 0x27b   : > { %v2072_v15 = vpop.eup %2071  ;;  %v517_v16 = vadd.f32 2.0, %v2070_v10 }
 0x27c   : > { %v2074_v20 = vpop.eup %2073  ;;  %v524_v21 = vmul.f32 %v2068_v6, %v516_v11  ;;  %v518_v22 = vadd.f32 2.0, %v2072_v15  ;;  %v768_v6 = vunpack.c.l.bf16 %v2325_v57 }
 0x27d   : > { %v2076_v26 = vpop.eup %2075  ;;  %v525_v27 = vmul.f32 %v2070_v10, %v517_v16  ;;  %v519_v28 = vadd.f32 2.0, %v2074_v20 }
 0x27e   : > { %v2078_v30 = vpop.eup %2077  ;;  %v540_v31 = vadd.f32 2.0, %v524_v21  ;;  %v526_v32 = vmul.f32 %v2072_v15, %v518_v22  ;;  %v520_v33 = vadd.f32 2.0, %v2076_v26  ;;  %v532_v10 = vmul.f32 %v524_v21, %v2234_v42 }
 0x27f   : > { %v2080_v36 = vpop.eup %2079  ;;  %v541_v37 = vadd.f32 2.0, %v525_v27  ;;  %v527_v38 = vmul.f32 %v2074_v20, %v519_v28  ;;  %v521_v40 = vadd.f32 2.0, %v2078_v30  ;;  %v533_v11 = vmul.f32 %v525_v27, %v2236_v44 }
 0x280   : > { %2081 = vrcp.f32 %v540_v31  ;;  %v542_v48 = vadd.f32 2.0, %v526_v32  ;;  %v528_v49 = vmul.f32 %v2076_v26, %v520_v33  ;;  %v522_v54 = vadd.f32 2.0, %v2080_v36 }
 0x281   : > { %2083 = vrcp.f32 %v541_v37  ;;  %v543_v53 = vadd.f32 2.0, %v527_v38  ;;  %v529_v59 = vmul.f32 %v2078_v30, %v521_v40  ;;  %v534_v15 = vmul.f32 %v526_v32, %v2238_v45 }
 0x282   : > { %2085 = vrcp.f32 %v542_v48  ;;  %v544_v58 = vadd.f32 2.0, %v528_v49  ;;  %v530_v61 = vmul.f32 %v2080_v36, %v522_v54  ;;  %v535_v18 = vmul.f32 %v527_v38, %v2240_v39  ;;  %v1152_v38 = vld [vmem:[#allocation2 + $0x4] sm:$0x8]  ;;  %v1978_v54 = vld [vmem:[%s2835_s5 + $0x20] sm:$0xf] }
 0x283   : > { %2087 = vrcp.f32 %v543_v53  ;;  %v545_v1 = vadd.f32 2.0, %v529_v59  ;;  %v536_v19 = vmul.f32 %v528_v49, %v2242_v43  ;;  %v537_v23 = vmul.f32 %v529_v59, %v2244_v46  ;;  %v1952_v49 = vld [vmem:[%s2835_s5 + $0x18] sm:$0xf]  ;;  %v1957_v59 = vld [vmem:[%s2835_s5 + $0x1c] sm:$0xf] }
 0x284   : > { %2089 = vrcp.f32 %v544_v58  ;;  %v546_v16 = vadd.f32 2.0, %v530_v61  ;;  %v538_v44 = vmul.f32 %v530_v61, %v2246_v47  ;;  %v1883_v46 = vsel %vm2303_vm9, 1.0, %v2108_v55 }
 0x285   : > { %2091 = vrcp.f32 %v545_v1  ;;  %v1884_v47 = vsel %vm728_vm13, 1.0, %v2108_v55  ;;  %v797_v30 = vrot.slane %v2336_v0, 1  ;;  %v799_v31 = vrot.slane %v2341_v5, 1 }
 0x286   : > { %v2082_v17 = vpop.eup %2081  ;;  %2093 = vrcp.f32 %v546_v16  ;;  %v2372_v32 = vrot.slane %v1883_v46, 7  ;;  %v1024_v36 = vrot.slane %v1884_v47, 7  ;;  %v1026_v37 = vrot.slane %v1885_v2, 7 }
 0x287   : > { %v2084_v20 = vpop.eup %2083  ;;  %v556_v22 = vmul.f32 %v2082_v17, %v532_v10  ;;  %v1028_v48 = vrot.slane %v2367_v4, 7  ;;  %2095 = vpow2.f32 %v2270_v7  ;;  %v818_v53 = vmul.f32 %v2350_v24, %v768_v6 }
 0x288   : > { %v2086_v42 = vpop.eup %2085  ;;  %v557_v21 = vmul.f32 %v2084_v20, %v533_v11  ;;  %v2391_v57 = vsel %vm793_vm12, %v795_v13, %v797_v30  ;;  %v2396_v7 = vsel %vm793_vm12, %v797_v30, %v799_v31  ;;  %v1154_v58 = vunpack.c.l.bf16 %v1152_v38 }
 0x289   : > { %v2088_v45 = vpop.eup %2087  ;;  %v574_v39 = vpack.c.bf16 %v556_v22, %v556_v22  ;;  %v558_v43 = vmul.f32 %v2086_v42, %v534_v15  ;;  %v2407_v61 = vsel %vm1022_vm2, %v2372_v32, %v1024_v36  ;;  %v2410_v63 = vsel %vm1022_vm2, %v1024_v36, %v1026_v37 }
 0x28a   : > { %v2090_v25 = vpop.eup %2089  ;;  %v575_v26 = vpack.c.bf16 %v557_v21, %v557_v21  ;;  %v559_v27 = vmul.f32 %v2088_v45, %v535_v18  ;;  %v1541_v0 = vsel %vm340_vm1, %v1952_v49, 0  ;;  %v631_v1 = vand.u32 7, %v2273_v8 }
 0x28b   : > { %582 = vst.msk [vmem:[#allocation2 + $0x8] sm:$0xf] %vm564_vm6, %v574_v39  ;;  %v576_v3 = vpack.c.bf16 %v558_v43, %v558_v43  ;;  %v560_v12 = vmul.f32 %v2090_v25, %v536_v19  ;;  %v2092_v28 = vpop.eup %2091  ;;  %v2418_v11 = vsel %vm1022_vm2, %v1026_v37, %v1028_v48  ;;  %v1047_v15 = vmul.f32 %v2372_v32, %v997_v41 }
 0x28c   : > { %583 = vst.msk [vmem:[#allocation2 + $0xc] sm:$0xf] %vm564_vm6, %v575_v26  ;;  %v577_v29 = vpack.c.bf16 %v559_v27, %v559_v27  ;;  %v2094_v33 = vpop.eup %2093  ;;  %v561_v35 = vmul.f32 %v2092_v28, %v537_v23  ;;  %v1737_v16 = vsel %vm340_vm1, %v1978_v54, 0  ;;  %v638_v17 = vand.u32 7, %v2276_v9 }
 0x28d   : > { %584 = vst.msk [vmem:[#allocation2 + $0x10] sm:$0xf] %vm564_vm6, %v576_v3  ;;  %v578_v34 = vpack.c.bf16 %v560_v12, %v560_v12  ;;  %v562_v40 = vmul.f32 %v2094_v33, %v538_v44  ;;  %v1615_v22 = vsel %vm340_vm1, %v1957_v59, 0  ;;  %v1425_v23 = vsel %vm340_vm1, %v1947_v60, 0  ;;  %v2439_v46 = vpop.eup %2095 }
 0x28e   : > { %585 = vst.msk [vmem:[#allocation2 + $0x14] sm:$0xf] %vm564_vm6, %v577_v29  ;;  %v579_v50 = vpack.c.bf16 %v561_v35, %v561_v35  ;;  %v1156_v39 = vmul.f32 %v1154_v58, %v2350_v24  ;;  %vm2435_vm3 = vcmp.ne.s32.totalorder %v631_v1, 0  ;;  %vm2452_vm1 = vcmp.ne.s32.totalorder %v638_v17, 0 }
 0x28f   : > { %586 = vst.msk [vmem:[#allocation2 + $0x18] sm:$0xf] %vm564_vm6, %v578_v34  ;;  %v580_v56 = vpack.c.bf16 %v562_v40, %v562_v40  ;;  %vm731_vm5 = vcmp.ne.s32.totalorder %v631_v1, 7  ;;  %vm732_vm7 = vcmp.ne.s32.totalorder %v638_v17, 7 }
 0x290   : > { %587 = vst.msk [vmem:[#allocation2 + $0x1c] sm:$0xf] %vm564_vm6, %v579_v50  ;;  %v1879_v50 = vsel %vm2435_vm3, 1.0, %v2108_v55 }
 0x291   : > { %588 = vst.msk [vmem:[#allocation2 + $0x20] sm:$0xf] %vm564_vm6, %v580_v56 }
 0x292   : > { %v1987_v6 = vld [vmem:[#allocation2 + $0x4] sm:$0xff] }
 0x293   : > { %v760_v10 = vld [vmem:[#allocation2 + $0x4] sm:$0xff]   ;;  %1908 = vmatmul.msk.bf16.vlgmr.msrb.gmra.mxu0 %vm288_vm0, %v1987_v6 }
 0x294   : > { %v2423_v18 = vld [vmem:[#allocation2 + $0x8] sm:$0xff]   ;;  %v769_v19 = vunpack.c.l.bf16 %v760_v10  ;;  %v998_v20 = vunpack.c.h.bf16 %v760_v10  ;;  %1746 = vmatpush.bf16.msrb.mxu0 %v1737_v16 }
 0x295   : > { %v1988_v42 = vld [vmem:[#allocation2 + $0xc] sm:$0xff]  ;;  %v2001_v21 = vunpack.c.l.bf16 %v2423_v18  ;;  %v2430_v44 = vunpack.c.h.bf16 %v2423_v18 }
 0x296   : > { %v990_v45 = vld [vmem:[#allocation2 + $0xc] sm:$0xff]   ;;  %v819_v25 = vmul.f32 %v2384_v51, %v769_v19  ;;  %v1048_v47 = vmul.f32 %v2407_v61, %v998_v20  ;;  %1909 = vmatmul.msk.bf16.vlgmr.msrb.gmra.mxu1 %vm288_vm0, %v1988_v42  ;;  %v1989_v2 = vld [vmem:[#allocation2 + $0x14] sm:$0xff]  ;;  %v1157_v13 = vmul.f32 %v998_v20, %v2384_v51 }
 0x297   : > { %v999_v26 = vunpack.c.l.bf16 %v990_v45  ;;  %v1000_v27 = vunpack.c.h.bf16 %v990_v45  ;;  %v820_v3 = vmul.f32 %v2001_v21, %v2391_v57  ;;  %v821_v12 = vmul.f32 %v2430_v44, %v2396_v7  ;;  %1434 = vmatpush.bf16.msrb.mxu1 %v1425_v23  ;;  %1910 = vmatmul.msk.bf16.vlgmr.msrb.gmra.mxu2 %vm288_vm0, %v1989_v2  ;;  %v2040_v59 = vld [vmem:[#allocation2 + $0x10] sm:$0xff]  }
 0x298   : > { %v827_v28 = vpack.c.bf16 %v819_v25, %v818_v53  ;;  %v1056_v33 = vpack.c.bf16 %v1048_v47, %v1047_v15  ;;  %v1165_v37 = vpack.c.bf16 %v1157_v13, %v1156_v39  ;;  %v1990_v38 = vld [vmem:[#allocation2 + $0x1c] sm:$0xff]  ;;  %1550 = vmatpush.bf16.msrb.mxu2 %v1541_v0  ;;  %v2470_v15 = vsel %vm2452_vm1, 1.0, %v2108_v55 }
 0x299   : > { %v1049_v29 = vmul.f32 %v2410_v63, %v999_v26  ;;  %v1050_v30 = vmul.f32 %v2418_v11, %v1000_v27  ;;  %v828_v34 = vpack.c.bf16 %v821_v12, %v820_v3  ;;  %v1158_v35 = vmul.f32 %v999_v26, %v2391_v57  ;;  %1911 = vmatmul.msk.bf16.vlgmr.msrb.gmra.mxu3 %vm288_vm0, %v1990_v38 }
 0x29a   : > { %v1159_v36 = vmul.f32 %v1000_v27, %v2396_v7  ;;  %v901_v40 = vshrl.u32 %v827_v28, 16  ;;  %v904_v41 = vshll.u32 %v827_v28, 16  ;;  %v1067_v56 = vshll.u32 %v1056_v33, 16  ;;  %1624 = vmatpush.bf16.msrb.mxu3 %v1615_v22 }
 0x29b   : > { %v2461_v49 = vpack.c.bf16 %v1050_v30, %v1049_v29  ;;  %v909_v53 = vshrl.u32 %v828_v34, 16  ;;  %v912_v54 = vshll.u32 %v828_v34, 16  ;;  %v1173_v10 = vshrl.u32 %v1165_v37, 16  ;;  %v992_v29 = vld [vmem:[#allocation2 + $0x14] sm:$0xff]   ;;  %v1991_v34 = vld [vmem:[#allocation2 + $0x8] sm:$0xff] }
 0x29c   : > { %v1166_v58 = vpack.c.bf16 %v1159_v36, %v1158_v35  ;;  %v903_v60 = vrot.slane %v901_v40, 3  ;;  %v906_v6 = vrot.slane %v904_v41, 4  ;;  %v1069_v19 = vrot.slane %v1067_v56, 1 }
 0x29d   : > { %v911_v0 = vrot.slane %v909_v53, 3  ;;  %v914_v16 = vrot.slane %v912_v54, 4  ;;  %v1176_v20 = vshll.u32 %v1165_v37, 16  ;;  %v2472_v42 = vunpack.c.l.bf16 %v2040_v59 }
 0x29e   : > { %v1181_v23 = vshrl.u32 %v1166_v58, 16  ;;  %v2475_v45 = vadd.s32 48, %v2257_v62  ;;  %v2478_v39 = vadd.s32 56, %v2257_v62  ;;  %v907_v43 = vor.u32 %v906_v6, %v903_v60 }
 0x29f   : > { %v1065_v25 = vshrl.u32 %v1056_v33, 16  ;;  %v1072_v26 = vshll.u32 %v2461_v49, 16  ;;  %v1184_v27 = vshll.u32 %v1166_v58, 16  ;;  %v1175_v47 = vrot.slane %v1173_v10, 3 }
 0x2a0   : > { %v2481_v2 = vunpack.c.h.bf16 %v2040_v59  ;;  %v801_v3 = vrot.slane %v1879_v50, 1  ;;  %v803_v22 = vrot.slane %v2470_v15, 1  ;;  %v2484_v12 = vor.u32 %v914_v16, %v911_v0  ;;  %v2041_v0 = vld [vmem:[#allocation2 + $0x18] sm:$0xff]  }
 0x2a1   : > { %v1070_v13 = vor.u32 %v1069_v19, %v1065_v25  ;;  %v1178_v14 = vrot.slane %v1176_v20, 4  ;;  %v1183_v28 = vrot.slane %v1181_v23, 3  ;;  %v1186_v33 = vrot.slane %v1184_v27, 4 }
 0x2a2   : > { %v2489_v62 = vsel %vm793_vm12, %v799_v31, %v801_v3  ;;  %v2492_v30 = vsel %vm793_vm12, %v801_v3, %v803_v22  ;;  %v1887_v31 = vsel %vm731_vm5, 1.0, %v2108_v55  ;;  %v2504_v36 = vsel %vm732_vm7, 1.0, %v2108_v55 }
 0x2a3   : > { %v822_v35 = vmul.f32 %v2472_v42, %v2489_v62  ;;  %v823_v5 = vmul.f32 %v2481_v2, %v2492_v30  ;;  %v1001_v37 = vunpack.c.l.bf16 %v992_v29  ;;  %v1002_v38 = vunpack.c.h.bf16 %v992_v29  ;;  %1943 = vmatmul.msk.bf16.vlgmr.msra.gmra.mxu0 %vm288_vm0, %v1991_v34 }
 0x2a4   : > { %v1030_v8 = vrot.slane %v1887_v31, 7  ;;  %v1074_v1 = vrot.slane %v1072_v26, 1  ;;  %v1032_v17 = vrot.slane %v2504_v36, 7  ;;  %v916_v40 = vsel %vm899_vm4, %v907_v43, %v2484_v12 }
 0x2a5   : > { %v829_v9 = vpack.c.bf16 %v823_v5, %v822_v35  ;;  %v1160_v41 = vmul.f32 %v1001_v37, %v2489_v62  ;;  %v1161_v50 = vmul.f32 %v1002_v38, %v2492_v30  ;;  %v645_v53 = vand.u32 7, %v2475_v45 }
 0x2a6   : > { %1912 = vmatmul.msk.bf16.vlgmr.msra.gmra.mxu1 %vm288_vm0, %v916_v40  ;;  %v1179_v54 = vor.u32 %v1178_v14, %v1175_v47  ;;  %v2514_v56 = vor.u32 %v1186_v33, %v1183_v28  ;;  %v2519_v58 = vsel %vm1022_vm2, %v1028_v48, %v1030_v8  ;;  %v2524_v59 = vsel %vm1022_vm2, %v1030_v8, %v1032_v17  ;;  %v994_v14 = vld [vmem:[#allocation2 + $0x1c] sm:$0xff]  }
 0x2a7   : > { %v1075_v60 = vsel %vm1063_vm8, %v1070_v13, %v1074_v1  ;;  %v918_v6 = vshrl.u32 %v829_v9, 16  ;;  %v652_v10 = vand.u32 7, %v2478_v39  ;;  %v921_v15 = vshll.u32 %v829_v9, 16 }
 0x2a8   : > { %1917 = vmatmul.msk.bf16.vlgmr.msra.gmra.mxu2 %vm288_vm0, %v1075_v60  ;;  %vm701_vm9 = vcmp.ne.s32.totalorder %v645_v53, 0  ;;  %v1051_v4 = vmul.f32 %v2519_v58, %v1001_v37  ;;  %v1052_v48 = vmul.f32 %v2524_v59, %v1002_v38  ;;  %v1167_v16 = vpack.c.bf16 %v1161_v50, %v1160_v41 }
 0x2a9   : > { %vm702_vm10 = vcmp.ne.s32.totalorder %v652_v10, 0  ;;  %v1188_v19 = vsel %vm899_vm4, %v1179_v54, %v2514_v56  ;;  %v1881_v20 = vsel %vm701_vm9, 1.0, %v2108_v55  ;;  %v920_v45 = vrot.slane %v918_v6, 3  ;;  %v1992_v54 = vld [vmem:[#allocation2 + $0x10] sm:$0xff] }
 0x2aa   : > { %v1882_v23 = vsel %vm702_vm10, 1.0, %v2108_v55  ;;  %1922 = vmatmul.msk.bf16.vlgmr.msra.gmra.mxu3 %vm288_vm0, %v1188_v19  ;;  %v2536_v39 = vunpack.c.l.bf16 %v2041_v0  ;;  %v2538_v43 = vunpack.c.h.bf16 %v2041_v0  ;;  %v805_v25 = vrot.slane %v1881_v20, 1  ;;  %v1464_v19 = vld [vmem:[#allocation2 + $0x8] sm:$0x8] }
 0x2ab   : > { %v923_v26 = vrot.slane %v921_v15, 4  ;;  %v2540_v27 = vrot.slane %v1882_v23, 1  ;;  %vm733_vm11 = vcmp.ne.s32.totalorder %v645_v53, 7  ;;  %vm734_vm13 = vcmp.ne.s32.totalorder %v652_v10, 7 }
 0x2ac   : > { %v2542_v47 = vpack.c.bf16 %v1052_v48, %v1051_v4  ;;  %v1190_v3 = vshrl.u32 %v1167_v16, 16  ;;  %v2545_v13 = vsel %vm793_vm12, %v803_v22, %v805_v25  ;;  %v523_v28 = vadd.f32 2.0, %v2439_v46 }
 0x2ad   : > { %v1193_v29 = vshll.u32 %v1167_v16, 16  ;;  %v2550_v33 = vsel %vm793_vm12, %v805_v25, %v2540_v27  ;;  %v1889_v34 = vsel %vm733_vm11, 1.0, %v2108_v55  ;;  %v1890_v35 = vsel %vm734_vm13, 1.0, %v2108_v55 }
 0x2ae   : > { %v824_v5 = vmul.f32 %v2536_v39, %v2545_v13  ;;  %v825_v31 = vmul.f32 %v2538_v43, %v2550_v33  ;;  %v2558_v22 = vor.u32 %v923_v26, %v920_v45  ;;  %v1076_v37 = vshrl.u32 %v2461_v49, 16  ;;  %v767_v45 = vld [vmem:[#allocation2 + $0x20] sm:$0xf] }
 0x2af   : > { %v1003_v38 = vunpack.c.l.bf16 %v994_v14  ;;  %v1004_v8 = vunpack.c.h.bf16 %v994_v14  ;;  %v1080_v9 = vshll.u32 %v2542_v47, 16  ;;  %v1034_v40 = vrot.slane %v1889_v34, 7 }
 0x2b0   : > { %v2562_v41 = vrot.slane %v1890_v35, 7  ;;  %v531_v50 = vmul.f32 %v2439_v46, %v523_v28  ;;  %v1192_v55 = vrot.slane %v1190_v3, 3  ;;  %v1195_v53 = vrot.slane %v1193_v29, 4 }
 0x2b1   : > { %v1360_v60 = vmul.f32 %v2001_v21, %v2372_v32  ;;  %v1078_v6 = vor.u32 %v1076_v37, %v1074_v1  ;;  %v830_v10 = vpack.c.bf16 %v825_v31, %v824_v5  ;;  %v925_v49 = vsel %vm899_vm4, %v2484_v12, %v2558_v22 }
 0x2b2   : > { %v1162_v15 = vmul.f32 %v1003_v38, %v2545_v13  ;;  %v1163_v0 = vmul.f32 %v1004_v8, %v2550_v33  ;;  %v547_v46 = vadd.f32 2.0, %v531_v50  ;;  %v1082_v4 = vrot.slane %v1080_v9, 1 }
 0x2b3   : > { %1944 = vmatmul.msk.bf16.gmra.mxu0 %vm288_vm0, %v1992_v54  ;;  %v2577_v48 = vsel %vm1022_vm2, %v1032_v17, %v1034_v40  ;;  %v2581_v18 = vsel %vm1022_vm2, %v1034_v40, %v2562_v41  ;;  %v1361_v21 = vmul.f32 %v2430_v44, %v2407_v61  ;;  %v2586_v12 = vor.u32 %v1195_v53, %v1192_v55 }
 0x2b4   : > { %2097 = vrcp.f32 %v547_v46  ;;  %v1083_v1 = vsel %vm1063_vm8, %v1078_v6, %v1082_v4  ;;  %v927_v16 = vshrl.u32 %v830_v10, 16  ;;  %v930_v36 = vshll.u32 %v830_v10, 16 }
 0x2b5   : > { %v1053_v17 = vmul.f32 %v2577_v48, %v1003_v38  ;;  %v1054_v20 = vmul.f32 %v2581_v18, %v1004_v8  ;;  %v1168_v23 = vpack.c.bf16 %v1163_v0, %v1162_v15  ;;  %v2592_v25 = vpack.c.bf16 %v1361_v21, %v1360_v60 }
 0x2b6   : > { %1913 = vmatmul.msk.bf16.gmra.mxu1 %vm288_vm0, %v925_v49  ;;  %v1197_v26 = vsel %vm899_vm4, %v2514_v56, %v2586_v12  ;;  %v1466_v3 = vunpack.c.l.bf16 %v1464_v19  ;;  %v929_v14 = vrot.slane %v927_v16, 3  ;;  %v776_v28 = vunpack.c.l.bf16 %v767_v45 }
 0x2b7   : > { %v539_v29 = vmul.f32 %v531_v50, %v2252_v52  ;;  %v932_v35 = vrot.slane %v930_v36, 4  ;;  %v2599_v5 = vpack.c.bf16 %v1054_v20, %v1053_v17  ;;  %v1199_v31 = vshrl.u32 %v1168_v23, 16 }
 0x2b8   : > { %1918 = vmatmul.msk.bf16.gmra.mxu2 %vm288_vm0, %v1083_v1  ;;  %v1468_v37 = vmul.f32 %v1466_v3, %v2350_v24  ;;  %v1202_v38 = vshll.u32 %v1168_v23, 16  ;;  %v1469_v9 = vmul.f32 %v2430_v44, %v2384_v51  ;;  %v1470_v56 = vmul.f32 %v2472_v42, %v2391_v57  ;;  %v1993_v44 = vld [vmem:[#allocation2 + $0x18] sm:$0xff]  ;;  %v1654_v3 = vld [vmem:[#allocation2 + $0xc] sm:$0xf] }
 0x2b9   : > { %v1471_v40 = vmul.f32 %v2481_v2, %v2396_v7  ;;  %v826_v52 = vmul.f32 %v2540_v27, %v776_v28  ;;  %v2609_v53 = vor.u32 %v932_v35, %v929_v14  ;;  %v1084_v54 = vshrl.u32 %v2542_v47, 16 }
 0x2ba   : > { %1923 = vmatmul.msk.bf16.gmra.mxu3 %vm288_vm0, %v1197_v26  ;;  %v2098_v34 = vpop.eup %2097  ;;  %v1477_v55 = vpack.c.bf16 %v1469_v9, %v1468_v37  ;;  %v1088_v24 = vshll.u32 %v2599_v5, 16  ;;  %v1201_v6 = vrot.slane %v1199_v31, 3  ;;  %v1204_v10 = vrot.slane %v1202_v38, 4 }
 0x2bb   : > { %v563_v8 = vmul.f32 %v2098_v34, %v539_v29  ;;  %v1478_v60 = vpack.c.bf16 %v1471_v40, %v1470_v56  ;;  %v1086_v15 = vor.u32 %v1084_v54, %v1082_v4  ;;  %v831_v0 = vpack.c.bf16 %v826_v52, %v826_v52 }
 0x2bc   : > { %v1485_v51 = vshrl.u32 %v1477_v55, 16  ;;  %v1488_v57 = vshll.u32 %v1477_v55, 16  ;;  %v934_v16 = vsel %vm899_vm4, %v2558_v22, %v2609_v53  ;;  %v1090_v19 = vrot.slane %v1088_v24, 1 }
 0x2bd   : > { %v581_v50 = vpack.c.bf16 %v563_v8, %v563_v8  ;;  %v1493_v49 = vshrl.u32 %v1478_v60, 16  ;;  %v1496_v7 = vshll.u32 %v1478_v60, 16  ;;  %v2618_v36 = vor.u32 %v1204_v10, %v1201_v6 }
 0x2be   : > { %v1487_v46 = vrot.slane %v1485_v51, 3  ;;  %v1490_v21 = vrot.slane %v1488_v57, 4  ;;  %v1472_v4 = vmul.f32 %v2536_v39, %v2489_v62  ;;  %v1473_v23 = vmul.f32 %v2538_v43, %v2492_v30 }
 0x2bf   : > { %589 = vst.msk [vmem:[#allocation2 + $0x24] sm:$0xf] %vm564_vm6, %v581_v50  ;;  %v1495_v1 = vrot.slane %v1493_v49, 3  ;;  %v1498_v47 = vrot.slane %v1496_v7, 4  ;;  %v1091_v45 = vsel %vm1063_vm8, %v1086_v15, %v1090_v19  ;;  %v936_v26 = vshrl.u32 %v831_v0, 16 }
 0x2c0   : > { %v1491_v17 = vor.u32 %v1490_v21, %v1487_v46  ;;  %v939_v22 = vshll.u32 %v831_v0, 16  ;;  %v1479_v34 = vpack.c.bf16 %v1473_v23, %v1472_v4  ;;  %v1206_v62 = vsel %vm899_vm4, %v2586_v12, %v2618_v36 }
 0x2c1   : > { %v1499_v20 = vor.u32 %v1498_v47, %v1495_v1  ;;  %v1663_v37 = vunpack.c.l.bf16 %v1654_v3  ;;  %v938_v56 = vrot.slane %v936_v26, 3  ;;  %v1673_v10 = vmul.f32 %v2472_v42, %v2407_v61 }
 0x2c2   : > { %v1502_v38 = vshrl.u32 %v1479_v34, 16  ;;  %v1505_v8 = vshll.u32 %v1479_v34, 16  ;;  %v941_v50 = vrot.slane %v939_v22, 4  ;;  %v1092_v46 = vshrl.u32 %v2599_v5, 16 }
 0x2c3   : > { %1945 = vmatmul.msk.bf16.gmra.mxu0 %vm288_vm0, %v1993_v44  ;;  %v2630_v29 = vsel %vm899_vm4, %v1491_v17, %v1499_v20  ;;  %v1672_v6 = vmul.f32 %v1663_v37, %v2372_v32  ;;  %v1675_v5 = vmul.f32 %v2536_v39, %v2418_v11  ;;  %v1362_v22 = vmul.f32 %v2472_v42, %v2410_v63 }
 0x2c4   : > { %v1504_v55 = vrot.slane %v1502_v38, 3  ;;  %v1507_v54 = vrot.slane %v1505_v8, 4  ;;  %v942_v15 = vor.u32 %v941_v50, %v938_v56  ;;  %v1094_v17 = vor.u32 %v1092_v46, %v1090_v19 }
 0x2c5   : > { %vm568_vm6 = vcmask 57344   ;;  %vm569_vm12 = vsmask.f32 256 }
 0x2c6   : > { %1914 = vmatmul.msk.bf16.gmra.mxu1 %vm288_vm0, %v934_v16  ;;  %v996_v14 = vld [vmem:[#allocation2 + $0x24] sm:$0x1]  ;;  %v1508_v51 = vor.u32 %v1507_v54, %v1504_v55  ;;  %v1681_v16 = vpack.c.bf16 %v1673_v10, %v1672_v6  ;;  %v943_v23 = vsel %vm899_vm4, %v2609_v53, %v942_v15  ;;  %v1363_v53 = vmul.f32 %v2481_v2, %v2418_v11  ;;  %vm570_vm14 = vmand %vm568_vm6, %vm569_vm12 }
 0x2c7   : > { %v2627_v28 = vld [vmem:[#allocation2 + $0x24] sm:$0xff]   ;;  %v1005_v35 = vunpack.c.l.bf16 %v996_v14 }
 0x2c8   : > { %1919 = vmatmul.msk.bf16.gmra.mxu2 %vm288_vm0, %v1091_v45  ;;  %v1155_v30 = vunpack.c.l.bf16 %v2627_v28  ;;  %v2048_v31 = vld [vmem:[#allocation2 + $0x20] sm:$0xff]   ;;  %v2651_v0 = vsel %vm899_vm4, %v1499_v20, %v1508_v51  ;;  %v1465_v20 = vld [vmem:[#allocation2 + $0x28] sm:$0xf]  ;;  %v1691_v14 = vshll.u32 %v1681_v16, 16 }
 0x2c9   : > { %v2636_v9 = vunpack.c.l.bf16 %v2048_v31  ;;  %v1055_v40 = vmul.f32 %v2562_v41, %v1005_v35  ;;  %v2641_v12 = vunpack.c.h.bf16 %v2048_v31  ;;  %v1994_v61 = vld [vmem:[#allocation2 + $0x20] sm:$0xff]  ;;  %v1467_v35 = vunpack.c.l.bf16 %v1465_v20 }
 0x2ca   : > { %1924 = vmatmul.msk.bf16.gmra.mxu3 %vm288_vm0, %v1206_v62  ;;  %v1164_v52 = vmul.f32 %v1155_v30, %v2540_v27  ;;  %v571_v30 = vld [vmem:[#allocation2 + $0x2c] sm:$0x1]  ;;  %v1379_v31 = vshll.u32 %v2592_v25, 16  ;;  %v1693_v8 = vrot.slane %v1691_v14, 1 }
 0x2cb   : > { %v1060_v24 = vpack.c.bf16 %v1055_v40, %v1055_v40  ;;  %v1474_v57 = vmul.f32 %v2636_v9, %v2545_v13  ;;  %v1475_v7 = vmul.f32 %v2641_v12, %v2550_v33  ;;  %v1674_v33 = vmul.f32 %v2481_v2, %v2410_v63 }
 0x2cc   : > { %v1169_v60 = vpack.c.bf16 %v1164_v52, %v1164_v52  ;;  %v1476_v63 = vmul.f32 %v1467_v35, %v2540_v27  ;;  %v572_v42 = vsel %vm570_vm14, 0, %v571_v30  ;;  %v1370_v2 = vpack.c.bf16 %v1363_v53, %v1362_v22 }
 0x2cd   : > { %v1096_v21 = vshll.u32 %v1060_v24, 16  ;;  %v1480_v32 = vpack.c.bf16 %v1475_v7, %v1474_v57  ;;  %v1682_v37 = vpack.c.bf16 %v1675_v5, %v1674_v33  ;;  %573 = vst [vmem:[#allocation2 + $0x2c] sm:$0x1] %v572_v42  ;;  %v1381_v40 = vrot.slane %v1379_v31, 1 }
 0x2ce   : > { %v1208_v44 = vshrl.u32 %v1169_v60, 16  ;;  %v1211_v49 = vshll.u32 %v1169_v60, 16  ;;  %v1481_v56 = vpack.c.bf16 %v1476_v63, %v1476_v63  ;;  %v1689_v52 = vshrl.u32 %v1681_v16, 16 }
 0x2cf   : > { %v1511_v4 = vshrl.u32 %v1480_v32, 16  ;;  %v1514_v13 = vshll.u32 %v1480_v32, 16  ;;  %v1098_v45 = vrot.slane %v1096_v21, 1  ;;  %v1696_v50 = vshll.u32 %v1682_v37, 16 }
 0x2d0   : > { %v1210_v1 = vrot.slane %v1208_v44, 3  ;;  %v1213_v47 = vrot.slane %v1211_v49, 4  ;;  %v1520_v55 = vshrl.u32 %v1481_v56, 16  ;;  %v1523_v54 = vshll.u32 %v1481_v56, 16 }
 0x2d1   : > { %v1513_v26 = vrot.slane %v1511_v4, 3  ;;  %v1516_v3 = vrot.slane %v1514_v13, 4  ;;  %v1099_v34 = vsel %vm1063_vm8, %v1094_v17, %v1098_v45  ;;  %v1377_v24 = vshrl.u32 %v2592_v25, 16 }
 0x2d2   : > { %v1214_v19 = vor.u32 %v1213_v47, %v1210_v1  ;;  %v1384_v60 = vshll.u32 %v1370_v2, 16  ;;  %v1694_v27 = vor.u32 %v1693_v8, %v1689_v52  ;;  %v1522_v6 = vrot.slane %v1520_v55, 3  ;;  %v1995_v1 = vld [vmem:[#allocation2 + $0xc] sm:$0xff] }
 0x2d3   : > { %1946 = vmatmul.msk.bf16.gmra.mxu0 %vm288_vm0, %v1994_v61  ;;  %v1517_v62 = vor.u32 %v1516_v3, %v1513_v26  ;;  %v1525_v10 = vrot.slane %v1523_v54, 4  ;;  %v1676_v25 = vmul.f32 %v2538_v43, %v2519_v58  ;;  %v1677_v46 = vmul.f32 %v2636_v9, %v2524_v59  ;;  %v1996_v26 = vld [vmem:[#allocation2 + $0x14] sm:$0xff] }
 0x2d4   : > { %v1215_v11 = vsel %vm899_vm4, %v2618_v36, %v1214_v19  ;;  %v1698_v36 = vrot.slane %v1696_v50, 1  ;;  %v1386_v44 = vrot.slane %v1384_v60, 1  ;;  %v1364_v21 = vmul.f32 %v2536_v39, %v2519_v58  ;;  %v1662_v22 = vld [vmem:[#allocation2 + $0x2c] sm:$0x1] }
 0x2d5   : > { %v2670_v38 = vsel %vm899_vm4, %v1508_v51, %v1517_v62  ;;  %v1382_v51 = vor.u32 %v1381_v40, %v1377_v24  ;;  %v1526_v57 = vor.u32 %v1525_v10, %v1522_v6  ;;  %v1365_v32 = vmul.f32 %v2538_v43, %v2524_v59  ;;  %v1998_v10 = vld [vmem:[#allocation2 + $0x24] sm:$0xff] }
 0x2d6   : > { %1915 = vmatmul.msk.bf16.gmra.mxu1 %vm288_vm0, %v943_v23  ;;  %v1699_v49 = vsel %vm1063_vm8, %v1694_v27, %v1698_v36  ;;  %v1683_v47 = vpack.c.bf16 %v1677_v46, %v1676_v25  ;;  %v1700_v16 = vshrl.u32 %v1682_v37, 16  ;;  %v1388_v4 = vshrl.u32 %v1370_v2, 16  ;;  %v1997_v2 = vld [vmem:[#allocation2 + $0x1c] sm:$0xff] }
 0x2d7   : > { %v2679_v7 = vsel %vm899_vm4, %v1517_v62, %v1526_v57  ;;  %v1387_v15 = vsel %vm1063_vm8, %v1382_v51, %v1386_v44  ;;  %v1371_v61 = vpack.c.bf16 %v1365_v32, %v1364_v21  ;;  %v1670_v58 = vunpack.c.h.bf16 %v2627_v28 }
 0x2d8   : > { %1920 = vmatmul.msk.bf16.gmra.mxu2 %vm288_vm0, %v1099_v34  ;;  %v1704_v17 = vshll.u32 %v1683_v47, 16  ;;  %v1702_v23 = vor.u32 %v1700_v16, %v1698_v36  ;;  %v1390_v33 = vor.u32 %v1388_v4, %v1386_v44  ;;  %v1366_v5 = vmul.f32 %v2636_v9, %v2577_v48  ;;  %v1350_v34 = vld [vmem:[#allocation2 + $0x28] sm:$0x1] }
 0x2d9   : > { %v1392_v13 = vshll.u32 %v1371_v61, 16  ;;  %v1679_v45 = vmul.f32 %v1670_v58, %v2581_v18  ;;  %v1367_v28 = vmul.f32 %v2641_v12, %v2581_v18  ;;  %v1708_v53 = vshrl.u32 %v1683_v47, 16 }
 0x2da   : > { %1925 = vmatmul.msk.bf16.gmra.mxu3 %vm288_vm0, %v1215_v11  ;;  %v1706_v20 = vrot.slane %v1704_v17, 1  ;;  %v1396_v62 = vshrl.u32 %v1371_v61, 16  ;;  %v1671_v31 = vunpack.c.l.bf16 %v1662_v22  ;;  %v1359_v37 = vunpack.c.l.bf16 %v1350_v34 }
 0x2db   : > { %v1394_v39 = vrot.slane %v1392_v13, 1  ;;  %v1372_v19 = vpack.c.bf16 %v1367_v28, %v1366_v5 }
 0x2dc   : > { %v1707_v59 = vsel %vm1063_vm8, %v1702_v23, %v1706_v20  ;;  %v1710_v30 = vor.u32 %v1708_v53, %v1706_v20  ;;  %v1368_v11 = vmul.f32 %v1359_v37, %v2562_v41 }
 0x2dd   : > { %v1395_v43 = vsel %vm1063_vm8, %v1390_v33, %v1394_v39  ;;  %v1400_v35 = vshll.u32 %v1372_v19, 16  ;;  %v1404_v50 = vshrl.u32 %v1372_v19, 16 }
 0x2de   : > { %v1373_v8 = vpack.c.bf16 %v1368_v11, %v1368_v11 }
 0x2df   : > { %v1402_v18 = vrot.slane %v1400_v35, 1 }
 0x2e0   : > { %v1408_v40 = vshll.u32 %v1373_v8, 16 }
 0x2e1   : > { %v1406_v60 = vor.u32 %v1404_v50, %v1402_v18 }
 0x2e2   : > { %v1410_v27 = vrot.slane %v1408_v40, 1 }
 0x2e3   : > { %1979 = vmatmul.msk.bf16.vlgmr.msrb.gmra.mxu0 %vm288_vm0, %v1699_v49 }
 0x2e6   : > { %1948 = vmatmul.msk.bf16.vlgmr.msrb.gmra.mxu1 %vm288_vm0, %v1387_v15 }
 0x2e8   : > { %1953 = vmatmul.msk.bf16.vlgmr.msrb.gmra.mxu2 %vm288_vm0, %v2630_v29  ;;  %v1678_v29 = vmul.f32 %v2641_v12, %v2577_v48  ;;  %v1398_v48 = vor.u32 %v1396_v62, %v1394_v39 }
 0x2ea   : > { %1974 = vmatmul.msk.bf16.vlgmr.msrb.gmra.mxu3 %vm288_vm0, %v1995_v1  ;;  %v1684_v3 = vpack.c.bf16 %v1679_v45, %v1678_v29  ;;  %v1403_v63 = vsel %vm1063_vm8, %v1398_v48, %v1402_v18 }
 0x2ec   : > { %v1712_v14 = vshll.u32 %v1684_v3, 16  ;;  %v1716_v52 = vshrl.u32 %v1684_v3, 16 }
 0x2ee   : > { %v1714_v9 = vrot.slane %v1712_v14, 1 }
 0x2f0   : > { %v1715_v12 = vsel %vm1063_vm8, %v1710_v30, %v1714_v9  ;;  %v1718_v55 = vor.u32 %v1716_v52, %v1714_v9 }
 0x2f3   : > { %1980 = vmatmul.msk.bf16.gmra.mxu0 %vm288_vm0, %v1707_v59 }
 0x2f6   : > { %1949 = vmatmul.msk.bf16.gmra.mxu1 %vm288_vm0, %v1395_v43 }
 0x2f8   : > { %1954 = vmatmul.msk.bf16.gmra.mxu2 %vm288_vm0, %v2651_v0  ;;  %v1680_v0 = vmul.f32 %v1671_v31, %v2562_v41 }
 0x2fa   : > { %1975 = vmatmul.msk.bf16.gmra.mxu3 %vm288_vm0, %v1996_v26  ;;  %v1685_v42 = vpack.c.bf16 %v1680_v0, %v1680_v0 }
 0x2fc   : > { %v1720_v56 = vshll.u32 %v1685_v42, 16 }
 0x2fe   : > { %v1722_v54 = vrot.slane %v1720_v56, 1 }
 0x300   : > { %v1723_v6 = vsel %vm1063_vm8, %v1718_v55, %v1722_v54  ;;  %v2773_v55 = vld [vmem:[%s2836_s6] ss:$0 sm:$0xff] }
 0x303   : > { %1981 = vmatmul.msk.bf16.gmra.mxu0 %vm288_vm0, %v1715_v12 }
 0x306   : > { %1950 = vmatmul.msk.bf16.gmra.mxu1 %vm288_vm0, %v1403_v63 }
 0x308   : > { %1955 = vmatmul.msk.bf16.gmra.mxu2 %vm288_vm0, %v2670_v38  ;;  %v1411_v38 = vsel %vm1063_vm8, %v1406_v60, %v1410_v27 }
 0x30a   : > { %1976 = vmatmul.msk.bf16.gmra.mxu3 %vm288_vm0, %v1997_v2 }
 0x310   : > { %v879_v24 = vpop.f32.mrf.mxu0 }
 0x313   : > { %v884_v41 = vpop.f32.mrf.mxu1  ;;  %1982 = vmatmul.msk.bf16.gmra.mxu0 %vm288_vm0, %v1723_v6 }
 0x316   : > { %1951 = vmatmul.msk.bf16.gmra.mxu1 %vm288_vm0, %v1411_v38 }
 0x318   : > { %1956 = vmatmul.msk.bf16.gmra.mxu2 %vm288_vm0, %v2679_v7  ;;  %v881_v51 = vpop.f32.mrf.mxu0 }
 0x31a   : > { %1977 = vmatmul.msk.bf16.gmra.mxu3 %vm288_vm0, %v1998_v10  ;;  %v2726_v36 = vpop.f32.mrf.mxu2  ;;  %vm1796_vm0 = vcmask 125952  }
 0x31b   : > { %v2728_v57 = vpop.f32.mrf.mxu1 }
 0x31c   : > { %v2730_v44 = vpop.f32.mrf.mxu3 }
 0x320   : > { %v1314_v49 = vpop.f32.mrf.mxu0 }
 0x322   : > { %v2732_v15 = vpop.f32.mrf.mxu2 }
 0x323   : > { %v968_v25 = vpop.f32.mrf.mxu1 }
 0x324   : > { %v2734_v46 = vpop.f32.mrf.mxu3  ;;  %v969_v34 = vadd.f32 %v968_v25, %v879_v24 }
 0x328   : > { %v1316_v21 = vpop.f32.mrf.mxu0 }
 0x32b   : > { %v1124_v32 = vpop.f32.mrf.mxu2  ;;  %v970_v1 = vpop.f32.mrf.mxu1 }
 0x32c   : > { %v1144_v35 = vadd.f32 %v1124_v32, %v969_v34  ;;  %v971_v37 = vadd.f32 %v970_v1, %v881_v51 }
 0x32d   : > { %v1240_v7 = vpop.f32.mrf.mxu3 }
 0x32e   : > { %v1260_v9 = vadd.f32 %v1240_v7, %v1144_v35 }
 0x330   : > { %v2736_v47 = vpop.f32.mrf.mxu0  ;;  %v1334_v0 = vadd.f32 %v1314_v49, %v1260_v9 }
 0x333   : > { %v1126_v61 = vpop.f32.mrf.mxu2  ;;  %v973_v16 = vpop.f32.mrf.mxu1 }
 0x334   : > { %v1145_v12 = vadd.f32 %v1126_v61, %v971_v37  ;;  %v974_v40 = vadd.f32 %v973_v16, %v884_v41 }
 0x335   : > { %v1242_v17 = vpop.f32.mrf.mxu3 }
 0x336   : > { %v1261_v2 = vadd.f32 %v1242_v17, %v1145_v12 }
 0x338   : > { %v2738_v4 = vpop.f32.mrf.mxu0  ;;  %v1335_v24 = vadd.f32 %v1316_v21, %v1261_v2 }
 0x33b   : > { %v1129_v13 = vpop.f32.mrf.mxu2  ;;  %v975_v23 = vpop.f32.mrf.mxu1 }
 0x33c   : > { %v1146_v54 = vadd.f32 %v1129_v13, %v974_v40  ;;  %v976_v25 = vadd.f32 %v975_v23, %v2728_v57 }
 0x33d   : > { %v1245_v33 = vpop.f32.mrf.mxu3 }
 0x33e   : > { %v1262_v51 = vadd.f32 %v1245_v33, %v1146_v54 }
 0x340   : > { %v2740_v20 = vpop.f32.mrf.mxu0  ;;  %v1336_v61 = vadd.f32 %v2736_v47, %v1262_v51 }
 0x343   : > { %v1131_v58 = vpop.f32.mrf.mxu2  ;;  %v978_v39 = vpop.f32.mrf.mxu1 }
 0x344   : > { %v1147_v7 = vadd.f32 %v1131_v58, %v976_v25  ;;  %v979_v57 = vadd.f32 %v978_v39, %v2726_v36 }
 0x345   : > { %v1247_v59 = vpop.f32.mrf.mxu3 }
 0x346   : > { %v1263_v35 = vadd.f32 %v1247_v59, %v1147_v7 }
 0x348   : > { %v2742_v43 = vpop.f32.mrf.mxu0  ;;  %v1337_v47 = vadd.f32 %v2738_v4, %v1263_v35 }
 0x34b   : > { %v2744_v29 = vpop.f32.mrf.mxu2  ;;  %v2746_v45 = vpop.f32.mrf.mxu1 }
 0x34c   : > { %v1148_v58 = vadd.f32 %v2744_v29, %v979_v57  ;;  %v981_v39 = vadd.f32 %v2746_v45, %v2732_v15 }
 0x34d   : > { %v2748_v5 = vpop.f32.mrf.mxu3 }
 0x350   : > { %v2750_v28 = vpop.f32.mrf.mxu0 }
 0x353   : > { %v2752_v26 = vpop.f32.mrf.mxu2  ;;  %v2754_v3 = vpop.f32.mrf.mxu1 }
 0x354   : > { %v1149_v4 = vadd.f32 %v2752_v26, %v981_v39  ;;  %v984_v45 = vadd.f32 %v2754_v3, %v2730_v44 }
 0x355   : > { %v2756_v19 = vpop.f32.mrf.mxu3 }
 0x358   : > { %v2758_v22 = vpop.f32.mrf.mxu0 }
 0x35b   : > { %v2760_v53 = vpop.f32.mrf.mxu2  ;;  %v2762_v14 = vpop.f32.mrf.mxu1 }
 0x35c   : > { %v986_v3 = vadd.f32 %v2762_v14, %v2734_v46 }
 0x35d   : > { %v2764_v62 = vpop.f32.mrf.mxu3 }
 0x360   : > { %v1748_v30 = vpop.f32.mrf.mxu0 }
 0x363   : > { %v2766_v31 = vpop.f32.mrf.mxu2  ;;  %v1436_v48 = vpop.f32.mrf.mxu1 }
 0x364   : > { %v1456_v63 = vadd.f32 %v1436_v48, %v1334_v0 }
 0x365   : > { %v2768_v18 = vpop.f32.mrf.mxu3 }
 0x368   : > { %v1750_v56 = vpop.f32.mrf.mxu0 }
 0x36b   : > { %v1552_v11 = vpop.f32.mrf.mxu2  ;;  %v1438_v42 = vpop.f32.mrf.mxu1 }
 0x36c   : > { %v1572_v8 = vadd.f32 %v1552_v11, %v1456_v63  ;;  %v1457_v27 = vadd.f32 %v1438_v42, %v1335_v24  ;;  %v1264_v42 = vadd.f32 %v2748_v5, %v1148_v58 }
 0x36d   : > { %v1626_v52 = vpop.f32.mrf.mxu3 }
 0x36e   : > { %v1646_v50 = vadd.f32 %v1626_v52, %v1572_v8 }
 0x370   : > { %v1768_v60 = vadd.f32 %v1748_v30, %v1646_v50  ;;  %v1753_v32 = vpop.f32.mrf.mxu0 }
 0x372   : > { %v1780_v6 = vadd.f32 %v2773_v55, %v1768_v60  ;;  %v1265_v60 = vadd.f32 %v2756_v19, %v1149_v4 }
 0x373   : > { %v1554_v38 = vpop.f32.mrf.mxu2  ;;  %v1441_v10 = vpop.f32.mrf.mxu1 }
 0x374   : > { %v1573_v41 = vadd.f32 %v1554_v38, %v1457_v27  ;;  %v1788_v49 = vpack.c.bf16 %v1780_v6, %v1780_v6  ;;  %v1458_v17 = vadd.f32 %v1441_v10, %v1336_v61  ;;  %v1339_v38 = vadd.f32 %v2742_v43, %v1265_v60 }
 0x375   : > { %v1628_v21 = vpop.f32.mrf.mxu3  ;;  %v1151_v43 = vadd.f32 %v2766_v31, %v986_v3 }
 0x376   : > { %1797 = vst.msk [vmem:[%s2780_s17] sm:$0xf] %vm1796_vm0, %v1788_v49  ;;  %v1647_v1 = vadd.f32 %v1628_v21, %v1573_v41 }
 0x378   : > { %v1769_v16 = vadd.f32 %v1750_v56, %v1647_v1  ;;  %v1755_v37 = vpop.f32.mrf.mxu0  ;;  %v1338_v56 = vadd.f32 %v2740_v20, %v1264_v42  ;;  %v1150_v20 = vadd.f32 %v2760_v53, %v984_v45 }
 0x37a   : > { %v1781_v13 = vadd.f32 %v2773_v55, %v1769_v16  ;;  %v1266_v19 = vadd.f32 %v2764_v62, %v1150_v20 }
 0x37b   : > { %v1557_v33 = vpop.f32.mrf.mxu2  ;;  %v1443_v34 = vpop.f32.mrf.mxu1 }
 0x37c   : > { %v1574_v30 = vadd.f32 %v1557_v33, %v1458_v17  ;;  %v1789_v48 = vpack.c.bf16 %v1781_v13, %v1781_v13  ;;  %v1459_v0 = vadd.f32 %v1443_v34, %v1337_v47  ;;  %v1340_v7 = vadd.f32 %v2750_v28, %v1266_v19 }
 0x37d   : > { %v1631_v23 = vpop.f32.mrf.mxu3  ;;  %v1267_v13 = vadd.f32 %v2768_v18, %v1151_v43 }
 0x37e   : > { %1798 = vst.msk [vmem:[%s2780_s17 + $0x4] sm:$0xf] %vm1796_vm0, %v1789_v48  ;;  %v1648_v9 = vadd.f32 %v1631_v23, %v1574_v30 }
 0x37f   : > { %v1341_v31 = vadd.f32 %v2758_v22, %v1267_v13 }
 0x380   : > { %v1770_v12 = vadd.f32 %v1753_v32, %v1648_v9  ;;  %v1758_v50 = vpop.f32.mrf.mxu0 }
 0x382   : > { %v1782_v63 = vadd.f32 %v2773_v55, %v1770_v12 }
 0x383   : > { %v1559_v11 = vpop.f32.mrf.mxu2  ;;  %v1446_v59 = vpop.f32.mrf.mxu1 }
 0x384   : > { %v1575_v2 = vadd.f32 %v1559_v11, %v1459_v0  ;;  %v1790_v36 = vpack.c.bf16 %v1782_v63, %v1782_v63  ;;  %v1460_v52 = vadd.f32 %v1446_v59, %v1338_v56 }
 0x385   : > { %v1633_v8 = vpop.f32.mrf.mxu3 }
 0x386   : > { %1799 = vst.msk [vmem:[%s2780_s17 + $0x8] sm:$0xf] %vm1796_vm0, %v1790_v36  ;;  %v1649_v29 = vadd.f32 %v1633_v8, %v1575_v2 }
 0x388   : > { %v1771_v40 = vadd.f32 %v1755_v37, %v1649_v29  ;;  %v1760_v25 = vpop.f32.mrf.mxu0 }
 0x38a   : > { %v1783_v54 = vadd.f32 %v2773_v55, %v1771_v40 }
 0x38b   : > { %v1562_v5 = vpop.f32.mrf.mxu2  ;;  %v1448_v24 = vpop.f32.mrf.mxu1 }
 0x38c   : > { %v1576_v27 = vadd.f32 %v1562_v5, %v1460_v52  ;;  %v1791_v15 = vpack.c.bf16 %v1783_v54, %v1783_v54  ;;  %v1461_v51 = vadd.f32 %v1448_v24, %v1339_v38 }
 0x38d   : > { %v1636_v6 = vpop.f32.mrf.mxu3 }
 0x38e   : > { %1800 = vst.msk [vmem:[%s2780_s17 + $0xc] sm:$0xf] %vm1796_vm0, %v1791_v15  ;;  %v1650_v26 = vadd.f32 %v1636_v6, %v1576_v27 }
 0x390   : > { %v1772_v10 = vadd.f32 %v1758_v50, %v1650_v26  ;;  %v1763_v35 = vpop.f32.mrf.mxu0 }
 0x392   : > { %v1784_v41 = vadd.f32 %v2773_v55, %v1772_v10 }
 0x393   : > { %v1564_v49 = vpop.f32.mrf.mxu2  ;;  %v1451_v44 = vpop.f32.mrf.mxu1 }
 0x394   : > { %v1577_v21 = vadd.f32 %v1564_v49, %v1461_v51  ;;  %v1792_v32 = vpack.c.bf16 %v1784_v41, %v1784_v41  ;;  %v1462_v16 = vadd.f32 %v1451_v44, %v1340_v7 }
 0x395   : > { %v1638_v1 = vpop.f32.mrf.mxu3 }
 0x396   : > { %1801 = vst.msk [vmem:[%s2780_s17 + $0x10] sm:$0xf] %vm1796_vm0, %v1792_v32  ;;  %v1651_v53 = vadd.f32 %v1638_v1, %v1577_v21 }
 0x398   : > { %v1773_v61 = vadd.f32 %v1760_v25, %v1651_v53  ;;  %v1765_v37 = vpop.f32.mrf.mxu0 }
 0x39a   : > { %v1785_v62 = vadd.f32 %v2773_v55, %v1773_v61 }
 0x39b   : > { %v1567_v17 = vpop.f32.mrf.mxu2  ;;  %v1453_v30 = vpop.f32.mrf.mxu1 }
 0x39c   : > { %v1578_v33 = vadd.f32 %v1567_v17, %v1462_v16  ;;  %v1793_v34 = vpack.c.bf16 %v1785_v62, %v1785_v62  ;;  %v1463_v48 = vadd.f32 %v1453_v30, %v1341_v31 }
 0x39d   : > { %v1641_v46 = vpop.f32.mrf.mxu3 }
 0x39e   : > { %1802 = vst.msk [vmem:[%s2780_s17 + $0x14] sm:$0xf] %vm1796_vm0, %v1793_v34  ;;  %v1652_v14 = vadd.f32 %v1641_v46, %v1578_v33 }
 0x3a0   : > { %v1774_v28 = vadd.f32 %v1763_v35, %v1652_v14 }
 0x3a2   : > { %v1786_v57 = vadd.f32 %v2773_v55, %v1774_v28 }
 0x3a3   : > { %v1569_v23 = vpop.f32.mrf.mxu2 }
 0x3a4   : > { %v1579_v9 = vadd.f32 %v1569_v23, %v1463_v48  ;;  %v1794_v58 = vpack.c.bf16 %v1786_v57, %v1786_v57 }
 0x3a5   : > { %v1643_v18 = vpop.f32.mrf.mxu3 }
 0x3a6   : > { %1803 = vst.msk [vmem:[%s2780_s17 + $0x18] sm:$0xf] %vm1796_vm0, %v1794_v58  ;;  %v1653_v47 = vadd.f32 %v1643_v18, %v1579_v9 }
 0x3a8   : > { %v1775_v12 = vadd.f32 %v1765_v37, %v1653_v47 }
 0x3aa   : > { %v1787_v0 = vadd.f32 %v2773_v55, %v1775_v12 }
 0x3ac   : > { %v1795_v63 = vpack.c.bf16 %v1787_v0, %v1787_v0 }
 0x3ae   : > { %1804 = vst.msk [vmem:[%s2780_s17 + $0x1c] sm:$0xf] %vm1796_vm0, %v1795_v63 }
 0x3af PF: > { %s17_s24 = sadd.s32 1, %s2105_s24  }
 0x3b0   : > { %p14_p4 = scmp.ge.s32.totalorder %s17_s24, 4  }
 0x3b2   :  { %16 = sbr.rel (!%p14_p4) target bundleno = 1 (0x1), region = 86 }

// kernel: resblock_forward.4
= control target key start
LH: loop header
LB: loop body
LE: loop exit
PB: predicated region body
PF: predicated region fallthrough
CT: control target
= control target key end

     0   :  { %s2537_s13 = smov 0   ;;  %s3292_s0 = inlined_call_operand.vmem [shape: bf16[2,64,16], index: 0, kind: input, shape index: {}]   ;;  %s3293_s1 = inlined_call_operand.vmem [shape: f32[2,1,16], index: 1, kind: input, shape index: {}]   ;;  %s3294_s2 = inlined_call_operand.vmem [shape: f32[1,16], index: 2, kind: input, shape index: {}]   ;;  %s3295_s3 = inlined_call_operand.vmem [shape: f32[1,16], index: 3, kind: input, shape index: {}]   ;;  %s3296_s4 = inlined_call_operand.vmem [shape: f32[16,4], index: 4, kind: input, shape index: {}]   ;;  %s3297_s5 = inlined_call_operand.vmem [shape: f32[4,16], index: 5, kind: input, shape index: {}]   ;;  %s3298_s6 = inlined_call_operand.vmem [shape: bf16[9,16,16], index: 6, kind: input, shape index: {}]   ;;  %s3299_s7 = inlined_call_operand.vmem [shape: f32[1,16], index: 7, kind: input, shape index: {}]   ;;  %s3300_s8 = inlined_call_operand.vmem [shape: bf16[2,64,8], index: 8, kind: input, shape index: {}]   ;;  %s3301_s9 = inlined_call_operand.vmem [shape: bf16[8,16], index: 9, kind: input, shape index: {}]   ;;  %s3302_s10 = inlined_call_operand.vmem [shape: bf16[2,64,16], index: 10, kind: output, shape index: {}]  }
   0x1 LB: > { %s2134_s14 = sadd.s32 4294967295, %s2478_s13   ;;  %p2138_p0 = scmp.ge.s32.totalorder %s2478_s13, 1  ;;  %s2478_s13 = sphi %s2537_s13, %s20_s13  }
   0x2   : > { %p330_p1 = scmp.lt.s32.totalorder %s2478_s13, 3 }
   0x4   : > { %p331_p2 = pnand %p2138_p0, %p330_p1 }
   0x5   : > { %p376_p3 = scmp.lt.s32.totalorder (!%p331_p2), %s2134_s14, 1 }
   0x6   : > { %334 = sbr.rel (%p331_p2) target bundleno = 992 (0x3e0), region = 60 }
   0xb   : > { %v446_v0 = vld [vmem:[%s3296_s4 + $0x8] sm:$0xff]  ;;  %v445_v1 = vld [vmem:[%s3296_s4] sm:$0xff]  ;;  %s3324_s14 = smov (!%p376_p3, %s2134_s14), 1  ;;  %vm476_vm0 = vcmask 1043456   ;;  %vm423_vm1 = vcmask 130048   ;;  %vm472_vm2 = vcmask 31744  }
   0xc   : > { %464 = vmatpush.msra.mxu0 %v446_v0  ;;  %555 = vmatpush.msra.mxu2 %v446_v0  ;;  %s2551_s19 = sshll.u32 %s3324_s14, 5  ;;  %s383_s22 = scalar_lea.vmem %s3293_s1, %s3324_s14  ;;  %v471_v11 = vld [vmem:[%s3297_s5] sm:$0xf]  ;;  %vm700_vm6 = vcmask 125952   ;;  %vm929_vm12 = vcmask 1046528  }
   0xd   : > { %s380_s25 = scalar_lea.vmem %s3292_s0, %s2551_s19  ;;  %v2434_v2 = vld [vmem:[%s383_s22] ss:$0 sm:$0xff]  ;;  %s3161_s17 = scalar_lea.vmem %s3300_s8, %s2551_s19 }
   0xe   : > { %465 = vmatpush.msra.mxu0 %v445_v1  ;;  %556 = vmatpush.msra.mxu2 %v445_v1  ;;  %v2354_v3 = vld [vmem:[%s380_s25] sm:$0xff]   ;;  %v2409_v4 = vld [vmem:[%s380_s25 + $0x8] sm:$0xff]   ;;  %v2410_v5 = vld [vmem:[%s380_s25 + $0x10] sm:$0xff]   ;;  %s3240_s23 = scalar_lea.vmem %s3302_s10, %s2551_s19 }
   0xf   : > { %v2355_v6 = vunpack.c.l.bf16 %v2354_v3  ;;  %v2356_v7 = vunpack.c.h.bf16 %v2354_v3  ;;  %v2359_v8 = vunpack.c.l.bf16 %v2409_v4  ;;  %v2360_v9 = vunpack.c.h.bf16 %v2409_v4  ;;  %v2411_v10 = vld [vmem:[%s380_s25 + $0x18] sm:$0xff]  }
  0x10   : > { %v2363_v12 = vunpack.c.l.bf16 %v2410_v5  ;;  %v2364_v13 = vunpack.c.h.bf16 %v2410_v5  ;;  %2146 = vmatpush.msk.msrb.mxu0 %vm476_vm0, %v471_v11  ;;  %2149 = vmatpush.msk.msrb.mxu2 %vm476_vm0, %v471_v11  ;;  %v2367_v18 = vunpack.c.l.bf16 %v2411_v10  ;;  %v2368_v24 = vunpack.c.h.bf16 %v2411_v10 }
  0x11   : > { %v415_v14 = vadd.f32 %v2434_v2, %v2355_v6  ;;  %v416_v15 = vadd.f32 %v2434_v2, %v2356_v7  ;;  %v417_v16 = vadd.f32 %v2434_v2, %v2359_v8  ;;  %v418_v17 = vadd.f32 %v2434_v2, %v2360_v9 }
  0x12   : > { %v419_v19 = vadd.f32 %v2434_v2, %v2363_v12  ;;  %v420_v25 = vadd.f32 %v2434_v2, %v2364_v13  ;;  %v421_v28 = vadd.f32 %v2434_v2, %v2367_v18  ;;  %v422_v31 = vadd.f32 %v2434_v2, %v2368_v24 }
  0x13   : > { %v424_v20 = vsel %vm423_vm1, %v415_v14, 0.0  ;;  %v425_v21 = vsel %vm423_vm1, %v416_v15, 0.0  ;;  %v427_v22 = vsel %vm423_vm1, %v417_v16, 0.0  ;;  %v429_v26 = vsel %vm423_vm1, %v418_v17, 0.0 }
  0x14   : > { %v426_v23 = vadd.f32 %v425_v21, %v424_v20  ;;  %v431_v29 = vsel %vm423_vm1, %v419_v19, 0.0  ;;  %v433_v32 = vsel %vm423_vm1, %v420_v25, 0.0  ;;  %v435_v34 = vsel %vm423_vm1, %v421_v28, 0.0 }
  0x15   : > { %v437_v36 = vsel %vm423_vm1, %v422_v31, 0.0 }
  0x16   : > { %v428_v27 = vadd.f32 %v427_v22, %v426_v23 }
  0x18   : > { %v430_v30 = vadd.f32 %v429_v26, %v428_v27 }
  0x1a   : > { %v432_v33 = vadd.f32 %v431_v29, %v430_v30 }
  0x1c   : > { %v434_v35 = vadd.f32 %v433_v32, %v432_v33 }
  0x1e   : > { %v436_v37 = vadd.f32 %v435_v34, %v434_v35  ;;  %v2435_v34 = vld [vmem:[%s3294_s2] ss:$0 sm:$0xff] }
  0x20   : > { %v438_v38 = vadd.f32 %v437_v36, %v436_v37 }
  0x22   : > { %v439_v39 = vrot.slane %v438_v38, 4 }
  0x24   : > { %v440_v40 = vadd.f32 %v439_v39, %v438_v38  ;;  %v2599_v39 = vld [vmem:[%s3295_s3] ss:$0 sm:$0xff] }
  0x26   : > { %v441_v41 = vrot.slane %v440_v40, 2 }
  0x28   : > { %v442_v42 = vadd.f32 %v441_v41, %v440_v40 }
  0x2a   : > { %v443_v43 = vrot.slane %v442_v42, 1 }
  0x2c   : > { %v444_v44 = vadd.f32 %v443_v43, %v442_v42 }
  0x2e   : > { %2145 = vmatmul.msk.f32.vlgmr.msra.gmra.mxu0 %vm423_vm1, %v444_v44 }
  0xab   : > { %v467_v45 = vpop.f32.mrf.mxu0 }
  0xac   : > { %v470_v46 = vmul.f32 0.00390625, %v467_v45 }
  0xae   : > { %2147 = vmatmul.msk.f32.vlgmr.msrb.gmra.mxu0 %vm472_vm2, %v470_v46  ;;  %v2333_v46 = vld [vmem:[%s3298_s6 + $0x8] sm:$0xff] }
  0xaf   : > { %1018 = vmatpush.bf16.msra.mxu0 %v2333_v46  ;;  %2422 = vmatpush.bf16.msra.mxu1 %v2333_v46 }
 0x12b   : > { %v497_v47 = vpop.f32.mrf.mxu0 }
 0x12c   : > { %v500_v48 = vperm.slane %v497_v47, 0 }
 0x12e   : > { %v501_v49 = vsub.f32 %v415_v14, %v500_v48  ;;  %v502_v50 = vsub.f32 %v416_v15, %v500_v48  ;;  %v503_v51 = vsub.f32 %v417_v16, %v500_v48  ;;  %v504_v52 = vsub.f32 %v418_v17, %v500_v48 }
 0x12f   : > { %v2575_v53 = vsub.f32 %v419_v19, %v500_v48  ;;  %v506_v57 = vsub.f32 %v420_v25, %v500_v48  ;;  %v2579_v62 = vsub.f32 %v421_v28, %v500_v48  ;;  %v508_v2 = vsub.f32 %v422_v31, %v500_v48 }
 0x130   : > { %v509_v54 = vmul.f32 %v501_v49, %v501_v49  ;;  %v510_v55 = vmul.f32 %v502_v50, %v502_v50  ;;  %v511_v56 = vmul.f32 %v503_v51, %v503_v51  ;;  %v512_v58 = vmul.f32 %v504_v52, %v504_v52 }
 0x131   : > { %v513_v63 = vmul.f32 %v2575_v53, %v2575_v53  ;;  %v514_v3 = vmul.f32 %v506_v57, %v506_v57  ;;  %v515_v6 = vmul.f32 %v2579_v62, %v2579_v62  ;;  %v516_v9 = vmul.f32 %v508_v2, %v508_v2 }
 0x132   : > { %v517_v59 = vsel %vm423_vm1, %v509_v54, 0.0  ;;  %v518_v60 = vsel %vm423_vm1, %v510_v55, 0.0  ;;  %v520_v0 = vsel %vm423_vm1, %v511_v56, 0.0  ;;  %v522_v4 = vsel %vm423_vm1, %v512_v58, 0.0 }
 0x133   : > { %v519_v61 = vadd.f32 %v518_v60, %v517_v59  ;;  %v524_v7 = vsel %vm423_vm1, %v513_v63, 0.0  ;;  %v526_v10 = vsel %vm423_vm1, %v514_v3, 0.0  ;;  %v528_v12 = vsel %vm423_vm1, %v515_v6, 0.0 }
 0x134   : > { %v530_v14 = vsel %vm423_vm1, %v516_v9, 0.0 }
 0x135   : > { %v521_v1 = vadd.f32 %v520_v0, %v519_v61 }
 0x137   : > { %v523_v5 = vadd.f32 %v522_v4, %v521_v1 }
 0x139   : > { %v525_v8 = vadd.f32 %v524_v7, %v523_v5 }
 0x13b   : > { %v527_v11 = vadd.f32 %v526_v10, %v525_v8 }
 0x13d   : > { %v529_v13 = vadd.f32 %v528_v12, %v527_v11 }
 0x13f   : > { %v531_v15 = vadd.f32 %v530_v14, %v529_v13 }
 0x141   : > { %v532_v16 = vrot.slane %v531_v15, 4 }
 0x143   : > { %v533_v17 = vadd.f32 %v532_v16, %v531_v15  ;;  %v2332_v16 = vld [vmem:[%s3298_s6] sm:$0xff] }
 0x144   : > { %2423 = vmatpush.bf16.msra.mxu3 %v2332_v16 }
 0x145   : > { %v534_v18 = vrot.slane %v533_v17, 2 }
 0x147   : > { %v535_v19 = vadd.f32 %v534_v18, %v533_v17 }
 0x149   : > { %v536_v20 = vrot.slane %v535_v19, 1 }
 0x14b   : > { %v537_v21 = vadd.f32 %v536_v20, %v535_v19 }
 0x14d   : > { %2148 = vmatmul.msk.f32.vlgmr.msra.gmra.mxu2 %vm423_vm1, %v537_v21 }
 0x14e   : > { %1110 = vmatpush.bf16.msra.mxu2 %v2332_v16 }
 0x1d0   : > { %v558_v22 = vpop.f32.mrf.mxu2 }
 0x1d1   : > { %v561_v23 = vmul.f32 0.00390625, %v558_v22 }
 0x1d3   : > { %2150 = vmatmul.msk.f32.vlgmr.msrb.gmra.mxu2 %vm472_vm2, %v561_v23 }
 0x256   : > { %v582_v24 = vpop.f32.mrf.mxu2 }
 0x257   : > { %v583_v25 = vadd.f32 1e-05, %v582_v24 }
 0x259   : > { %2438 = vrsqrt.f32 %v583_v25  ;;  %vm591_vm4 = vweird.f32 %v583_v25 }
 0x25f   : > { %v2439_v26 = vpop.eup %2438 }
 0x260   : > { %v586_v27 = vmul.f32 %v2439_v26, %v583_v25  ;;  %vm592_vm3 = vweird.f32 %v2439_v26 }
 0x261   : > { %vm593_vm5 = vmor %vm591_vm4, %vm592_vm3  ;;  %vm1166_vm4 = vcmask 1040384  }
 0x262   : > { %v587_v28 = vmul.f32 %v2439_v26, %v586_v27 }
 0x264   : > { %v588_v29 = vmul.f32 0.5, %v587_v28 }
 0x266   : > { %v589_v30 = vsub.f32 1.5, %v588_v29 }
 0x268   : > { %v590_v31 = vmul.f32 %v2439_v26, %v589_v30 }
 0x26a   : > { %v594_v32 = vsel %vm593_vm5, %v2439_v26, %v590_v31 }
 0x26b   : > { %v595_v33 = vperm.slane %v594_v32, 0 }
 0x26d   : > { %v596_v35 = vmul.f32 %v595_v33, %v501_v49  ;;  %v597_v36 = vmul.f32 %v595_v33, %v502_v50  ;;  %v598_v37 = vmul.f32 %v595_v33, %v503_v51  ;;  %v599_v38 = vmul.f32 %v595_v33, %v504_v52 }
 0x26e   : > { %v601_v40 = vmul.f32 %v595_v33, %v506_v57  ;;  %v603_v41 = vmul.f32 %v595_v33, %v508_v2  ;;  %v600_v50 = vmul.f32 %v595_v33, %v2575_v53  ;;  %v2480_v52 = vmov 0  }
 0x26f   : > { %v608_v42 = vmul.f32 %v2435_v34, %v596_v35  ;;  %v609_v43 = vmul.f32 %v2435_v34, %v597_v36  ;;  %v610_v44 = vmul.f32 %v2435_v34, %v598_v37  ;;  %v611_v45 = vmul.f32 %v2435_v34, %v599_v38  ;;  %701 = vst.msk [vmem:[#allocation2] sm:$0xf] %vm700_vm6, %v2480_v52 }
 0x270   : > { %v613_v47 = vmul.f32 %v2435_v34, %v601_v40  ;;  %v615_v56 = vmul.f32 %v2435_v34, %v603_v41  ;;  %702 = vst.msk [vmem:[#allocation2 + $0x4] sm:$0xf] %vm700_vm6, %v2480_v52  ;;  %v726_v53 = vlaneseq  ;;  %v612_v3 = vmul.f32 %v2435_v34, %v600_v50 }
 0x271   : > { %v2605_v48 = vadd.f32 %v2599_v39, %v608_v42  ;;  %v2608_v49 = vadd.f32 %v2599_v39, %v611_v45  ;;  %v2616_v54 = vadd.f32 %v2599_v39, %v609_v43  ;;  %v2619_v55 = vadd.f32 %v2599_v39, %v610_v44  ;;  %703 = vst.msk [vmem:[#allocation2 + $0x28] sm:$0xf] %vm700_vm6, %v2480_v52 }
 0x272   : > { %v2612_v51 = vadd.f32 %v2599_v39, %v613_v47  ;;  %v2628_v1 = vshrl.u32 %v726_v53, 7  ;;  %v2631_v4 = vadd.f32 %v2599_v39, %v615_v56  ;;  %v602_v6 = vmul.f32 %v595_v33, %v2579_v62 }
 0x273   : > { %v628_v57 = vmin.f32 %v2605_v48, 20.0  ;;  %v631_v58 = vmin.f32 %v2608_v49, 20.0  ;;  %v629_v60 = vmin.f32 %v2616_v54, 20.0  ;;  %v630_v61 = vmin.f32 %v2619_v55, 20.0 }
 0x274   : > { %v633_v59 = vmin.f32 %v2612_v51, 20.0  ;;  %v2635_v8 = vadd.s32 8, %v2628_v1  ;;  %v2638_v9 = vadd.s32 16, %v2628_v1  ;;  %v2641_v10 = vadd.s32 24, %v2628_v1 }
 0x275   : > { %v636_v63 = vmul.f32 1.442695, %v628_v57  ;;  %v642_v0 = vmul.f32 1.442695, %v631_v58  ;;  %v638_v5 = vmul.f32 1.442695, %v629_v60  ;;  %v2646_v13 = vadd.f32 %v2599_v39, %v612_v3 }
 0x276   : > { %v646_v2 = vmul.f32 1.442695, %v633_v59  ;;  %v640_v7 = vmul.f32 1.442695, %v630_v61  ;;  %v739_v11 = vand.u32 7, %v2628_v1  ;;  %v635_v12 = vmin.f32 %v2631_v4, 20.0 }
 0x277   : > { %2440 = vpow2.f32 %v636_v63  ;;  %v614_v62 = vmul.f32 %v2435_v34, %v602_v6  ;;  %v746_v14 = vand.u32 7, %v2635_v8  ;;  %v753_v17 = vand.u32 7, %v2638_v9  ;;  %v895_v43 = vld [vmem:[#allocation2] sm:$0x8]  ;;  %v2339_v9 = vld [vmem:[%s3298_s6 + $0x18] sm:$0xff] }
 0x278   : > { %2442 = vpow2.f32 %v642_v0  ;;  %v760_v20 = vand.u32 7, %v2641_v10  ;;  %vm2656_vm7 = vcmp.ne.s32.totalorder %v739_v11, 0  ;;  %v650_v23 = vmul.f32 1.442695, %v635_v12  ;;  %v2340_v12 = vld [vmem:[%s3298_s6 + $0x20] sm:$0xff]  ;;  %1390 = vmatpush.bf16.msrb.mxu2 %v2339_v9 }
 0x279   : > { %2444 = vpow2.f32 %v646_v2  ;;  %v2661_v25 = vadd.s32 32, %v2628_v1  ;;  %v632_v26 = vmin.f32 %v2646_v13, 20.0  ;;  %vm832_vm8 = vcmp.ne.s32.totalorder %v746_v14, 0  ;;  %v2337_v2 = vld [vmem:[%s3298_s6 + $0x10] sm:$0xff]  ;;  %1468 = vmatpush.bf16.msrb.mxu1 %v2340_v12 }
 0x27a   : > { %2446 = vpow2.f32 %v638_v5  ;;  %v2667_v29 = vadd.f32 %v2599_v39, %v614_v62  ;;  %vm2671_vm9 = vcmp.ne.s32.totalorder %v753_v17, 0  ;;  %v2481_v33 = vmov 0.0   ;;  %1270 = vmatpush.bf16.msrb.mxu0 %v2337_v2 }
 0x27b   : > { %2448 = vpow2.f32 %v640_v7  ;;  %v2151_v34 = vsel %vm2656_vm7, 1.0, %v2481_v33  ;;  %v2679_v35 = vadd.s32 40, %v2628_v1  ;;  %vm834_vm10 = vcmp.ne.s32.totalorder %v760_v20, 0  ;;  %v2344_v7 = vld [vmem:[%s3298_s6 + $0x28] sm:$0xff] }
 0x27c   : > { %v2684_v42 = vsel %vm832_vm8, 1.0, %v2481_v33  ;;  %v767_v44 = vand.u32 7, %v2661_v25  ;;  %v2690_v47 = vsel %vm2671_vm9, 1.0, %v2481_v33  ;;  %v2693_v52 = vsel %vm834_vm10, 1.0, %v2481_v33  ;;  %1594 = vmatpush.bf16.msrb.mxu3 %v2344_v7 }
 0x27d   : > { %v2441_v15 = vpop.eup %2440  ;;  %v774_v56 = vand.u32 7, %v2679_v35  ;;  %v904_v58 = vunpack.c.l.bf16 %v895_v43  ;;  %v2696_v53 = vrot.slane %v2151_v34, 1  ;;  %v644_v61 = vmul.f32 1.442695, %v632_v26 }
 0x27e   : > { %v2443_v18 = vpop.eup %2442  ;;  %v652_v19 = vadd.f32 2.0, %v2441_v15  ;;  %vm2700_vm11 = vcmp.ne.s32.totalorder %v767_v44, 0  ;;  %v931_v63 = vrot.slane %v2684_v42, 1  ;;  %v933_v0 = vrot.slane %v2690_v47, 1 }
 0x27f   : > { %v2445_v22 = vpop.eup %2444  ;;  %v655_v24 = vadd.f32 2.0, %v2443_v18  ;;  %v935_v5 = vrot.slane %v2693_v52, 1  ;;  %vm2713_vm13 = vcmp.ne.s32.totalorder %v774_v56, 0  ;;  %v2730_v16 = vsel %vm2700_vm11, 1.0, %v2481_v33 }
 0x280   : > { %v657_v27 = vadd.f32 2.0, %v2445_v22  ;;  %v660_v28 = vmul.f32 %v2441_v15, %v652_v19  ;;  %v2447_v30 = vpop.eup %2446  ;;  %v2725_v15 = vmul.f32 %v2696_v53, %v904_v58  ;;  %vm2735_vm14 = vcmp.ne.s32.totalorder %v739_v11, 7 }
 0x281   : > { %v663_v31 = vmul.f32 %v2443_v18, %v655_v24  ;;  %v2449_v36 = vpop.eup %2448  ;;  %v653_v39 = vadd.f32 2.0, %v2447_v30  ;;  %vm2741_vm15 = vcmp.ne.s32.totalorder %v746_v14, 7  ;;  %vm2753_vm2 = vcmp.ne.s32.totalorder %v753_v17, 7 }
 0x282   : > { %v665_v37 = vmul.f32 %v2445_v22, %v657_v27  ;;  %v676_v38 = vadd.f32 2.0, %v660_v28  ;;  %v654_v41 = vadd.f32 2.0, %v2449_v36  ;;  %v668_v3 = vmul.f32 %v660_v28, %v2605_v48 }
 0x283   : > { %v679_v40 = vadd.f32 2.0, %v663_v31  ;;  %v661_v46 = vmul.f32 %v2447_v30, %v653_v39  ;;  %v671_v48 = vmul.f32 %v663_v31, %v2608_v49  ;;  %v937_v28 = vrot.slane %v2730_v16, 1  ;;  %v1132_v30 = vld [vmem:[#allocation2 + $0x4] sm:$0xf] }
 0x284   : > { %v681_v45 = vadd.f32 2.0, %v665_v37  ;;  %2450 = vrcp.f32 %v676_v38  ;;  %v662_v50 = vmul.f32 %v2449_v36, %v654_v41  ;;  %v673_v19 = vmul.f32 %v665_v37, %v2612_v51 }
 0x285   : > { %2452 = vrcp.f32 %v679_v40  ;;  %v677_v57 = vadd.f32 2.0, %v661_v46  ;;  %v669_v26 = vmul.f32 %v661_v46, %v2616_v54  ;;  %v2749_v51 = vsel %vm2713_vm13, 1.0, %v2481_v33 }
 0x286   : > { %2454 = vrcp.f32 %v681_v45  ;;  %v678_v59 = vadd.f32 2.0, %v662_v50  ;;  %vm2762_vm3 = vcmp.ne.s32.totalorder %v760_v20, 7  ;;  %v670_v32 = vmul.f32 %v662_v50, %v2619_v55 }
 0x287   : > { %2456 = vpow2.f32 %v650_v23  ;;  %v2159_v34 = vsel %vm2735_vm14, 1.0, %v2481_v33  ;;  %v2160_v10 = vsel %vm2741_vm15, 1.0, %v2481_v33  ;;  %v2161_v38 = vsel %vm2753_vm2, 1.0, %v2481_v33 }
 0x288   : > { %2458 = vrcp.f32 %v677_v57  ;;  %v2781_v55 = vadd.s32 48, %v2628_v1  ;;  %v2787_v41 = vsel %vm2762_vm3, 1.0, %v2481_v33  ;;  %v1141_v43 = vunpack.c.l.bf16 %v1132_v30 }
 0x289   : > { %2460 = vrcp.f32 %v678_v59  ;;  %v2790_v45 = vadd.s32 56, %v2628_v1  ;;  %v634_v58 = vmin.f32 %v2667_v29, 20.0  ;;  %v2795_v60 = vrot.slane %v2159_v34, 7 }
 0x28a   : > { %v2451_v62 = vpop.eup %2450  ;;  %2462 = vpow2.f32 %v644_v61  ;;  %v781_v57 = vand.u32 7, %v2781_v55  ;;  %v1168_v61 = vrot.slane %v2160_v10, 7  ;;  %v2803_v1 = vsel %vm929_vm12, %v2696_v53, %v931_v63 }
 0x28b   : > { %v2453_v18 = vpop.eup %2452  ;;  %v692_v21 = vmul.f32 %v2451_v62, %v668_v3  ;;  %v788_v2 = vand.u32 7, %v2790_v45  ;;  %v1300_v3 = vld [vmem:[#allocation2 + $0x4] sm:$0x8]  ;;  %v2810_v6 = vsel %vm929_vm12, %v931_v63, %v933_v0  ;;  %v939_v12 = vrot.slane %v2749_v51, 1 }
 0x28c   : > { %v2455_v23 = vpop.eup %2454  ;;  %v695_v24 = vmul.f32 %v2453_v18, %v671_v48  ;;  %v1170_v62 = vrot.slane %v2161_v38, 7  ;;  %v1172_v48 = vrot.slane %v2787_v41, 7  ;;  %vm837_vm5 = vcmp.ne.s32.totalorder %v781_v57, 0 }
 0x28d   : > { %v2757_v8 = vpop.eup %2456  ;;  %v697_v14 = vmul.f32 %v2455_v23, %v673_v19  ;;  %v710_v27 = vpack.c.bf16 %v692_v21, %v692_v21  ;;  %v2822_v42 = vsel %vm929_vm12, %v933_v0, %v935_v5  ;;  %v1302_v16 = vunpack.c.l.bf16 %v1300_v3 }
 0x28e   : > { %v2459_v17 = vpop.eup %2458  ;;  %v713_v31 = vpack.c.bf16 %v695_v24, %v695_v24  ;;  %v648_v18 = vmul.f32 1.442695, %v634_v58  ;;  %v2827_v49 = vsel %vm929_vm12, %v935_v5, %v937_v28  ;;  %v2831_v22 = vsel %vm1166_vm4, %v2795_v60, %v1168_v61 }
 0x28f   : > { %v2461_v20 = vpop.eup %2460  ;;  %v715_v36 = vpack.c.bf16 %v697_v14, %v697_v14  ;;  %718 = vst.msk [vmem:[#allocation2 + $0x8] sm:$0xf] %vm700_vm6, %v710_v27  ;;  %v693_v37 = vmul.f32 %v2459_v17, %v669_v26  ;;  %v1191_v23 = vmul.f32 %v2795_v60, %v1141_v43  ;;  %vm2836_vm7 = vcmp.ne.s32.totalorder %v788_v2, 0 }
 0x290   : > { %v2463_v39 = vpop.eup %2462  ;;  %721 = vst.msk [vmem:[#allocation2 + $0x14] sm:$0xf] %vm700_vm6, %v713_v31  ;;  %v694_v40 = vmul.f32 %v2461_v20, %v670_v32  ;;  %v2841_v52 = vsel %vm837_vm5, 1.0, %v2481_v33  ;;  %v2847_v5 = vsel %vm929_vm12, %v937_v28, %v939_v12  ;;  %v2850_v26 = vsel %vm1166_vm4, %v1168_v61, %v1170_v62 }
 0x291   : > { %723 = vst.msk [vmem:[#allocation2 + $0x1c] sm:$0xf] %vm700_vm6, %v715_v36  ;;  %v711_v46 = vpack.c.bf16 %v693_v37, %v693_v37  ;;  %v656_v50 = vadd.f32 2.0, %v2463_v39  ;;  %v2855_v11 = vsel %vm1166_vm4, %v1170_v62, %v1172_v48  ;;  %v2858_v14 = vadd.f32 2.0, %v2757_v8 }
 0x292   : > { %v712_v59 = vpack.c.bf16 %v694_v40, %v694_v40  ;;  %v1304_v30 = vmul.f32 %v1302_v16, %v2696_v53  ;;  %v2158_v17 = vsel %vm2836_vm7, 1.0, %v2481_v33  ;;  %v941_v31 = vrot.slane %v2841_v52, 1 }
 0x293   : > { %719 = vst.msk [vmem:[#allocation2 + $0xc] sm:$0xf] %vm700_vm6, %v711_v46  ;;  %v664_v7 = vmul.f32 %v2463_v39, %v656_v50  ;;  %vm1040_vm8 = vsmask.f32 4352  ;;  %vm1208_vm9 = vsmask.f32 7424 }
 0x294   : > { %720 = vst.msk [vmem:[#allocation2 + $0x10] sm:$0xf] %vm700_vm6, %v712_v59  ;;  %vm867_vm10 = vcmp.ne.s32.totalorder %v767_v44, 7  ;;  %v2919_v25 = vsel %vm929_vm12, %v939_v12, %v941_v31  ;;  %vm868_vm11 = vcmp.ne.s32.totalorder %v774_v56, 7  ;;  %vm870_vm13 = vcmp.ne.s32.totalorder %v788_v2, 7 }
 0x295   : > { %v680_v63 = vadd.f32 2.0, %v664_v7  ;;  %v672_v9 = vmul.f32 %v664_v7, %v2646_v13  ;;  %v2936_v52 = vsel %vm868_vm11, 1.0, %v2481_v33  ;;  %v2166_v2 = vsel %vm870_vm13, 1.0, %v2481_v33 }
 0x296   : > { %v2328_v19 = vld [vmem:[#allocation2 + $0x4] sm:$0xff]  ;;  %vm705_vm14 = vsmask.f32 256  ;;  %vm1977_vm2 = vcmask 64512  }
 0x297   : > { %v896_v21 = vld [vmem:[#allocation2 + $0x4] sm:$0xff]   ;;  %2464 = vrcp.f32 %v680_v63  ;;  %2189 = vmatmul.msk.bf16.vlgmr.msra.gmra.mxu0 %vm423_vm1, %v2328_v19 }
 0x298   : > { %v905_v0 = vunpack.c.l.bf16 %v896_v21  ;;  %v1142_v24 = vunpack.c.h.bf16 %v896_v21  ;;  %2466 = vpow2.f32 %v648_v18 }
 0x29a   : > { %v955_v27 = vmul.f32 %v2803_v1, %v905_v0  ;;  %v1192_v54 = vmul.f32 %v2831_v22, %v1142_v24  ;;  %v2863_v28 = vld [vmem:[#allocation2 + $0x8] sm:$0xff]   ;;  %v1305_v32 = vmul.f32 %v1142_v24, %v2803_v1 }
 0x29b   : > { %v2329_v34 = vld [vmem:[#allocation2 + $0xc] sm:$0xff]  ;;  %v3303_v10 = vunpack.c.l.bf16 %v2863_v28  ;;  %v2873_v20 = vunpack.c.h.bf16 %v2863_v28 }
 0x29c   : > { %v963_v36 = vpack.c.bf16 %v955_v27, %v2725_v15  ;;  %v2413_v37 = vld [vmem:[#allocation2 + $0x10] sm:$0xff]   ;;  %v1200_v39 = vpack.c.bf16 %v1192_v54, %v1191_v23  ;;  %2190 = vmatmul.msk.bf16.vlgmr.msra.gmra.mxu1 %vm423_vm1, %v2329_v34 }
 0x29d   : > { %v1134_v38 = vld [vmem:[#allocation2 + $0xc] sm:$0xff]   ;;  %v2876_v13 = vunpack.c.l.bf16 %v2413_v37  ;;  %v2878_v40 = vunpack.c.h.bf16 %v2413_v37  ;;  %v2465_v50 = vpop.eup %2464  ;;  %v956_v58 = vmul.f32 %v3303_v10, %v2810_v6  ;;  %v957_v15 = vmul.f32 %v2873_v20, %v2822_v42 }
 0x29e   : > { %v1143_v43 = vunpack.c.l.bf16 %v1134_v38  ;;  %v1144_v46 = vunpack.c.h.bf16 %v1134_v38  ;;  %v1042_v59 = vshrl.u32 %v963_v36, 16  ;;  %v1045_v61 = vshll.u32 %v963_v36, 16  ;;  %v2467_v16 = vpop.eup %2466 }
 0x29f   : > { %v958_v3 = vmul.f32 %v2876_v13, %v2827_v49  ;;  %v959_v7 = vmul.f32 %v2878_v40, %v2847_v5  ;;  %v696_v62 = vmul.f32 %v2465_v50, %v672_v9  ;;  %v964_v18 = vpack.c.bf16 %v957_v15, %v956_v58 }
 0x2a0   : > { %v1193_v63 = vmul.f32 %v2850_v26, %v1143_v43  ;;  %v1044_v19 = vrot.slane %v1042_v59, 3  ;;  %v1047_v21 = vrot.slane %v1045_v61, 4  ;;  %v1194_v23 = vmul.f32 %v2855_v11, %v1144_v46 }
 0x2a1   : > { %v965_v47 = vpack.c.bf16 %v959_v7, %v958_v3  ;;  %v714_v0 = vpack.c.bf16 %v696_v62, %v696_v62  ;;  %v1210_v24 = vshrl.u32 %v1200_v39, 16  ;;  %v1212_v27 = vshll.u32 %v1200_v39, 16 }
 0x2a2   : > { %v1048_v54 = vor.u32 %v1047_v21, %v1044_v19  ;;  %v1050_v34 = vshrl.u32 %v964_v18, 16  ;;  %v1053_v36 = vshll.u32 %v964_v18, 16  ;;  %v2892_v37 = vpack.c.bf16 %v1194_v23, %v1193_v63 }
 0x2a3   : > { %v1059_v38 = vshrl.u32 %v965_v47, 16  ;;  %v1062_v10 = vshll.u32 %v965_v47, 16  ;;  %722 = vst.msk [vmem:[#allocation2 + $0x18] sm:$0xf] %vm700_vm6, %v714_v0  ;;  %v1214_v9 = vrot.slane %v1212_v27, 1  ;;  %v1306_v50 = vmul.f32 %v1143_v43, %v2810_v6 }
 0x2a4   : > { %v1052_v58 = vrot.slane %v1050_v34, 3  ;;  %v1055_v15 = vrot.slane %v1053_v36, 4  ;;  %v1217_v59 = vshll.u32 %v2892_v37, 16  ;;  %v1307_v61 = vmul.f32 %v1144_v46, %v2822_v42 }
 0x2a5   : > { %v1061_v3 = vrot.slane %v1059_v38, 3  ;;  %v1064_v39 = vrot.slane %v1062_v10, 4  ;;  %v1215_v7 = vor.u32 %v1214_v9, %v1210_v24  ;;  %v2898_v62 = vrot.slane %v2158_v17, 1 }
 0x2a6   : > { %v1056_v63 = vor.u32 %v1055_v15, %v1052_v58  ;;  %v1219_v18 = vrot.slane %v1217_v59, 1  ;;  %v1313_v19 = vpack.c.bf16 %v1305_v32, %v1304_v30  ;;  %v658_v21 = vadd.f32 2.0, %v2467_v16 }
 0x2a7   : > { %v2900_v23 = vor.u32 %v1064_v39, %v1061_v3  ;;  %v1314_v47 = vpack.c.bf16 %v1307_v61, %v1306_v50  ;;  %v2908_v10 = vmul.f32 %v2757_v8, %v2858_v14  ;;  %v2926_v8 = vsel %vm929_vm12, %v941_v31, %v2898_v62 }
 0x2a8   : > { %v1057_v43 = vsel %vm1040_vm8, %v1048_v54, %v1056_v63  ;;  %v1220_v0 = vsel %vm1208_vm9, %v1215_v7, %v1219_v18  ;;  %v666_v44 = vmul.f32 %v2467_v16, %v658_v21  ;;  %v1322_v14 = vshrl.u32 %v1313_v19, 16 }
 0x2a9   : > { %2197 = vmatmul.msk.bf16.vlgmr.msra.gmra.mxu2 %vm423_vm1, %v1057_v43  ;;  %v1066_v30 = vsel %vm1040_vm8, %v1056_v63, %v2900_v23  ;;  %2207 = vmatmul.msk.bf16.vlgmr.msrb.gmra.mxu0 %vm423_vm1, %v1220_v0  ;;  %v2163_v32 = vsel %vm867_vm10, 1.0, %v2481_v33  ;;  %v1325_v46 = vshll.u32 %v1313_v19, 16  ;;  %v1330_v16 = vshrl.u32 %v1314_v47, 16  ;;  %v2347_v0 = vld [vmem:[%s3298_s6 + $0x38] sm:$0xff] }
 0x2aa   : > { %2198 = vmatmul.msk.bf16.vlgmr.msra.gmra.mxu3 %vm423_vm1, %v1066_v30  ;;  %v2414_v17 = vld [vmem:[#allocation2 + $0x18] sm:$0xff]   ;;  %v1333_v54 = vshll.u32 %v1314_v47, 16  ;;  %v682_v34 = vadd.f32 2.0, %v666_v44  ;;  %v1174_v38 = vrot.slane %v2163_v32, 7  ;;  %v1176_v9 = vrot.slane %v2936_v52, 7  ;;  %1792 = vmatpush.bf16.msra.mxu2 %v2347_v0 }
 0x2ab   : > { %v2931_v51 = vunpack.c.l.bf16 %v2414_v17  ;;  %v2933_v12 = vunpack.c.h.bf16 %v2414_v17  ;;  %v1136_v24 = vld [vmem:[#allocation2 + $0x14] sm:$0xff]   ;;  %v683_v50 = vadd.f32 2.0, %v2908_v10  ;;  %v1324_v15 = vrot.slane %v1322_v14, 3 }
 0x2ac   : > { %v2330_v27 = vld [vmem:[#allocation2 + $0x14] sm:$0xff]  ;;  %v1145_v31 = vunpack.c.l.bf16 %v1136_v24  ;;  %v1146_v36 = vunpack.c.h.bf16 %v1136_v24  ;;  %2468 = vrcp.f32 %v682_v34  ;;  %v1327_v59 = vrot.slane %v1325_v46, 4 }
 0x2ad   : > { %v960_v35 = vmul.f32 %v2931_v51, %v2919_v25  ;;  %v961_v56 = vmul.f32 %v2933_v12, %v2926_v8  ;;  %2191 = vmatmul.msk.bf16.gmra.mxu1 %vm423_vm1, %v2330_v27  ;;  %v2948_v61 = vsel %vm1166_vm4, %v1172_v48, %v1174_v38  ;;  %v1332_v3 = vrot.slane %v1330_v16, 3 }
 0x2ae   : > { %v1335_v39 = vrot.slane %v1333_v54, 4  ;;  %v2953_v7 = vsel %vm1166_vm4, %v1174_v38, %v1176_v9  ;;  %v1195_v63 = vmul.f32 %v2948_v61, %v1145_v31  ;;  %v1221_v43 = vshrl.u32 %v2892_v37, 16 }
 0x2af   : > { %v966_v58 = vpack.c.bf16 %v961_v56, %v960_v35  ;;  %v1196_v47 = vmul.f32 %v2953_v7, %v1146_v36  ;;  %v1308_v41 = vmul.f32 %v1145_v31, %v2827_v49  ;;  %v1309_v48 = vmul.f32 %v1146_v36, %v2847_v5 }
 0x2b0   : > { %2470 = vrcp.f32 %v683_v50  ;;  %v674_v14 = vmul.f32 %v666_v44, %v2667_v29  ;;  %v1328_v16 = vor.u32 %v1327_v59, %v1324_v15  ;;  %v2966_v24 = vor.u32 %v1335_v39, %v1332_v3  ;;  %v1624_v29 = vld [vmem:[#allocation2 + $0x8] sm:$0x8] }
 0x2b1   : > { %v1068_v19 = vshrl.u32 %v966_v58, 16  ;;  %v1071_v21 = vshll.u32 %v966_v58, 16  ;;  %v2964_v32 = vpack.c.bf16 %v1196_v47, %v1195_v63  ;;  %v1223_v37 = vor.u32 %v1221_v43, %v1219_v18  ;;  %v2346_v47 = vld [vmem:[%s3298_s6 + $0x30] sm:$0xff] }
 0x2b2   : > { %v2469_v46 = vpop.eup %2468  ;;  %vm869_vm12 = vcmp.ne.s32.totalorder %v781_v57, 7  ;;  %v1315_v31 = vpack.c.bf16 %v1309_v48, %v1308_v41  ;;  %v1337_v18 = vsel %vm1040_vm8, %v1328_v16, %v2966_v24  ;;  %v1630_v38 = vmul.f32 %v2876_v13, %v2810_v6  ;;  %1714 = vmatpush.bf16.msra.mxu0 %v2346_v47 }
 0x2b3   : > { %v1070_v30 = vrot.slane %v1068_v19, 3  ;;  %v1073_v17 = vrot.slane %v1071_v21, 4  ;;  %v698_v54 = vmul.f32 %v2469_v46, %v674_v14  ;;  %v1225_v34 = vshll.u32 %v2964_v32, 16 }
 0x2b4   : > { %v2165_v36 = vsel %vm869_vm12, 1.0, %v2481_v33  ;;  %v675_v55 = vmul.f32 %v2908_v10, %v2631_v4  ;;  %v1626_v50 = vunpack.c.l.bf16 %v1624_v29  ;;  %v1339_v6 = vshrl.u32 %v1315_v31, 16 }
 0x2b5   : > { %v2968_v27 = vor.u32 %v1073_v17, %v1070_v30  ;;  %v716_v44 = vpack.c.bf16 %v698_v54, %v698_v54  ;;  %v2975_v35 = vrot.slane %v1225_v34, 1  ;;  %v1631_v4 = vmul.f32 %v2878_v40, %v2822_v42 }
 0x2b6   : > { %v2471_v56 = vpop.eup %2470  ;;  %v1342_v10 = vshll.u32 %v1315_v31, 16  ;;  %v2996_v15 = vrot.slane %v2166_v2, 7  ;;  %v1628_v59 = vmul.f32 %v1626_v50, %v2696_v53  ;;  %v1629_v3 = vmul.f32 %v2873_v20, %v2803_v1  ;;  %v1956_v53 = vld [vmem:[%s3301_s9] sm:$0xf] }
 0x2b7   : > { %v1075_v45 = vsel %vm1040_vm8, %v2900_v23, %v2968_v27  ;;  %724 = vst.msk [vmem:[#allocation2 + $0x20] sm:$0xf] %vm700_vm6, %v716_v44  ;;  %v1228_v57 = vsel %vm1208_vm9, %v1223_v37, %v2975_v35  ;;  %v1178_v23 = vrot.slane %v2165_v36, 7  ;;  %v699_v58 = vmul.f32 %v2471_v56, %v675_v55  ;;  %v2348_v1 = vld [vmem:[%s3298_s6 + $0x40] sm:$0xff] }
 0x2b8   : > { %v3322_v33 = vunpack.c.l.bf16 %v2863_v28  ;;  %v1517_v63 = vmul.f32 %v2873_v20, %v2831_v22  ;;  %v1638_v21 = vpack.c.bf16 %v1631_v4, %v1630_v38  ;;  %v1341_v42 = vrot.slane %v1339_v6, 3  ;;  %1918 = vmatpush.bf16.msra.mxu1 %v2348_v1 }
 0x2b9   : > { %2217 = vmatmul.msk.bf16.vlgmr.msrb.gmra.mxu2 %vm423_vm1, %v1337_v18  ;;  %2208 = vmatmul.msk.bf16.gmra.mxu0 %vm423_vm1, %v1228_v57  ;;  %v717_v19 = vpack.c.bf16 %v699_v58, %v699_v58  ;;  %v1637_v28 = vpack.c.bf16 %v1629_v3, %v1628_v59  ;;  %v1632_v43 = vmul.f32 %v2931_v51, %v2827_v49  ;;  %v1344_v41 = vrot.slane %v1342_v10, 4 }
 0x2ba   : > { %2199 = vmatmul.msk.bf16.gmra.mxu3 %vm423_vm1, %v1075_v45  ;;  %v1516_v39 = vmul.f32 %v3322_v33, %v2795_v60  ;;  %v1633_v20 = vmul.f32 %v2933_v12, %v2847_v5  ;;  %v3022_v48 = vsel %vm1166_vm4, %v1176_v9, %v1178_v23  ;;  %v1991_v0 = vsel %vm476_vm0, %v1956_v53, 0 }
 0x2bb   : > { %725 = vst.msk [vmem:[#allocation2 + $0x24] sm:$0xf] %vm700_vm6, %v717_v19  ;;  %v1654_v30 = vshrl.u32 %v1638_v21, 16  ;;  %v3028_v49 = vsel %vm1166_vm4, %v1178_v23, %v2996_v15  ;;  %2000 = vmatpush.bf16.msra.mxu3 %v1991_v0  ;;  %v1646_v5 = vshrl.u32 %v1637_v28, 16  ;;  %v1649_v16 = vshll.u32 %v1637_v28, 16 }
 0x2bc   : > { %v1639_v52 = vpack.c.bf16 %v1633_v20, %v1632_v43  ;;  %v1518_v34 = vmul.f32 %v2876_v13, %v2850_v26  ;;  %v1657_v56 = vshll.u32 %v1638_v21, 16  ;;  %v3037_v45 = vor.u32 %v1344_v41, %v1341_v42 }
 0x2bd   : > { %v1648_v31 = vrot.slane %v1646_v5, 3  ;;  %v1651_v29 = vrot.slane %v1649_v16, 4  ;;  %v1656_v44 = vrot.slane %v1654_v30, 3  ;;  %v1229_v57 = vshrl.u32 %v2964_v32, 16 }
 0x2be   : > { %v2331_v17 = vld [vmem:[#allocation2 + $0x1c] sm:$0xff]  ;;  %v1659_v50 = vrot.slane %v1657_v56, 4  ;;  %v1519_v10 = vmul.f32 %v2878_v40, %v2855_v11  ;;  %v1525_v23 = vpack.c.bf16 %v1517_v63, %v1516_v39  ;;  %v1346_v32 = vsel %vm1040_vm8, %v2966_v24, %v3037_v45 }
 0x2bf   : > { %v903_v14 = vld [vmem:[#allocation2 + $0x1c] sm:$0xff]   ;;  %2192 = vmatmul.msk.bf16.gmra.mxu1 %vm423_vm1, %v2331_v17  ;;  %v1231_v58 = vor.u32 %v1229_v57, %v2975_v35  ;;  %v1652_v33 = vor.u32 %v1651_v29, %v1648_v31  ;;  %v1663_v20 = vshrl.u32 %v1639_v52, 16  ;;  %v1666_v16 = vshll.u32 %v1639_v52, 16 }
 0x2c0   : > { %v1139_v46 = vld [vmem:[#allocation2 + $0x20] sm:$0xf]  ;;  %v912_v37 = vunpack.c.h.bf16 %v903_v14  ;;  %v1147_v9 = vunpack.c.l.bf16 %v903_v14  ;;  %v1660_v19 = vor.u32 %v1659_v50, %v1656_v44  ;;  %v3051_v30 = vpack.c.bf16 %v1519_v10, %v1518_v34 }
 0x2c1   : > { %v1148_v54 = vunpack.c.l.bf16 %v1139_v46  ;;  %v1536_v17 = vshll.u32 %v1525_v23, 16  ;;  %v1665_v44 = vrot.slane %v1663_v20, 3  ;;  %v1534_v57 = vshrl.u32 %v1525_v23, 16 }
 0x2c2   : > { %v962_v18 = vmul.f32 %v2898_v62, %v912_v37  ;;  %v1197_v36 = vmul.f32 %v3022_v48, %v1147_v9  ;;  %v1310_v55 = vmul.f32 %v1147_v9, %v2919_v25  ;;  %v1140_v3 = vld [vmem:[#allocation2 + $0x24] sm:$0x1]  ;;  %v3054_v14 = vsel %vm1040_vm8, %v1652_v33, %v1660_v19 }
 0x2c3   : > { %v1198_v38 = vmul.f32 %v3028_v49, %v1148_v54  ;;  %v1311_v2 = vmul.f32 %v1148_v54, %v2926_v8  ;;  %v1149_v53 = vunpack.c.l.bf16 %v1140_v3  ;;  %v3047_v43 = vld [vmem:[#allocation2 + $0x24] sm:$0xff]   ;;  %v1538_v56 = vrot.slane %v1536_v17, 1 }
 0x2c4   : > { %v967_v6 = vpack.c.bf16 %v962_v18, %v962_v18  ;;  %v2418_v0 = vld [vmem:[#allocation2 + $0x20] sm:$0xff]   ;;  %v1303_v5 = vunpack.c.l.bf16 %v3047_v43  ;;  %v1541_v18 = vshll.u32 %v3051_v30, 16  ;;  %v3076_v10 = vmul.f32 %v2931_v51, %v2948_v61  ;;  %v1829_v17 = vld [vmem:[#allocation2 + $0x28] sm:$0xf] }
 0x2c5   : > { %v1203_v4 = vpack.c.bf16 %v1198_v38, %v1197_v36  ;;  %v1316_v59 = vpack.c.bf16 %v1311_v2, %v1310_v55  ;;  %v1199_v41 = vmul.f32 %v2996_v15, %v1149_v53  ;;  %v3059_v9 = vunpack.c.l.bf16 %v2418_v0  ;;  %v1822_v38 = vld [vmem:[#allocation2 + $0xc] sm:$0xf] }
 0x2c6   : > { %v1077_v21 = vshrl.u32 %v967_v6, 16  ;;  %v1080_v42 = vshll.u32 %v967_v6, 16  ;;  %v3061_v54 = vunpack.c.h.bf16 %v2418_v0  ;;  %v1312_v52 = vmul.f32 %v1303_v5, %v2898_v62  ;;  %v2334_v55 = vld [vmem:[#allocation2 + $0x8] sm:$0xff] }
 0x2c7   : > { %v1233_v47 = vshll.u32 %v1203_v4, 16  ;;  %v1348_v1 = vshrl.u32 %v1316_v59, 16  ;;  %v1351_v28 = vshll.u32 %v1316_v59, 16  ;;  %v1204_v29 = vpack.c.bf16 %v1199_v41, %v1199_v41 }
 0x2c8   : > { %v1079_v39 = vrot.slane %v1077_v21, 3  ;;  %v1082_v63 = vrot.slane %v1080_v42, 4  ;;  %v1668_v36 = vrot.slane %v1666_v16, 4  ;;  %v1634_v2 = vmul.f32 %v3059_v9, %v2919_v25 }
 0x2c9   : > { %2218 = vmatmul.msk.bf16.gmra.mxu2 %vm423_vm1, %v1346_v32  ;;  %v1235_v35 = vrot.slane %v1233_v47, 1  ;;  %v1350_v37 = vrot.slane %v1348_v1, 3  ;;  %v1353_v31 = vrot.slane %v1351_v28, 4  ;;  %v1241_v6 = vshll.u32 %v1204_v29, 16 }
 0x2ca   : > { %v1083_v24 = vor.u32 %v1082_v63, %v1079_v39  ;;  %v1237_v59 = vshrl.u32 %v1203_v4, 16  ;;  %v1831_v33 = vunpack.c.l.bf16 %v1822_v38  ;;  %v1841_v23 = vmul.f32 %v2876_v13, %v2831_v22 }
 0x2cb   : > { %v1236_v46 = vsel %vm1208_vm9, %v1231_v58, %v1235_v35  ;;  %v3072_v50 = vor.u32 %v1353_v31, %v1350_v37  ;;  %v1669_v58 = vor.u32 %v1668_v36, %v1665_v44  ;;  %v1539_v25 = vor.u32 %v1538_v56, %v1534_v57 }
 0x2cc   : > { %2209 = vmatmul.msk.bf16.gmra.mxu0 %vm423_vm1, %v1236_v46  ;;  %v1084_v34 = vsel %vm1040_vm8, %v2968_v27, %v1083_v24  ;;  %v1635_v27 = vmul.f32 %v3061_v54, %v2926_v8  ;;  %v3081_v21 = vrot.slane %v1541_v18, 1  ;;  %v1317_v8 = vpack.c.bf16 %v1312_v52, %v1312_v52  ;;  %v707_v52 = vld [vmem:[#allocation2 + $0x2c] sm:$0x1] }
 0x2cd   : > { %2200 = vmatmul.msk.bf16.gmra.mxu3 %vm423_vm1, %v1084_v34  ;;  %v3084_v42 = vsel %vm1040_vm8, %v1660_v19, %v1669_v58  ;;  %v1239_v47 = vor.u32 %v1237_v59, %v1235_v35  ;;  %v1840_v1 = vmul.f32 %v1831_v33, %v2795_v60  ;;  %v1355_v4 = vsel %vm1040_vm8, %v3037_v45, %v3072_v50 }
 0x2ce   : > { %v1640_v3 = vpack.c.bf16 %v1635_v27, %v1634_v2  ;;  %v1243_v28 = vrot.slane %v1241_v6, 1  ;;  %v1842_v22 = vmul.f32 %v2878_v40, %v2850_v26  ;;  %v1843_v13 = vmul.f32 %v2931_v51, %v2855_v11 }
 0x2cf   : > { %2243 = vmatmul.msk.bf16.vlgmr.msrb.gmra.mxu1 %vm423_vm1, %v2334_v55  ;;  %v1849_v19 = vpack.c.bf16 %v1841_v23, %v1840_v1  ;;  %v1627_v63 = vunpack.c.h.bf16 %v3047_v43  ;;  %v1357_v35 = vshrl.u32 %v1317_v8, 16  ;;  %v1360_v41 = vshll.u32 %v1317_v8, 16  ;;  %v2335_v23 = vld [vmem:[#allocation2 + $0x10] sm:$0xff] }
 0x2d0   : > { %v1672_v53 = vshrl.u32 %v1640_v3, 16  ;;  %v1675_v32 = vshll.u32 %v1640_v3, 16  ;;  %v1850_v0 = vpack.c.bf16 %v1843_v13, %v1842_v22  ;;  %v1844_v60 = vmul.f32 %v2933_v12, %v2948_v61 }
 0x2d1   : > { %v1244_v45 = vsel %vm1208_vm9, %v1239_v47, %v1243_v28  ;;  %v1860_v46 = vshll.u32 %v1849_v19, 16  ;;  %v1636_v26 = vmul.f32 %v1627_v63, %v2898_v62  ;;  %v1858_v11 = vshrl.u32 %v1849_v19, 16 }
 0x2d2   : > { %v1674_v20 = vrot.slane %v1672_v53, 3  ;;  %v1677_v39 = vrot.slane %v1675_v32, 4  ;;  %v1865_v40 = vshll.u32 %v1850_v0, 16  ;;  %v1845_v51 = vmul.f32 %v3059_v9, %v2953_v7 }
 0x2d3   : > { %v1869_v43 = vshrl.u32 %v1850_v0, 16  ;;  %v1862_v16 = vrot.slane %v1860_v46, 1  ;;  %v1641_v61 = vpack.c.bf16 %v1636_v26, %v1636_v26  ;;  %v1838_v37 = vunpack.c.l.bf16 %v1829_v17 }
 0x2d4   : > { %v1678_v24 = vor.u32 %v1677_v39, %v1674_v20  ;;  %v1867_v34 = vrot.slane %v1865_v40, 1  ;;  %v1851_v31 = vpack.c.bf16 %v1845_v51, %v1844_v60  ;;  %v1846_v29 = vmul.f32 %v3061_v54, %v3022_v48 }
 0x2d5   : > { %vm704_vm0 = vcmask 122880   ;;  %v1863_v62 = vor.u32 %v1862_v16, %v1858_v11  ;;  %v1681_v44 = vshrl.u32 %v1641_v61, 16  ;;  %v1684_v56 = vshll.u32 %v1641_v61, 16  ;;  %v1506_v11 = vld [vmem:[#allocation2 + $0x28] sm:$0x1] }
 0x2d6   : > { %v3103_v5 = vsel %vm1040_vm8, %v1669_v58, %v1678_v24  ;;  %v1847_v18 = vmul.f32 %v1838_v37, %v3028_v49  ;;  %v1544_v36 = vsel %vm1208_vm9, %v1539_v25, %v3081_v21  ;;  %v1871_v38 = vor.u32 %v1869_v43, %v1867_v34  ;;  %vm706_vm15 = vmand %vm704_vm0, %vm705_vm14  ;;  %v2341_v43 = vld [vmem:[#allocation2 + $0xc] sm:$0xff] }
 0x2d7   : > { %v1873_v55 = vshll.u32 %v1851_v31, 16  ;;  %v3113_v57 = vsel %vm1208_vm9, %v1863_v62, %v1867_v34  ;;  %v1683_v2 = vrot.slane %v1681_v44, 3  ;;  %v1686_v27 = vrot.slane %v1684_v56, 4  ;;  %v2349_v56 = vld [vmem:[%s3161_s17] sm:$0xff] }
 0x2d8   : > { %v1852_v6 = vpack.c.bf16 %v1847_v18, %v1846_v29  ;;  %v1521_v58 = vmul.f32 %v2933_v12, %v2953_v7  ;;  %v1877_v3 = vshrl.u32 %v1851_v31, 16  ;;  %v708_v33 = vsel %vm706_vm15, 0, %v707_v52  ;;  %v2342_v29 = vld [vmem:[#allocation2 + $0x14] sm:$0xff] }
 0x2d9   : > { %2219 = vmatmul.msk.bf16.gmra.mxu2 %vm423_vm1, %v1355_v4  ;;  %v1875_v59 = vrot.slane %v1873_v55, 1  ;;  %v1359_v25 = vrot.slane %v1357_v35, 3  ;;  %v1362_v8 = vrot.slane %v1360_v41, 4  ;;  %v1687_v47 = vor.u32 %v1686_v27, %v1683_v2  ;;  %709 = vst [vmem:[#allocation2 + $0x2c] sm:$0x1] %v708_v33 }
 0x2da   : > { %v1881_v53 = vshll.u32 %v1852_v6, 16  ;;  %v1527_v12 = vpack.c.bf16 %v1521_v58, %v3076_v10  ;;  %v1545_v13 = vshrl.u32 %v3051_v30, 16  ;;  %v1885_v60 = vshrl.u32 %v1852_v6, 16 }
 0x2db   : > { %v3119_v32 = vsel %vm1208_vm9, %v1871_v38, %v1875_v59  ;;  %v1879_v1 = vor.u32 %v1877_v3, %v1875_v59  ;;  %v1688_v4 = vsel %vm1040_vm8, %v1678_v24, %v1687_v47  ;;  %v1363_v7 = vor.u32 %v1362_v8, %v1359_v25  ;;  %v2336_v24 = vld [vmem:[#allocation2 + $0x18] sm:$0xff]  ;;  %v2350_v38 = vld [vmem:[%s3161_s17 + $0x8] sm:$0xff]  ;;  %v2351_v8 = vld [vmem:[%s3161_s17 + $0x10] sm:$0xff] }
 0x2dc   : > { %2210 = vmatmul.msk.bf16.gmra.mxu0 %vm423_vm1, %v1244_v45  ;;  %v1883_v28 = vrot.slane %v1881_v53, 1  ;;  %v1549_v20 = vshll.u32 %v1527_v12, 16  ;;  %v1547_v35 = vor.u32 %v1545_v13, %v3081_v21  ;;  %v1523_v21 = vmul.f32 %v3061_v54, %v3028_v49 }
 0x2dd   : > { %2253 = vmatmul.msk.bf16.vlgmr.msrb.gmra.mxu3 %vm423_vm1, %v1544_v36  ;;  %v1364_v19 = vsel %vm1040_vm8, %v3072_v50, %v1363_v7  ;;  %v1522_v50 = vmul.f32 %v3059_v9, %v3022_v48  ;;  %v1553_v40 = vshrl.u32 %v1527_v12, 16  ;;  %v1515_v61 = vunpack.c.l.bf16 %v1506_v11  ;;  %v2338_v9 = vld [vmem:[#allocation2 + $0x20] sm:$0xff] }
 0x2de   : > { %v3125_v22 = vsel %vm1208_vm9, %v1879_v1, %v1883_v28  ;;  %v1551_v0 = vrot.slane %v1549_v20, 1  ;;  %v1887_v17 = vor.u32 %v1885_v60, %v1883_v28  ;;  %v2345_v36 = vld [vmem:[#allocation2 + $0x24] sm:$0xff]  ;;  %v2352_v20 = vld [vmem:[%s3161_s17 + $0x18] sm:$0xff] }
 0x2df   : > { %2244 = vmatmul.msk.bf16.gmra.mxu1 %vm423_vm1, %v2335_v23  ;;  %v1528_v26 = vpack.c.bf16 %v1523_v21, %v1522_v50  ;;  %v1524_v49 = vmul.f32 %v1515_v61, %v2996_v15 }
 0x2e0   : > { %v1830_v39 = vld [vmem:[#allocation2 + $0x2c] sm:$0x1]  ;;  %v1552_v30 = vsel %vm1208_vm9, %v1547_v35, %v1551_v0  ;;  %v1555_v16 = vor.u32 %v1553_v40, %v1551_v0 }
 0x2e1   : > { %v1839_v63 = vunpack.c.l.bf16 %v1830_v39  ;;  %v1557_v51 = vshll.u32 %v1528_v26, 16  ;;  %v1529_v54 = vpack.c.bf16 %v1524_v49, %v1524_v49  ;;  %v1561_v31 = vshrl.u32 %v1528_v26, 16 }
 0x2e3   : > { %v1848_v41 = vmul.f32 %v1839_v63, %v2996_v15  ;;  %v1559_v37 = vrot.slane %v1557_v51, 1  ;;  %v1565_v34 = vshll.u32 %v1529_v54, 16  ;;  %v2343_v15 = vld [vmem:[#allocation2 + $0x1c] sm:$0xff] }
 0x2e5   : > { %v1853_v10 = vpack.c.bf16 %v1848_v41, %v1848_v41  ;;  %v1560_v48 = vsel %vm1208_vm9, %v1555_v16, %v1559_v37  ;;  %v1563_v62 = vor.u32 %v1561_v31, %v1559_v37  ;;  %v1567_v44 = vrot.slane %v1565_v34, 1 }
 0x2e7   : > { %v1889_v45 = vshll.u32 %v1853_v10, 16 }
 0x2e9   : > { %2220 = vmatmul.msk.bf16.gmra.mxu2 %vm423_vm1, %v1364_v19  ;;  %v1891_v46 = vrot.slane %v1889_v45, 1 }
 0x2ec   : > { %2263 = vmatmul.msk.bf16.vlgmr.msra.gmra.mxu0 %vm423_vm1, %v3054_v14  ;;  %v1892_v14 = vsel %vm1208_vm9, %v1887_v17, %v1891_v46 }
 0x2ed   : > { %2254 = vmatmul.msk.bf16.gmra.mxu3 %vm423_vm1, %v1552_v30 }
 0x2ef   : > { %2245 = vmatmul.msk.bf16.gmra.mxu1 %vm423_vm1, %v2336_v24 }
 0x2f9   : > { %2289 = vmatmul.msk.bf16.vlgmr.msra.gmra.mxu2 %vm423_vm1, %v2341_v43 }
 0x2fc   : > { %2264 = vmatmul.msk.bf16.gmra.mxu0 %vm423_vm1, %v3084_v42  ;;  %v1568_v42 = vsel %vm1208_vm9, %v1563_v62, %v1567_v44 }
 0x2fd   : > { %2255 = vmatmul.msk.bf16.gmra.mxu3 %vm423_vm1, %v1560_v48 }
 0x2ff   : > { %2246 = vmatmul.msk.bf16.gmra.mxu1 %vm423_vm1, %v2338_v9 }
 0x309   : > { %2290 = vmatmul.msk.bf16.gmra.mxu2 %vm423_vm1, %v2342_v29 }
 0x30c   : > { %2265 = vmatmul.msk.bf16.gmra.mxu0 %vm423_vm1, %v3103_v5 }
 0x30d   : > { %2256 = vmatmul.msk.bf16.gmra.mxu3 %vm423_vm1, %v1568_v42 }
 0x30f   : > { %2299 = vmatmul.msk.bf16.vlgmr.msra.gmra.mxu1 %vm423_vm1, %v3113_v57 }
 0x314   : > { %v1020_v52 = vpop.f32.mrf.mxu0 }
 0x319   : > { %2291 = vmatmul.msk.bf16.gmra.mxu2 %vm423_vm1, %v2343_v15  ;;  %v1025_v5 = vpop.f32.mrf.mxu1 }
 0x31c   : > { %2266 = vmatmul.msk.bf16.gmra.mxu0 %vm423_vm1, %v1688_v4  ;;  %v1022_v58 = vpop.f32.mrf.mxu0 }
 0x31d   : > { %2319 = vmatmul.msk.bf16.vlgmr.msra.gmra.mxu3 %vm1977_vm2, %v2349_v56 }
 0x31f   : > { %2300 = vmatmul.msk.bf16.gmra.mxu1 %vm423_vm1, %v3119_v32 }
 0x321   : > { %v1027_v18 = vpop.f32.mrf.mxu1 }
 0x326   : > { %v1272_v47 = vpop.f32.mrf.mxu0 }
 0x329   : > { %2292 = vmatmul.msk.bf16.gmra.mxu2 %vm423_vm1, %v2345_v36 }
 0x32a   : > { %v1030_v55 = vpop.f32.mrf.mxu1 }
 0x32c   : > { %v1112_v57 = vpop.f32.mrf.mxu2 }
 0x32d   : > { %v1113_v2 = vadd.f32 %v1112_v57, %v1020_v52  ;;  %v1117_v27 = vpop.f32.mrf.mxu3  ;;  %2320 = vmatmul.msk.bf16.gmra.mxu3 %vm1977_vm2, %v2350_v38 }
 0x32e   : > { %v3172_v6 = vadd.f32 %v1117_v27, %v1025_v5  ;;  %v1274_v28 = vpop.f32.mrf.mxu0 }
 0x32f   : > { %2301 = vmatmul.msk.bf16.gmra.mxu1 %vm423_vm1, %v3125_v22  ;;  %v1292_v15 = vadd.f32 %v1272_v47, %v1113_v2  ;;  %v3232_v2 = vld [vmem:[%s3299_s7] ss:$0 sm:$0xff] }
 0x332   : > { %v1032_v3 = vpop.f32.mrf.mxu1 }
 0x334   : > { %v1114_v59 = vpop.f32.mrf.mxu2 }
 0x335   : > { %v1115_v33 = vadd.f32 %v1114_v59, %v1022_v58  ;;  %v1119_v23 = vpop.f32.mrf.mxu3 }
 0x336   : > { %v3176_v25 = vadd.f32 %v1119_v23, %v1027_v18  ;;  %v1277_v39 = vpop.f32.mrf.mxu0 }
 0x337   : > { %v1293_v57 = vadd.f32 %v1274_v28, %v1115_v33 }
 0x33c   : > { %v1392_v32 = vpop.f32.mrf.mxu2  ;;  %v1035_v4 = vpop.f32.mrf.mxu1 }
 0x33d   : > { %v1122_v53 = vpop.f32.mrf.mxu3  ;;  %2321 = vmatmul.msk.bf16.gmra.mxu3 %vm1977_vm2, %v2351_v8  ;;  %v1412_v5 = vadd.f32 %v1392_v32, %v1292_v15 }
 0x33e   : > { %v3180_v1 = vadd.f32 %v1122_v53, %v1030_v55  ;;  %v3189_v10 = vpop.f32.mrf.mxu0 }
 0x33f   : > { %2302 = vmatmul.msk.bf16.gmra.mxu1 %vm423_vm1, %v1892_v14 }
 0x344   : > { %v1037_v22 = vpop.f32.mrf.mxu1  ;;  %v1394_v13 = vpop.f32.mrf.mxu2 }
 0x345   : > { %v1124_v12 = vpop.f32.mrf.mxu3  ;;  %v1413_v58 = vadd.f32 %v1394_v13, %v1293_v57 }
 0x346   : > { %v3183_v7 = vadd.f32 %v1124_v12, %v1032_v3 }
 0x349   : > { %v3195_v21 = vpop.f32.mrf.mxu0 }
 0x34c   : > { %v1470_v19 = vpop.f32.mrf.mxu1  ;;  %v1397_v35 = vpop.f32.mrf.mxu2 }
 0x34d   : > { %2322 = vmatmul.msk.bf16.gmra.mxu3 %vm1977_vm2, %v2352_v20  ;;  %v1490_v52 = vadd.f32 %v1470_v19, %v1412_v5 }
 0x350   : > { %v1127_v63 = vpop.f32.mrf.mxu3 }
 0x351   : > { %v3187_v41 = vadd.f32 %v1127_v63, %v1035_v4  ;;  %v3201_v26 = vpop.f32.mrf.mxu0 }
 0x354   : > { %v1472_v0 = vpop.f32.mrf.mxu1  ;;  %v3193_v17 = vpop.f32.mrf.mxu2 }
 0x355   : > { %v1491_v23 = vadd.f32 %v1472_v0, %v1413_v58 }
 0x358   : > { %v1129_v60 = vpop.f32.mrf.mxu3 }
 0x359   : > { %v3191_v30 = vadd.f32 %v1129_v60, %v1037_v22  ;;  %v3207_v43 = vpop.f32.mrf.mxu0  ;;  %v1294_v22 = vadd.f32 %v1277_v39, %v3172_v6 }
 0x35b   : > { %v1414_v13 = vadd.f32 %v1397_v35, %v1294_v22 }
 0x35c   : > { %v1475_v45 = vpop.f32.mrf.mxu1  ;;  %v3197_v24 = vpop.f32.mrf.mxu2 }
 0x35d   : > { %v1492_v63 = vadd.f32 %v1475_v45, %v1414_v13 }
 0x360   : > { %v1596_v50 = vpop.f32.mrf.mxu3 }
 0x361   : > { %v3215_v49 = vpop.f32.mrf.mxu0  ;;  %v1616_v55 = vadd.f32 %v1596_v50, %v1490_v52 }
 0x364   : > { %v3199_v46 = vpop.f32.mrf.mxu1  ;;  %v3203_v11 = vpop.f32.mrf.mxu2 }
 0x368   : > { %v1598_v14 = vpop.f32.mrf.mxu3 }
 0x369   : > { %v1716_v29 = vpop.f32.mrf.mxu0  ;;  %v1617_v32 = vadd.f32 %v1598_v14, %v1491_v23 }
 0x36a   : > { %v1736_v27 = vadd.f32 %v1716_v29, %v1616_v55  ;;  %v1295_v29 = vadd.f32 %v3189_v10, %v3176_v25  ;;  %v1296_v25 = vadd.f32 %v3195_v21, %v3180_v1  ;;  %v1297_v1 = vadd.f32 %v3201_v26, %v3183_v7 }
 0x36b   : > { %v1298_v26 = vadd.f32 %v3207_v43, %v3187_v41  ;;  %v1299_v43 = vadd.f32 %v3215_v49, %v3191_v30 }
 0x36c   : > { %v3205_v40 = vpop.f32.mrf.mxu1  ;;  %v3211_v61 = vpop.f32.mrf.mxu2  ;;  %v1415_v35 = vadd.f32 %v3193_v17, %v1295_v29  ;;  %v1416_v17 = vadd.f32 %v3197_v24, %v1296_v25 }
 0x36e   : > { %v1493_v5 = vadd.f32 %v3199_v46, %v1415_v35 }
 0x370   : > { %v1601_v51 = vpop.f32.mrf.mxu3 }
 0x371   : > { %v1718_v56 = vpop.f32.mrf.mxu0  ;;  %v1618_v6 = vadd.f32 %v1601_v51, %v1492_v63 }
 0x372   : > { %v1737_v33 = vadd.f32 %v1718_v56, %v1617_v32  ;;  %v1417_v32 = vadd.f32 %v3203_v11, %v1297_v1 }
 0x374   : > { %v3209_v16 = vpop.f32.mrf.mxu1  ;;  %v3219_v54 = vpop.f32.mrf.mxu2 }
 0x375   : > { %v1495_v22 = vadd.f32 %v3209_v16, %v1417_v32 }
 0x378   : > { %v1603_v37 = vpop.f32.mrf.mxu3 }
 0x379   : > { %v1721_v3 = vpop.f32.mrf.mxu0  ;;  %v1619_v52 = vadd.f32 %v1603_v37, %v1493_v5 }
 0x37c   : > { %v3213_v48 = vpop.f32.mrf.mxu1  ;;  %v1794_v62 = vpop.f32.mrf.mxu2 }
 0x37d   : > { %v1814_v59 = vadd.f32 %v1794_v62, %v1736_v27  ;;  %v1738_v62 = vadd.f32 %v1721_v3, %v1618_v6  ;;  %v1494_v3 = vadd.f32 %v3205_v40, %v1416_v17 }
 0x380   : > { %v3217_v9 = vpop.f32.mrf.mxu3 }
 0x381   : > { %v1723_v60 = vpop.f32.mrf.mxu0 }
 0x382   : > { %v1739_v10 = vadd.f32 %v1723_v60, %v1619_v52 }
 0x384   : > { %v3221_v34 = vpop.f32.mrf.mxu1  ;;  %v1796_v18 = vpop.f32.mrf.mxu2 }
 0x385   : > { %v1815_v20 = vadd.f32 %v1796_v18, %v1737_v33 }
 0x388   : > { %v3223_v31 = vpop.f32.mrf.mxu3 }
 0x389   : > { %v1726_v55 = vpop.f32.mrf.mxu0  ;;  %v1621_v13 = vadd.f32 %v3223_v31, %v1495_v22 }
 0x38c   : > { %v1920_v44 = vpop.f32.mrf.mxu1  ;;  %v1799_v47 = vpop.f32.mrf.mxu2 }
 0x38d   : > { %v1940_v8 = vadd.f32 %v1920_v44, %v1814_v59  ;;  %v1816_v56 = vadd.f32 %v1799_v47, %v1738_v62  ;;  %v1419_v62 = vadd.f32 %v3219_v54, %v1299_v43 }
 0x390   : > { %v3225_v42 = vpop.f32.mrf.mxu3 }
 0x391   : > { %v1728_v24 = vpop.f32.mrf.mxu0 }
 0x394   : > { %v1922_v36 = vpop.f32.mrf.mxu1  ;;  %v1801_v14 = vpop.f32.mrf.mxu2 }
 0x395   : > { %v1941_v0 = vadd.f32 %v1922_v36, %v1815_v20  ;;  %v1817_v58 = vadd.f32 %v1801_v14, %v1739_v10  ;;  %v1741_v20 = vadd.f32 %v1728_v24, %v1621_v13 }
 0x398   : > { %v3227_v38 = vpop.f32.mrf.mxu3 }
 0x399   : > { %v1731_v16 = vpop.f32.mrf.mxu0 }
 0x39c   : > { %v1925_v12 = vpop.f32.mrf.mxu1  ;;  %v1804_v27 = vpop.f32.mrf.mxu2 }
 0x39d   : > { %v1942_v18 = vadd.f32 %v1925_v12, %v1816_v56 }
 0x3a0   : > { %v2002_v53 = vpop.f32.mrf.mxu3 }
 0x3a1   : > { %v2022_v4 = vadd.f32 %v2002_v53, %v1940_v8  ;;  %v1620_v8 = vadd.f32 %v3217_v9, %v1494_v3  ;;  %v1733_v56 = vpop.f32.mrf.mxu0 }
 0x3a3   : > { %v2034_v28 = vadd.f32 %v3232_v2, %v2022_v4  ;;  %v1740_v21 = vadd.f32 %v1726_v55, %v1620_v8 }
 0x3a4   : > { %v1927_v15 = vpop.f32.mrf.mxu1  ;;  %v1806_v40 = vpop.f32.mrf.mxu2 }
 0x3a5   : > { %v2042_v19 = vpack.c.bf16 %v2034_v28, %v2034_v28  ;;  %v1943_v23 = vadd.f32 %v1927_v15, %v1817_v58  ;;  %v1818_v4 = vadd.f32 %v1804_v27, %v1740_v21  ;;  %v1819_v63 = vadd.f32 %v1806_v40, %v1741_v20 }
 0x3a6   : > { %v1497_v15 = vadd.f32 %v3221_v34, %v1419_v62 }
 0x3a7   : > { %2050 = vst.msk [vmem:[%s3240_s23] sm:$0xf] %vm700_vm6, %v2042_v19  ;;  %v1418_v19 = vadd.f32 %v3211_v61, %v1298_v26 }
 0x3a8   : > { %v2004_v50 = vpop.f32.mrf.mxu3 }
 0x3a9   : > { %v2023_v39 = vadd.f32 %v2004_v50, %v1941_v0  ;;  %v1496_v60 = vadd.f32 %v3213_v48, %v1418_v19 }
 0x3ab   : > { %v2035_v44 = vadd.f32 %v3232_v2, %v2023_v39  ;;  %v1622_v39 = vadd.f32 %v3225_v42, %v1496_v60 }
 0x3ac   : > { %v1930_v46 = vpop.f32.mrf.mxu1  ;;  %v1809_v6 = vpop.f32.mrf.mxu2 }
 0x3ad   : > { %v2043_v45 = vpack.c.bf16 %v2035_v44, %v2035_v44  ;;  %v1944_v33 = vadd.f32 %v1930_v46, %v1818_v4  ;;  %v1742_v29 = vadd.f32 %v1731_v16, %v1622_v39 }
 0x3af   : > { %2051 = vst.msk [vmem:[%s3240_s23 + $0x4] sm:$0xf] %vm700_vm6, %v2043_v45  ;;  %v1820_v44 = vadd.f32 %v1809_v6, %v1742_v29  ;;  %v1623_v45 = vadd.f32 %v3227_v38, %v1497_v15 }
 0x3b0   : > { %v2007_v51 = vpop.f32.mrf.mxu3 }
 0x3b1   : > { %v2024_v36 = vadd.f32 %v2007_v51, %v1942_v18  ;;  %v1743_v49 = vadd.f32 %v1733_v56, %v1623_v45 }
 0x3b3   : > { %v2036_v57 = vadd.f32 %v3232_v2, %v2024_v36 }
 0x3b4   : > { %v1932_v9 = vpop.f32.mrf.mxu1  ;;  %v1811_v30 = vpop.f32.mrf.mxu2 }
 0x3b5   : > { %v2044_v59 = vpack.c.bf16 %v2036_v57, %v2036_v57  ;;  %v1945_v50 = vadd.f32 %v1932_v9, %v1819_v63  ;;  %v1821_v54 = vadd.f32 %v1811_v30, %v1743_v49 }
 0x3b7   : > { %2052 = vst.msk [vmem:[%s3240_s23 + $0x8] sm:$0xf] %vm700_vm6, %v2044_v59 }
 0x3b8   : > { %v2009_v37 = vpop.f32.mrf.mxu3 }
 0x3b9   : > { %v2025_v47 = vadd.f32 %v2009_v37, %v1943_v23 }
 0x3bb   : > { %v2037_v53 = vadd.f32 %v3232_v2, %v2025_v47 }
 0x3bc   : > { %v1935_v41 = vpop.f32.mrf.mxu1 }
 0x3bd   : > { %v2045_v12 = vpack.c.bf16 %v2037_v53, %v2037_v53  ;;  %v1946_v35 = vadd.f32 %v1935_v41, %v1820_v44 }
 0x3bf   : > { %2053 = vst.msk [vmem:[%s3240_s23 + $0xc] sm:$0xf] %vm700_vm6, %v2045_v12 }
 0x3c0   : > { %v2012_v28 = vpop.f32.mrf.mxu3 }
 0x3c1   : > { %v2026_v7 = vadd.f32 %v2012_v28, %v1944_v33 }
 0x3c3   : > { %v2038_v11 = vadd.f32 %v3232_v2, %v2026_v7 }
 0x3c4   : > { %v1937_v51 = vpop.f32.mrf.mxu1 }
 0x3c5   : > { %v2046_v0 = vpack.c.bf16 %v2038_v11, %v2038_v11  ;;  %v1947_v36 = vadd.f32 %v1937_v51, %v1821_v54 }
 0x3c7   : > { %2054 = vst.msk [vmem:[%s3240_s23 + $0x10] sm:$0xf] %vm700_vm6, %v2046_v0 }
 0x3c8   : > { %v2014_v31 = vpop.f32.mrf.mxu3 }
 0x3c9   : > { %v2027_v14 = vadd.f32 %v2014_v31, %v1945_v50 }
 0x3cb   : > { %v2039_v61 = vadd.f32 %v3232_v2, %v2027_v14 }
 0x3cd   : > { %v2047_v48 = vpack.c.bf16 %v2039_v61, %v2039_v61 }
 0x3cf   : > { %2055 = vst.msk [vmem:[%s3240_s23 + $0x14] sm:$0xf] %vm700_vm6, %v2047_v48 }
 0x3d0   : > { %v2017_v42 = vpop.f32.mrf.mxu3 }
 0x3d1   : > { %v2028_v5 = vadd.f32 %v2017_v42, %v1946_v35 }
 0x3d3   : > { %v2040_v18 = vadd.f32 %v3232_v2, %v2028_v5 }
 0x3d5   : > { %v2048_v52 = vpack.c.bf16 %v2040_v18, %v2040_v18 }
 0x3d7   : > { %2056 = vst.msk [vmem:[%s3240_s23 + $0x18] sm:$0xf] %vm700_vm6, %v2048_v52 }
 0x3d8   : > { %v2019_v34 = vpop.f32.mrf.mxu3 }
 0x3d9   : > { %v2029_v55 = vadd.f32 %v2019_v34, %v1947_v36 }
 0x3db   : > { %v2041_v25 = vadd.f32 %v3232_v2, %v2029_v55 }
 0x3dd   : > { %v2049_v10 = vpack.c.bf16 %v2041_v25, %v2041_v25 }
 0x3df   : > { %2057 = vst.msk [vmem:[%s3240_s23 + $0x1c] sm:$0xf] %vm700_vm6, %v2049_v10 }
 0x3e0 PF: > { %s20_s13 = sadd.s32 1, %s2478_s13  }
 0x3e1   : > { %p17_p4 = scmp.ge.s32.totalorder %s20_s13, 4  }
 0x3e3   :  { %19 = sbr.rel (!%p17_p4) target bundleno = 1 (0x1), region = 104 }

</bundles_post_ra>
